<compile_context>
chip_gen: v7x
topology: tpu7x:2x2x1
jax: 0.10.0
libtpu: 0.0.40
codegen_flags: <defaults>
</compile_context>

<pallas_src>
import functools

import jax
import jax.numpy as jnp
from jax.experimental import pallas as pl
from jax.experimental.pallas import tpu as pltpu  # noqa: F401  (kept for TPU-specific tuning)

LANE = 128          # TPU lane width: all GEMM outputs are padded to 128 channels
NEG_SLOPE = 0.2


def _round_up(x, m):
    return (x + m - 1) // m * m


# ----------------------------------------------------------------------------
# Pallas kernel 1: single-block GEMM with fused bias + LeakyReLU (MXU path)
# ----------------------------------------------------------------------------
def _gemm_kernel(a_ref, w_ref, b_ref, o_ref, *, act):
    y = jnp.dot(a_ref[...], w_ref[...], preferred_element_type=jnp.float32)
    y = y + b_ref[...]
    if act == "lrelu":
        y = jnp.where(y >= 0.0, y, NEG_SLOPE * y)
    o_ref[...] = y


def gemm_bias_act(a, w, b, act="lrelu"):
    """a: (M, K) bf16, w: (K, 128) bf16, b: (1, 128) f32 -> act(a @ w + b) (M, 128) f32.

    Shapes are tiny (<1 MiB), so a single full-array block (no K grid, no
    accumulator scratch) is fastest; the 128-wide output keeps stores unmasked.
    """
    M, K = a.shape
    N = w.shape[1]
    return pl.pallas_call(
        functools.partial(_gemm_kernel, act=act),
        out_shape=jax.ShapeDtypeStruct((M, N), jnp.float32),
        grid=(1,),
        in_specs=[
            pl.BlockSpec((M, K), lambda i: (0, 0)),
            pl.BlockSpec((K, N), lambda i: (0, 0)),
            pl.BlockSpec((1, N), lambda i: (0, 0)),
        ],
        out_specs=pl.BlockSpec((M, N), lambda i: (0, 0)),
    )(a, w, b)


# ----------------------------------------------------------------------------
# Pallas kernel 2: fused (3x3-conv GEMM + bias + LeakyReLU) -> (1x1-conv GEMM + bias)
# The intermediate activation never leaves the kernel.
# ----------------------------------------------------------------------------
def _gemm2_kernel(a_ref, w1_ref, b1_ref, w2_ref, b2_ref, o_ref):
    h = jnp.dot(a_ref[...], w1_ref[...], preferred_element_type=jnp.float32)
    h = h + b1_ref[...]
    h = jnp.where(h >= 0.0, h, NEG_SLOPE * h)
    y = jnp.dot(h.astype(w2_ref.dtype), w2_ref[...],
                preferred_element_type=jnp.float32)
    o_ref[...] = y + b2_ref[...]


def gemm_lrelu_gemm(a, w1, b1, w2, b2):
    M, K = a.shape
    N = w1.shape[1]
    return pl.pallas_call(
        _gemm2_kernel,
        out_shape=jax.ShapeDtypeStruct((M, N), jnp.float32),
        grid=(1,),
        in_specs=[
            pl.BlockSpec((M, K), lambda i: (0, 0)),
            pl.BlockSpec((K, N), lambda i: (0, 0)),
            pl.BlockSpec((1, N), lambda i: (0, 0)),
            pl.BlockSpec((N, N), lambda i: (0, 0)),
            pl.BlockSpec((1, N), lambda i: (0, 0)),
        ],
        out_specs=pl.BlockSpec((M, N), lambda i: (0, 0)),
    )(a, w1, b1, w2, b2)


# ----------------------------------------------------------------------------
# Pallas kernel 3: stylemap mask blend over ALL references in one call (VPU path)
#   cur = cur * (1 - m_r) + ref_r * m_r   for r = 0..R-1 (sequential, last wins)
# ----------------------------------------------------------------------------
def _blend_kernel(cur_ref, refs_ref, m_ref, o_ref, *, n_refs):
    cur = cur_ref[...]
    for r in range(n_refs):
        m = m_ref[r]
        cur = cur * (1.0 - m) + refs_ref[r] * m
    o_ref[...] = cur


def blend_all(cur, refs, masks):
    """cur: (S, 128) f32; refs/masks: (R, S, 128) f32 -> blended (S, 128) f32."""
    R, S, C = refs.shape
    return pl.pallas_call(
        functools.partial(_blend_kernel, n_refs=R),
        out_shape=jax.ShapeDtypeStruct((S, C), jnp.float32),
        grid=(1,),
        in_specs=[
            pl.BlockSpec((S, C), lambda i: (0, 0)),
            pl.BlockSpec((R, S, C), lambda i: (0, 0, 0)),
            pl.BlockSpec((R, S, C), lambda i: (0, 0, 0)),
        ],
        out_specs=pl.BlockSpec((S, C), lambda i: (0, 0)),
    )(cur, refs, masks)


# ----------------------------------------------------------------------------
# Conv glue: im2col (plain JAX, fused by XLA under jit) + Pallas GEMM
# ----------------------------------------------------------------------------
def _im2col(x, kh, kw, stride, pad, k_target):
    """x: (N, H, W, Cin) -> bf16 patches (N*Ho*Wo, k_target) + output spatial dims."""
    N, H, W, Cin = x.shape
    if pad:
        x = jnp.pad(x, ((0, 0), (pad, pad), (pad, pad), (0, 0)))
    Ho = (H + 2 * pad - kh) // stride + 1
    Wo = (W + 2 * pad - kw) // stride + 1
    cols = []
    for i in range(kh):
        for j in range(kw):
            cols.append(x[:, i:i + stride * Ho:stride, j:j + stride * Wo:stride, :])
    patches = jnp.concatenate(cols, axis=-1).reshape(N * Ho * Wo, kh * kw * Cin)
    K = kh * kw * Cin
    if k_target > K:  # tiny pad (e.g. 27 -> 32) to match the pre-packed weight K
        patches = jnp.pad(patches, ((0, 0), (0, k_target - K)))
    return patches.astype(jnp.bfloat16), (N, Ho, Wo)


def conv2d(x, w_packed, b_packed, cout, stride=1, pad=1, act="lrelu"):
    patches, (N, Ho, Wo) = _im2col(x, 3, 3, stride, pad, w_packed.shape[0])
    y = gemm_bias_act(patches, w_packed, b_packed, act=act)          # (M, 128)
    return y[:, :cout].reshape(N, Ho, Wo, cout)


def conv3x3_lrelu_conv1x1(x, w1, b1, w2, b2, cout, stride=1, pad=1):
    patches, (N, Ho, Wo) = _im2col(x, 3, 3, stride, pad, w1.shape[0])
    y = gemm_lrelu_gemm(patches, w1, b1, w2, b2)                     # (M, 128)
    return y[:, :cout].reshape(N, Ho, Wo, cout)


def _upsample2x(x):
    return jnp.repeat(jnp.repeat(x, 2, axis=1), 2, axis=2)


# ----------------------------------------------------------------------------
# Weight packing (done once, at init): lane-dense (Cout -> 128) bf16 weights
# ----------------------------------------------------------------------------
def _pack_conv_w(w):
    kh, kw, cin, cout = w.shape
    K = kh * kw * cin
    Kp = _round_up(K, 16)            # bf16-friendly sublane multiple
    wp = jnp.zeros((Kp, LANE), jnp.float32).at[:K, :cout].set(w.reshape(K, cout))
    return wp.astype(jnp.bfloat16)


def _pack_1x1_w(w):
    # K padded to the full 128 lanes so it consumes the padded (M, 128)
    # intermediate of the preceding fused GEMM (extra rows are zero).
    _, _, cin, cout = w.shape
    wp = jnp.zeros((LANE, LANE), jnp.float32).at[:cin, :cout].set(w.reshape(cin, cout))
    return wp.astype(jnp.bfloat16)


def _pack_b(b):
    return jnp.zeros((1, LANE), jnp.float32).at[0, :b.shape[0]].set(b.astype(jnp.float32))


# ----------------------------------------------------------------------------
# Jitted forward: e_ema (Encoder) + demo-mode stylemap mixing + g_ema (Generator)
# ----------------------------------------------------------------------------
def _forward_impl(params, original_image, references, masks, shift_values,
                  *, size, lat_c, lat_s):
    # ---- e_ema on cat([original, references]) ----
    combined = jnp.concatenate([original_image, references], axis=0)       # NCHW
    x = jnp.transpose(combined, (0, 2, 3, 1))                              # NHWC
    h = conv2d(x, params["e_w1"], params["e_b1"], 16, stride=1, pad=1)
    h = conv2d(h, params["e_w2"], params["e_b2"], 32, stride=2, pad=1)
    ws = conv3x3_lrelu_conv1x1(h, params["e_w3"], params["e_b3"],
                               params["e_w4"], params["e_b4"],
                               lat_c, stride=2, pad=1)                      # (1+R, s, s, C)
    original_stylemap = ws[:1]
    reference_stylemaps = ws[1:]
    R = reference_stylemaps.shape[0]

    # ---- demo mix_space: downsample masks to latent grid, shift, blend ----
    f = size // lat_s
    masks_nhwc = jnp.transpose(masks, (0, 2, 3, 1))                         # (R, H, W, 1)
    masks_lat = masks_nhwc.reshape(R, lat_s, f, lat_s, f, 1).mean(axis=(2, 4))
    weight = 1.0  # final interpolation step
    # TODO(synk): full interpolation sequence of `interpolation_step` outputs.

    refs_sh, msk_sh = [], []
    for r in range(R):
        sh = jnp.round(shift_values[r] * lat_s / size).astype(jnp.int32)    # (dy, dx)
        refs_sh.append(jnp.roll(reference_stylemaps[r], sh, axis=(0, 1)))
        msk_sh.append(jnp.roll(masks_lat[r], sh, axis=(0, 1)) * weight)

    S = (lat_s * lat_s * lat_c) // LANE                                     # lane-dense blend
    cur_flat = original_stylemap[0].reshape(S, LANE)
    refs_flat = jnp.stack(refs_sh).reshape(R, S, LANE)
    msk_flat = jnp.broadcast_to(jnp.stack(msk_sh),
                                (R, lat_s, lat_s, lat_c)).reshape(R, S, LANE)
    mixed_code = blend_all(cur_flat, refs_flat, msk_flat).reshape(1, lat_s, lat_s, lat_c)

    # ---- g_ema ----
    g = conv2d(mixed_code, params["g_w1"], params["g_b1"], 32, stride=1, pad=1)
    g = _upsample2x(g)
    g = conv2d(g, params["g_w2"], params["g_b2"], 16, stride=1, pad=1)
    g = _upsample2x(g)
    out = conv3x3_lrelu_conv1x1(g, params["g_w3"], params["g_b3"],
                                params["g_w4"], params["g_b4"],
                                3, stride=1, pad=1)                         # (1, H, W, 3)
    return jnp.transpose(out, (0, 3, 1, 2))                                 # NCHW


class DemoModel:
    def __init__(self, key, size=16, latent_channel_size=32, latent_spatial_size=4):
        self.size = size
        self.lat_c = latent_channel_size
        self.lat_s = latent_spatial_size
        assert (latent_spatial_size ** 2 * latent_channel_size) % LANE == 0

        def w_init(k, kh, kw, cin, cout):
            scale = jnp.sqrt(2.0 / (kh * kw * cin))
            return jax.random.normal(k, (kh, kw, cin, cout), jnp.float32) * scale

        keys = jax.random.split(key, 8)
        # Encoder: 16x16x3 -> 16x16x16 -> 8x8x32 -> 4x4x32 -> 4x4xlat_c
        e_w1 = w_init(keys[0], 3, 3, 3, 16)
        e_w2 = w_init(keys[1], 3, 3, 16, 32)
        e_w3 = w_init(keys[2], 3, 3, 32, 32)
        e_w4 = w_init(keys[3], 1, 1, 32, self.lat_c)
        # Generator: 4x4xlat_c -> 4x4x32 -> 8x8x16 -> 16x16x16 -> 16x16x3
        g_w1 = w_init(keys[4], 3, 3, self.lat_c, 32)
        g_w2 = w_init(keys[5], 3, 3, 32, 16)
        g_w3 = w_init(keys[6], 3, 3, 16, 16)
        g_w4 = w_init(keys[7], 1, 1, 16, 3)

        # Pre-packed, lane-dense, bf16 weights + f32 biases (padding hoisted here).
        self.params = {
            "e_w1": _pack_conv_w(e_w1), "e_b1": _pack_b(jnp.zeros((16,))),
            "e_w2": _pack_conv_w(e_w2), "e_b2": _pack_b(jnp.zeros((32,))),
            "e_w3": _pack_conv_w(e_w3), "e_b3": _pack_b(jnp.zeros((32,))),
            "e_w4": _pack_1x1_w(e_w4),  "e_b4": _pack_b(jnp.zeros((self.lat_c,))),
            "g_w1": _pack_conv_w(g_w1), "g_b1": _pack_b(jnp.zeros((32,))),
            "g_w2": _pack_conv_w(g_w2), "g_b2": _pack_b(jnp.zeros((16,))),
            "g_w3": _pack_conv_w(g_w3), "g_b3": _pack_b(jnp.zeros((16,))),
            "g_w4": _pack_1x1_w(g_w4),  "g_b4": _pack_b(jnp.zeros((3,))),
        }
        self._fwd = jax.jit(functools.partial(
            _forward_impl, size=size, lat_c=self.lat_c, lat_s=self.lat_s))

    def forward(self, original_image, references, masks, shift_values,
                interpolation_step=3):
        # Only the final interpolation step's image (weight=1.0) is produced.
        del interpolation_step
        return self._fwd(self.params, original_image, references, masks, shift_values)


if __name__ == "__main__":
    key = jax.random.PRNGKey(0)
    k_param, k_img, k_ref, k_mask = jax.random.split(key, 4)

    size, lat_c, lat_s = 16, 32, 4
    model = DemoModel(k_param, size=size, latent_channel_size=lat_c,
                      latent_spatial_size=lat_s)

    original_image = jax.random.normal(k_img, (1, 3, size, size), jnp.float32)
    references = jax.random.normal(k_ref, (2, 3, size, size), jnp.float32)
    masks = (jax.random.uniform(k_mask, (2, 1, size, size)) > 0.5).astype(jnp.float32)
    shift_values = jnp.array([[4.0, 0.0], [0.0, 8.0]], jnp.float32)

    mixed = model.forward(original_image, references, masks, shift_values,
                          interpolation_step=3)
    jax.block_until_ready(mixed)
    assert mixed.shape == (1, 3, size, size)
    print("KERNEL_OK")
</pallas_src>

<mosaic_0001>
module attributes {stable_mosaic.version = 11 : i64} {
  func.func @_gemm_kernel(%arg0: i32, %arg1: memref<768x32xbf16, #tpu.memory_space<vmem>>, %arg2: memref<32x128xbf16, #tpu.memory_space<vmem>>, %arg3: memref<1x128xf32, #tpu.memory_space<vmem>>, %arg4: memref<768x128xf32, #tpu.memory_space<vmem>>) attributes {dimension_semantics = [#tpu.dimension_semantics<arbitrary>], iteration_bounds = array<i64: 1>, scalar_prefetch = 0 : i64, scratch_operands = 0 : i64, tpu.core_type = #tpu.core_type<tc>, window_params = [{pipeline_mode = #tpu.pipeline_mode<synchronous>, transform_indices = @transform_0, window_bounds = array<i64: 768, 32>}, {pipeline_mode = #tpu.pipeline_mode<synchronous>, transform_indices = @transform_1, window_bounds = array<i64: 32, 128>}, {pipeline_mode = #tpu.pipeline_mode<synchronous>, transform_indices = @transform_2, window_bounds = array<i64: 1, 128>}, {pipeline_mode = #tpu.pipeline_mode<synchronous>, transform_indices = @transform_3, window_bounds = array<i64: 768, 128>}]} {
    %c0 = arith.constant 0 : index
    %c0_0 = arith.constant 0 : index
    %0 = vector.load %arg1[%c0, %c0_0] : memref<768x32xbf16, #tpu.memory_space<vmem>>, vector<768x32xbf16>
    %c0_1 = arith.constant 0 : index
    %c0_2 = arith.constant 0 : index
    %1 = vector.load %arg2[%c0_1, %c0_2] : memref<32x128xbf16, #tpu.memory_space<vmem>>, vector<32x128xbf16>
    %cst = arith.constant dense<0.000000e+00> : vector<768x128xf32>
    %2 = tpu.matmul %0, %1, %cst {dimension_numbers = #tpu.dot_dimension_numbers<[1], [0], [0], [1], [0, 0, 1, 1], [], []>} : vector<768x32xbf16>, vector<32x128xbf16>, vector<768x128xf32> -> vector<768x128xf32>
    %c0_3 = arith.constant 0 : index
    %c0_4 = arith.constant 0 : index
    %3 = vector.load %arg3[%c0_3, %c0_4] : memref<1x128xf32, #tpu.memory_space<vmem>>, vector<1x128xf32>
    %4 = vector.broadcast %3 : vector<1x128xf32> to vector<768x128xf32>
    %5 = arith.addf %2, %4 : vector<768x128xf32>
    %cst_5 = arith.constant 0.000000e+00 : f32
    %6 = vector.broadcast %cst_5 : f32 to vector<768x128xf32>
    %7 = arith.cmpf oge, %5, %6 : vector<768x128xf32>
    %cst_6 = arith.constant 2.000000e-01 : f32
    %8 = vector.broadcast %cst_6 : f32 to vector<768x128xf32>
    %9 = arith.mulf %8, %5 : vector<768x128xf32>
    %10 = arith.select %7, %5, %9 : vector<768x128xi1>, vector<768x128xf32>
    %c0_7 = arith.constant 0 : index
    %c0_8 = arith.constant 0 : index
    %11 = vector.load %arg4[%c0_7, %c0_8] : memref<768x128xf32, #tpu.memory_space<vmem>>, vector<768x128xf32>
    tpu.vector_store %arg4[%c0_7, %c0_8], %10 {strides = array<i32>} : memref<768x128xf32, #tpu.memory_space<vmem>>, vector<768x128xf32>,
    return
  }
  func.func @transform_0(%arg0: i32) -> (i32, i32) {
    %c0_i32 = arith.constant 0 : i32
    %c0_i32_0 = arith.constant 0 : i32
    %c0_i32_1 = arith.constant 0 : i32
    return %c0_i32, %c0_i32_0 : i32, i32
  }
  func.func @transform_1(%arg0: i32) -> (i32, i32) {
    %c0_i32 = arith.constant 0 : i32
    %c0_i32_0 = arith.constant 0 : i32
    %c0_i32_1 = arith.constant 0 : i32
    return %c0_i32, %c0_i32_0 : i32, i32
  }
  func.func @transform_2(%arg0: i32) -> (i32, i32) {
    %c0_i32 = arith.constant 0 : i32
    %c0_i32_0 = arith.constant 0 : i32
    %c0_i32_1 = arith.constant 0 : i32
    return %c0_i32, %c0_i32_0 : i32, i32
  }
  func.func @transform_3(%arg0: i32) -> (i32, i32) {
    %c0_i32 = arith.constant 0 : i32
    %c0_i32_0 = arith.constant 0 : i32
    %c0_i32_1 = arith.constant 0 : i32
    return %c0_i32, %c0_i32_0 : i32, i32
  }
}

module attributes {stable_mosaic.version = 11 : i64} {
  func.func @_gemm_kernel(%arg0: i32, %arg1: memref<192x144xbf16, #tpu.memory_space<vmem>>, %arg2: memref<144x128xbf16, #tpu.memory_space<vmem>>, %arg3: memref<1x128xf32, #tpu.memory_space<vmem>>, %arg4: memref<192x128xf32, #tpu.memory_space<vmem>>) attributes {dimension_semantics = [#tpu.dimension_semantics<arbitrary>], iteration_bounds = array<i64: 1>, scalar_prefetch = 0 : i64, scratch_operands = 0 : i64, tpu.core_type = #tpu.core_type<tc>, window_params = [{pipeline_mode = #tpu.pipeline_mode<synchronous>, transform_indices = @transform_0, window_bounds = array<i64: 192, 144>}, {pipeline_mode = #tpu.pipeline_mode<synchronous>, transform_indices = @transform_1, window_bounds = array<i64: 144, 128>}, {pipeline_mode = #tpu.pipeline_mode<synchronous>, transform_indices = @transform_2, window_bounds = array<i64: 1, 128>}, {pipeline_mode = #tpu.pipeline_mode<synchronous>, transform_indices = @transform_3, window_bounds = array<i64: 192, 128>}]} {
    %c0 = arith.constant 0 : index
    %c0_0 = arith.constant 0 : index
    %0 = vector.load %arg1[%c0, %c0_0] : memref<192x144xbf16, #tpu.memory_space<vmem>>, vector<192x144xbf16>
    %c0_1 = arith.constant 0 : index
    %c0_2 = arith.constant 0 : index
    %1 = vector.load %arg2[%c0_1, %c0_2] : memref<144x128xbf16, #tpu.memory_space<vmem>>, vector<144x128xbf16>
    %cst = arith.constant dense<0.000000e+00> : vector<192x128xf32>
    %2 = tpu.matmul %0, %1, %cst {dimension_numbers = #tpu.dot_dimension_numbers<[1], [0], [0], [1], [0, 0, 1, 1], [], []>} : vector<192x144xbf16>, vector<144x128xbf16>, vector<192x128xf32> -> vector<192x128xf32>
    %c0_3 = arith.constant 0 : index
    %c0_4 = arith.constant 0 : index
    %3 = vector.load %arg3[%c0_3, %c0_4] : memref<1x128xf32, #tpu.memory_space<vmem>>, vector<1x128xf32>
    %4 = vector.broadcast %3 : vector<1x128xf32> to vector<192x128xf32>
    %5 = arith.addf %2, %4 : vector<192x128xf32>
    %cst_5 = arith.constant 0.000000e+00 : f32
    %6 = vector.broadcast %cst_5 : f32 to vector<192x128xf32>
    %7 = arith.cmpf oge, %5, %6 : vector<192x128xf32>
    %cst_6 = arith.constant 2.000000e-01 : f32
    %8 = vector.broadcast %cst_6 : f32 to vector<192x128xf32>
    %9 = arith.mulf %8, %5 : vector<192x128xf32>
    %10 = arith.select %7, %5, %9 : vector<192x128xi1>, vector<192x128xf32>
    %c0_7 = arith.constant 0 : index
    %c0_8 = arith.constant 0 : index
    %11 = vector.load %arg4[%c0_7, %c0_8] : memref<192x128xf32, #tpu.memory_space<vmem>>, vector<192x128xf32>
    tpu.vector_store %arg4[%c0_7, %c0_8], %10 {strides = array<i32>} : memref<192x128xf32, #tpu.memory_space<vmem>>, vector<192x128xf32>,
    return
  }
  func.func @transform_0(%arg0: i32) -> (i32, i32) {
    %c0_i32 = arith.constant 0 : i32
    %c0_i32_0 = arith.constant 0 : i32
    %c0_i32_1 = arith.constant 0 : i32
    return %c0_i32, %c0_i32_0 : i32, i32
  }
  func.func @transform_1(%arg0: i32) -> (i32, i32) {
    %c0_i32 = arith.constant 0 : i32
    %c0_i32_0 = arith.constant 0 : i32
    %c0_i32_1 = arith.constant 0 : i32
    return %c0_i32, %c0_i32_0 : i32, i32
  }
  func.func @transform_2(%arg0: i32) -> (i32, i32) {
    %c0_i32 = arith.constant 0 : i32
    %c0_i32_0 = arith.constant 0 : i32
    %c0_i32_1 = arith.constant 0 : i32
    return %c0_i32, %c0_i32_0 : i32, i32
  }
  func.func @transform_3(%arg0: i32) -> (i32, i32) {
    %c0_i32 = arith.constant 0 : i32
    %c0_i32_0 = arith.constant 0 : i32
    %c0_i32_1 = arith.constant 0 : i32
    return %c0_i32, %c0_i32_0 : i32, i32
  }
}

module attributes {stable_mosaic.version = 11 : i64} {
  func.func @_gemm2_kernel(%arg0: i32, %arg1: memref<48x288xbf16, #tpu.memory_space<vmem>>, %arg2: memref<288x128xbf16, #tpu.memory_space<vmem>>, %arg3: memref<1x128xf32, #tpu.memory_space<vmem>>, %arg4: memref<128x128xbf16, #tpu.memory_space<vmem>>, %arg5: memref<1x128xf32, #tpu.memory_space<vmem>>, %arg6: memref<48x128xf32, #tpu.memory_space<vmem>>) attributes {dimension_semantics = [#tpu.dimension_semantics<arbitrary>], iteration_bounds = array<i64: 1>, scalar_prefetch = 0 : i64, scratch_operands = 0 : i64, tpu.core_type = #tpu.core_type<tc>, window_params = [{pipeline_mode = #tpu.pipeline_mode<synchronous>, transform_indices = @transform_0, window_bounds = array<i64: 48, 288>}, {pipeline_mode = #tpu.pipeline_mode<synchronous>, transform_indices = @transform_1, window_bounds = array<i64: 288, 128>}, {pipeline_mode = #tpu.pipeline_mode<synchronous>, transform_indices = @transform_2, window_bounds = array<i64: 1, 128>}, {pipeline_mode = #tpu.pipeline_mode<synchronous>, transform_indices = @transform_3, window_bounds = array<i64: 128, 128>}, {pipeline_mode = #tpu.pipeline_mode<synchronous>, transform_indices = @transform_4, window_bounds = array<i64: 1, 128>}, {pipeline_mode = #tpu.pipeline_mode<synchronous>, transform_indices = @transform_5, window_bounds = array<i64: 48, 128>}]} {
    %c0 = arith.constant 0 : index
    %c0_0 = arith.constant 0 : index
    %0 = vector.load %arg1[%c0, %c0_0] : memref<48x288xbf16, #tpu.memory_space<vmem>>, vector<48x288xbf16>
    %c0_1 = arith.constant 0 : index
    %c0_2 = arith.constant 0 : index
    %1 = vector.load %arg2[%c0_1, %c0_2] : memref<288x128xbf16, #tpu.memory_space<vmem>>, vector<288x128xbf16>
    %cst = arith.constant dense<0.000000e+00> : vector<48x128xf32>
    %2 = tpu.matmul %0, %1, %cst {dimension_numbers = #tpu.dot_dimension_numbers<[1], [0], [0], [1], [0, 0, 1, 1], [], []>} : vector<48x288xbf16>, vector<288x128xbf16>, vector<48x128xf32> -> vector<48x128xf32>
    %c0_3 = arith.constant 0 : index
    %c0_4 = arith.constant 0 : index
    %3 = vector.load %arg3[%c0_3, %c0_4] : memref<1x128xf32, #tpu.memory_space<vmem>>, vector<1x128xf32>
    %4 = vector.broadcast %3 : vector<1x128xf32> to vector<48x128xf32>
    %5 = arith.addf %2, %4 : vector<48x128xf32>
    %cst_5 = arith.constant 0.000000e+00 : f32
    %6 = vector.broadcast %cst_5 : f32 to vector<48x128xf32>
    %7 = arith.cmpf oge, %5, %6 : vector<48x128xf32>
    %cst_6 = arith.constant 2.000000e-01 : f32
    %8 = vector.broadcast %cst_6 : f32 to vector<48x128xf32>
    %9 = arith.mulf %8, %5 : vector<48x128xf32>
    %10 = arith.select %7, %5, %9 : vector<48x128xi1>, vector<48x128xf32>
    %11 = arith.truncf %10 : vector<48x128xf32> to vector<48x128xbf16>
    %c0_7 = arith.constant 0 : index
    %c0_8 = arith.constant 0 : index
    %12 = vector.load %arg4[%c0_7, %c0_8] : memref<128x128xbf16, #tpu.memory_space<vmem>>, vector<128x128xbf16>
    %cst_9 = arith.constant dense<0.000000e+00> : vector<48x128xf32>
    %13 = tpu.matmul %11, %12, %cst_9 {dimension_numbers = #tpu.dot_dimension_numbers<[1], [0], [0], [1], [0, 0, 1, 1], [], []>} : vector<48x128xbf16>, vector<128x128xbf16>, vector<48x128xf32> -> vector<48x128xf32>
    %c0_10 = arith.constant 0 : index
    %c0_11 = arith.constant 0 : index
    %14 = vector.load %arg5[%c0_10, %c0_11] : memref<1x128xf32, #tpu.memory_space<vmem>>, vector<1x128xf32>
    %15 = vector.broadcast %14 : vector<1x128xf32> to vector<48x128xf32>
    %16 = arith.addf %13, %15 : vector<48x128xf32>
    %c0_12 = arith.constant 0 : index
    %c0_13 = arith.constant 0 : index
    %17 = vector.load %arg6[%c0_12, %c0_13] : memref<48x128xf32, #tpu.memory_space<vmem>>, vector<48x128xf32>
    tpu.vector_store %arg6[%c0_12, %c0_13], %16 {strides = array<i32>} : memref<48x128xf32, #tpu.memory_space<vmem>>, vector<48x128xf32>,
    return
  }
  func.func @transform_0(%arg0: i32) -> (i32, i32) {
    %c0_i32 = arith.constant 0 : i32
    %c0_i32_0 = arith.constant 0 : i32
    %c0_i32_1 = arith.constant 0 : i32
    return %c0_i32, %c0_i32_0 : i32, i32
  }
  func.func @transform_1(%arg0: i32) -> (i32, i32) {
    %c0_i32 = arith.constant 0 : i32
    %c0_i32_0 = arith.constant 0 : i32
    %c0_i32_1 = arith.constant 0 : i32
    return %c0_i32, %c0_i32_0 : i32, i32
  }
  func.func @transform_2(%arg0: i32) -> (i32, i32) {
    %c0_i32 = arith.constant 0 : i32
    %c0_i32_0 = arith.constant 0 : i32
    %c0_i32_1 = arith.constant 0 : i32
    return %c0_i32, %c0_i32_0 : i32, i32
  }
  func.func @transform_3(%arg0: i32) -> (i32, i32) {
    %c0_i32 = arith.constant 0 : i32
    %c0_i32_0 = arith.constant 0 : i32
    %c0_i32_1 = arith.constant 0 : i32
    return %c0_i32, %c0_i32_0 : i32, i32
  }
  func.func @transform_4(%arg0: i32) -> (i32, i32) {
    %c0_i32 = arith.constant 0 : i32
    %c0_i32_0 = arith.constant 0 : i32
    %c0_i32_1 = arith.constant 0 : i32
    return %c0_i32, %c0_i32_0 : i32, i32
  }
  func.func @transform_5(%arg0: i32) -> (i32, i32) {
    %c0_i32 = arith.constant 0 : i32
    %c0_i32_0 = arith.constant 0 : i32
    %c0_i32_1 = arith.constant 0 : i32
    return %c0_i32, %c0_i32_0 : i32, i32
  }
}

module attributes {stable_mosaic.version = 11 : i64} {
  func.func @_blend_kernel(%arg0: i32, %arg1: memref<4x128xf32, #tpu.memory_space<vmem>>, %arg2: memref<2x4x128xf32, #tpu.memory_space<vmem>>, %arg3: memref<2x4x128xf32, #tpu.memory_space<vmem>>, %arg4: memref<4x128xf32, #tpu.memory_space<vmem>>) attributes {dimension_semantics = [#tpu.dimension_semantics<arbitrary>], iteration_bounds = array<i64: 1>, scalar_prefetch = 0 : i64, scratch_operands = 0 : i64, tpu.core_type = #tpu.core_type<tc>, window_params = [{pipeline_mode = #tpu.pipeline_mode<synchronous>, transform_indices = @transform_0, window_bounds = array<i64: 4, 128>}, {pipeline_mode = #tpu.pipeline_mode<synchronous>, transform_indices = @transform_1, window_bounds = array<i64: 2, 4, 128>}, {pipeline_mode = #tpu.pipeline_mode<synchronous>, transform_indices = @transform_2, window_bounds = array<i64: 2, 4, 128>}, {pipeline_mode = #tpu.pipeline_mode<synchronous>, transform_indices = @transform_3, window_bounds = array<i64: 4, 128>}]} {
    %c0 = arith.constant 0 : index
    %c0_0 = arith.constant 0 : index
    %0 = vector.load %arg1[%c0, %c0_0] : memref<4x128xf32, #tpu.memory_space<vmem>>, vector<4x128xf32>
    %c0_1 = arith.constant 0 : index
    %c0_2 = arith.constant 0 : index
    %c0_3 = arith.constant 0 : index
    %1 = vector.load %arg3[%c0_1, %c0_2, %c0_3] : memref<2x4x128xf32, #tpu.memory_space<vmem>>, vector<1x4x128xf32>
    %2 = vector.shape_cast %1 : vector<1x4x128xf32> to vector<4x128xf32>
    %cst = arith.constant 1.000000e+00 : f32
    %3 = vector.broadcast %cst : f32 to vector<4x128xf32>
    %4 = arith.subf %3, %2 : vector<4x128xf32>
    %5 = arith.mulf %0, %4 : vector<4x128xf32>
    %c0_4 = arith.constant 0 : index
    %c0_5 = arith.constant 0 : index
    %c0_6 = arith.constant 0 : index
    %6 = vector.load %arg2[%c0_4, %c0_5, %c0_6] : memref<2x4x128xf32, #tpu.memory_space<vmem>>, vector<1x4x128xf32>
    %7 = vector.shape_cast %6 : vector<1x4x128xf32> to vector<4x128xf32>
    %8 = arith.mulf %7, %2 : vector<4x128xf32>
    %9 = arith.addf %5, %8 : vector<4x128xf32>
    %c1 = arith.constant 1 : index
    %c0_7 = arith.constant 0 : index
    %c0_8 = arith.constant 0 : index
    %10 = vector.load %arg3[%c1, %c0_7, %c0_8] : memref<2x4x128xf32, #tpu.memory_space<vmem>>, vector<1x4x128xf32>
    %11 = vector.shape_cast %10 : vector<1x4x128xf32> to vector<4x128xf32>
    %cst_9 = arith.constant 1.000000e+00 : f32
    %12 = vector.broadcast %cst_9 : f32 to vector<4x128xf32>
    %13 = arith.subf %12, %11 : vector<4x128xf32>
    %14 = arith.mulf %9, %13 : vector<4x128xf32>
    %c1_10 = arith.constant 1 : index
    %c0_11 = arith.constant 0 : index
    %c0_12 = arith.constant 0 : index
    %15 = vector.load %arg2[%c1_10, %c0_11, %c0_12] : memref<2x4x128xf32, #tpu.memory_space<vmem>>, vector<1x4x128xf32>
    %16 = vector.shape_cast %15 : vector<1x4x128xf32> to vector<4x128xf32>
    %17 = arith.mulf %16, %11 : vector<4x128xf32>
    %18 = arith.addf %14, %17 : vector<4x128xf32>
    %c0_13 = arith.constant 0 : index
    %c0_14 = arith.constant 0 : index
    %19 = vector.load %arg4[%c0_13, %c0_14] : memref<4x128xf32, #tpu.memory_space<vmem>>, vector<4x128xf32>
    tpu.vector_store %arg4[%c0_13, %c0_14], %18 {strides = array<i32>} : memref<4x128xf32, #tpu.memory_space<vmem>>, vector<4x128xf32>,
    return
  }
  func.func @transform_0(%arg0: i32) -> (i32, i32) {
    %c0_i32 = arith.constant 0 : i32
    %c0_i32_0 = arith.constant 0 : i32
    %c0_i32_1 = arith.constant 0 : i32
    return %c0_i32, %c0_i32_0 : i32, i32
  }
  func.func @transform_1(%arg0: i32) -> (i32, i32, i32) {
    %c0_i32 = arith.constant 0 : i32
    %c0_i32_0 = arith.constant 0 : i32
    %c0_i32_1 = arith.constant 0 : i32
    %c0_i32_2 = arith.constant 0 : i32
    return %c0_i32, %c0_i32_0, %c0_i32_1 : i32, i32, i32
  }
  func.func @transform_2(%arg0: i32) -> (i32, i32, i32) {
    %c0_i32 = arith.constant 0 : i32
    %c0_i32_0 = arith.constant 0 : i32
    %c0_i32_1 = arith.constant 0 : i32
    %c0_i32_2 = arith.constant 0 : i32
    return %c0_i32, %c0_i32_0, %c0_i32_1 : i32, i32, i32
  }
  func.func @transform_3(%arg0: i32) -> (i32, i32) {
    %c0_i32 = arith.constant 0 : i32
    %c0_i32_0 = arith.constant 0 : i32
    %c0_i32_1 = arith.constant 0 : i32
    return %c0_i32, %c0_i32_0 : i32, i32
  }
}

module attributes {stable_mosaic.version = 11 : i64} {
  func.func @_gemm_kernel(%arg0: i32, %arg1: memref<16x288xbf16, #tpu.memory_space<vmem>>, %arg2: memref<288x128xbf16, #tpu.memory_space<vmem>>, %arg3: memref<1x128xf32, #tpu.memory_space<vmem>>, %arg4: memref<16x128xf32, #tpu.memory_space<vmem>>) attributes {dimension_semantics = [#tpu.dimension_semantics<arbitrary>], iteration_bounds = array<i64: 1>, scalar_prefetch = 0 : i64, scratch_operands = 0 : i64, tpu.core_type = #tpu.core_type<tc>, window_params = [{pipeline_mode = #tpu.pipeline_mode<synchronous>, transform_indices = @transform_0, window_bounds = array<i64: 16, 288>}, {pipeline_mode = #tpu.pipeline_mode<synchronous>, transform_indices = @transform_1, window_bounds = array<i64: 288, 128>}, {pipeline_mode = #tpu.pipeline_mode<synchronous>, transform_indices = @transform_2, window_bounds = array<i64: 1, 128>}, {pipeline_mode = #tpu.pipeline_mode<synchronous>, transform_indices = @transform_3, window_bounds = array<i64: 16, 128>}]} {
    %c0 = arith.constant 0 : index
    %c0_0 = arith.constant 0 : index
    %0 = vector.load %arg1[%c0, %c0_0] : memref<16x288xbf16, #tpu.memory_space<vmem>>, vector<16x288xbf16>
    %c0_1 = arith.constant 0 : index
    %c0_2 = arith.constant 0 : index
    %1 = vector.load %arg2[%c0_1, %c0_2] : memref<288x128xbf16, #tpu.memory_space<vmem>>, vector<288x128xbf16>
    %cst = arith.constant dense<0.000000e+00> : vector<16x128xf32>
    %2 = tpu.matmul %0, %1, %cst {dimension_numbers = #tpu.dot_dimension_numbers<[1], [0], [0], [1], [0, 0, 1, 1], [], []>} : vector<16x288xbf16>, vector<288x128xbf16>, vector<16x128xf32> -> vector<16x128xf32>
    %c0_3 = arith.constant 0 : index
    %c0_4 = arith.constant 0 : index
    %3 = vector.load %arg3[%c0_3, %c0_4] : memref<1x128xf32, #tpu.memory_space<vmem>>, vector<1x128xf32>
    %4 = vector.broadcast %3 : vector<1x128xf32> to vector<16x128xf32>
    %5 = arith.addf %2, %4 : vector<16x128xf32>
    %cst_5 = arith.constant 0.000000e+00 : f32
    %6 = vector.broadcast %cst_5 : f32 to vector<16x128xf32>
    %7 = arith.cmpf oge, %5, %6 : vector<16x128xf32>
    %cst_6 = arith.constant 2.000000e-01 : f32
    %8 = vector.broadcast %cst_6 : f32 to vector<16x128xf32>
    %9 = arith.mulf %8, %5 : vector<16x128xf32>
    %10 = arith.select %7, %5, %9 : vector<16x128xi1>, vector<16x128xf32>
    %c0_7 = arith.constant 0 : index
    %c0_8 = arith.constant 0 : index
    %11 = vector.load %arg4[%c0_7, %c0_8] : memref<16x128xf32, #tpu.memory_space<vmem>>, vector<16x128xf32>
    tpu.vector_store %arg4[%c0_7, %c0_8], %10 {strides = array<i32>} : memref<16x128xf32, #tpu.memory_space<vmem>>, vector<16x128xf32>,
    return
  }
  func.func @transform_0(%arg0: i32) -> (i32, i32) {
    %c0_i32 = arith.constant 0 : i32
    %c0_i32_0 = arith.constant 0 : i32
    %c0_i32_1 = arith.constant 0 : i32
    return %c0_i32, %c0_i32_0 : i32, i32
  }
  func.func @transform_1(%arg0: i32) -> (i32, i32) {
    %c0_i32 = arith.constant 0 : i32
    %c0_i32_0 = arith.constant 0 : i32
    %c0_i32_1 = arith.constant 0 : i32
    return %c0_i32, %c0_i32_0 : i32, i32
  }
  func.func @transform_2(%arg0: i32) -> (i32, i32) {
    %c0_i32 = arith.constant 0 : i32
    %c0_i32_0 = arith.constant 0 : i32
    %c0_i32_1 = arith.constant 0 : i32
    return %c0_i32, %c0_i32_0 : i32, i32
  }
  func.func @transform_3(%arg0: i32) -> (i32, i32) {
    %c0_i32 = arith.constant 0 : i32
    %c0_i32_0 = arith.constant 0 : i32
    %c0_i32_1 = arith.constant 0 : i32
    return %c0_i32, %c0_i32_0 : i32, i32
  }
}

module attributes {stable_mosaic.version = 11 : i64} {
  func.func @_gemm_kernel(%arg0: i32, %arg1: memref<64x288xbf16, #tpu.memory_space<vmem>>, %arg2: memref<288x128xbf16, #tpu.memory_space<vmem>>, %arg3: memref<1x128xf32, #tpu.memory_space<vmem>>, %arg4: memref<64x128xf32, #tpu.memory_space<vmem>>) attributes {dimension_semantics = [#tpu.dimension_semantics<arbitrary>], iteration_bounds = array<i64: 1>, scalar_prefetch = 0 : i64, scratch_operands = 0 : i64, tpu.core_type = #tpu.core_type<tc>, window_params = [{pipeline_mode = #tpu.pipeline_mode<synchronous>, transform_indices = @transform_0, window_bounds = array<i64: 64, 288>}, {pipeline_mode = #tpu.pipeline_mode<synchronous>, transform_indices = @transform_1, window_bounds = array<i64: 288, 128>}, {pipeline_mode = #tpu.pipeline_mode<synchronous>, transform_indices = @transform_2, window_bounds = array<i64: 1, 128>}, {pipeline_mode = #tpu.pipeline_mode<synchronous>, transform_indices = @transform_3, window_bounds = array<i64: 64, 128>}]} {
    %c0 = arith.constant 0 : index
    %c0_0 = arith.constant 0 : index
    %0 = vector.load %arg1[%c0, %c0_0] : memref<64x288xbf16, #tpu.memory_space<vmem>>, vector<64x288xbf16>
    %c0_1 = arith.constant 0 : index
    %c0_2 = arith.constant 0 : index
    %1 = vector.load %arg2[%c0_1, %c0_2] : memref<288x128xbf16, #tpu.memory_space<vmem>>, vector<288x128xbf16>
    %cst = arith.constant dense<0.000000e+00> : vector<64x128xf32>
    %2 = tpu.matmul %0, %1, %cst {dimension_numbers = #tpu.dot_dimension_numbers<[1], [0], [0], [1], [0, 0, 1, 1], [], []>} : vector<64x288xbf16>, vector<288x128xbf16>, vector<64x128xf32> -> vector<64x128xf32>
    %c0_3 = arith.constant 0 : index
    %c0_4 = arith.constant 0 : index
    %3 = vector.load %arg3[%c0_3, %c0_4] : memref<1x128xf32, #tpu.memory_space<vmem>>, vector<1x128xf32>
    %4 = vector.broadcast %3 : vector<1x128xf32> to vector<64x128xf32>
    %5 = arith.addf %2, %4 : vector<64x128xf32>
    %cst_5 = arith.constant 0.000000e+00 : f32
    %6 = vector.broadcast %cst_5 : f32 to vector<64x128xf32>
    %7 = arith.cmpf oge, %5, %6 : vector<64x128xf32>
    %cst_6 = arith.constant 2.000000e-01 : f32
    %8 = vector.broadcast %cst_6 : f32 to vector<64x128xf32>
    %9 = arith.mulf %8, %5 : vector<64x128xf32>
    %10 = arith.select %7, %5, %9 : vector<64x128xi1>, vector<64x128xf32>
    %c0_7 = arith.constant 0 : index
    %c0_8 = arith.constant 0 : index
    %11 = vector.load %arg4[%c0_7, %c0_8] : memref<64x128xf32, #tpu.memory_space<vmem>>, vector<64x128xf32>
    tpu.vector_store %arg4[%c0_7, %c0_8], %10 {strides = array<i32>} : memref<64x128xf32, #tpu.memory_space<vmem>>, vector<64x128xf32>,
    return
  }
  func.func @transform_0(%arg0: i32) -> (i32, i32) {
    %c0_i32 = arith.constant 0 : i32
    %c0_i32_0 = arith.constant 0 : i32
    %c0_i32_1 = arith.constant 0 : i32
    return %c0_i32, %c0_i32_0 : i32, i32
  }
  func.func @transform_1(%arg0: i32) -> (i32, i32) {
    %c0_i32 = arith.constant 0 : i32
    %c0_i32_0 = arith.constant 0 : i32
    %c0_i32_1 = arith.constant 0 : i32
    return %c0_i32, %c0_i32_0 : i32, i32
  }
  func.func @transform_2(%arg0: i32) -> (i32, i32) {
    %c0_i32 = arith.constant 0 : i32
    %c0_i32_0 = arith.constant 0 : i32
    %c0_i32_1 = arith.constant 0 : i32
    return %c0_i32, %c0_i32_0 : i32, i32
  }
  func.func @transform_3(%arg0: i32) -> (i32, i32) {
    %c0_i32 = arith.constant 0 : i32
    %c0_i32_0 = arith.constant 0 : i32
    %c0_i32_1 = arith.constant 0 : i32
    return %c0_i32, %c0_i32_0 : i32, i32
  }
}

module attributes {stable_mosaic.version = 11 : i64} {
  func.func @_gemm2_kernel(%arg0: i32, %arg1: memref<256x144xbf16, #tpu.memory_space<vmem>>, %arg2: memref<144x128xbf16, #tpu.memory_space<vmem>>, %arg3: memref<1x128xf32, #tpu.memory_space<vmem>>, %arg4: memref<128x128xbf16, #tpu.memory_space<vmem>>, %arg5: memref<1x128xf32, #tpu.memory_space<vmem>>, %arg6: memref<256x128xf32, #tpu.memory_space<vmem>>) attributes {dimension_semantics = [#tpu.dimension_semantics<arbitrary>], iteration_bounds = array<i64: 1>, scalar_prefetch = 0 : i64, scratch_operands = 0 : i64, tpu.core_type = #tpu.core_type<tc>, window_params = [{pipeline_mode = #tpu.pipeline_mode<synchronous>, transform_indices = @transform_0, window_bounds = array<i64: 256, 144>}, {pipeline_mode = #tpu.pipeline_mode<synchronous>, transform_indices = @transform_1, window_bounds = array<i64: 144, 128>}, {pipeline_mode = #tpu.pipeline_mode<synchronous>, transform_indices = @transform_2, window_bounds = array<i64: 1, 128>}, {pipeline_mode = #tpu.pipeline_mode<synchronous>, transform_indices = @transform_3, window_bounds = array<i64: 128, 128>}, {pipeline_mode = #tpu.pipeline_mode<synchronous>, transform_indices = @transform_4, window_bounds = array<i64: 1, 128>}, {pipeline_mode = #tpu.pipeline_mode<synchronous>, transform_indices = @transform_5, window_bounds = array<i64: 256, 128>}]} {
    %c0 = arith.constant 0 : index
    %c0_0 = arith.constant 0 : index
    %0 = vector.load %arg1[%c0, %c0_0] : memref<256x144xbf16, #tpu.memory_space<vmem>>, vector<256x144xbf16>
    %c0_1 = arith.constant 0 : index
    %c0_2 = arith.constant 0 : index
    %1 = vector.load %arg2[%c0_1, %c0_2] : memref<144x128xbf16, #tpu.memory_space<vmem>>, vector<144x128xbf16>
    %cst = arith.constant dense<0.000000e+00> : vector<256x128xf32>
    %2 = tpu.matmul %0, %1, %cst {dimension_numbers = #tpu.dot_dimension_numbers<[1], [0], [0], [1], [0, 0, 1, 1], [], []>} : vector<256x144xbf16>, vector<144x128xbf16>, vector<256x128xf32> -> vector<256x128xf32>
    %c0_3 = arith.constant 0 : index
    %c0_4 = arith.constant 0 : index
    %3 = vector.load %arg3[%c0_3, %c0_4] : memref<1x128xf32, #tpu.memory_space<vmem>>, vector<1x128xf32>
    %4 = vector.broadcast %3 : vector<1x128xf32> to vector<256x128xf32>
    %5 = arith.addf %2, %4 : vector<256x128xf32>
    %cst_5 = arith.constant 0.000000e+00 : f32
    %6 = vector.broadcast %cst_5 : f32 to vector<256x128xf32>
    %7 = arith.cmpf oge, %5, %6 : vector<256x128xf32>
    %cst_6 = arith.constant 2.000000e-01 : f32
    %8 = vector.broadcast %cst_6 : f32 to vector<256x128xf32>
    %9 = arith.mulf %8, %5 : vector<256x128xf32>
    %10 = arith.select %7, %5, %9 : vector<256x128xi1>, vector<256x128xf32>
    %11 = arith.truncf %10 : vector<256x128xf32> to vector<256x128xbf16>
    %c0_7 = arith.constant 0 : index
    %c0_8 = arith.constant 0 : index
    %12 = vector.load %arg4[%c0_7, %c0_8] : memref<128x128xbf16, #tpu.memory_space<vmem>>, vector<128x128xbf16>
    %cst_9 = arith.constant dense<0.000000e+00> : vector<256x128xf32>
    %13 = tpu.matmul %11, %12, %cst_9 {dimension_numbers = #tpu.dot_dimension_numbers<[1], [0], [0], [1], [0, 0, 1, 1], [], []>} : vector<256x128xbf16>, vector<128x128xbf16>, vector<256x128xf32> -> vector<256x128xf32>
    %c0_10 = arith.constant 0 : index
    %c0_11 = arith.constant 0 : index
    %14 = vector.load %arg5[%c0_10, %c0_11] : memref<1x128xf32, #tpu.memory_space<vmem>>, vector<1x128xf32>
    %15 = vector.broadcast %14 : vector<1x128xf32> to vector<256x128xf32>
    %16 = arith.addf %13, %15 : vector<256x128xf32>
    %c0_12 = arith.constant 0 : index
    %c0_13 = arith.constant 0 : index
    %17 = vector.load %arg6[%c0_12, %c0_13] : memref<256x128xf32, #tpu.memory_space<vmem>>, vector<256x128xf32>
    tpu.vector_store %arg6[%c0_12, %c0_13], %16 {strides = array<i32>} : memref<256x128xf32, #tpu.memory_space<vmem>>, vector<256x128xf32>,
    return
  }
  func.func @transform_0(%arg0: i32) -> (i32, i32) {
    %c0_i32 = arith.constant 0 : i32
    %c0_i32_0 = arith.constant 0 : i32
    %c0_i32_1 = arith.constant 0 : i32
    return %c0_i32, %c0_i32_0 : i32, i32
  }
  func.func @transform_1(%arg0: i32) -> (i32, i32) {
    %c0_i32 = arith.constant 0 : i32
    %c0_i32_0 = arith.constant 0 : i32
    %c0_i32_1 = arith.constant 0 : i32
    return %c0_i32, %c0_i32_0 : i32, i32
  }
  func.func @transform_2(%arg0: i32) -> (i32, i32) {
    %c0_i32 = arith.constant 0 : i32
    %c0_i32_0 = arith.constant 0 : i32
    %c0_i32_1 = arith.constant 0 : i32
    return %c0_i32, %c0_i32_0 : i32, i32
  }
  func.func @transform_3(%arg0: i32) -> (i32, i32) {
    %c0_i32 = arith.constant 0 : i32
    %c0_i32_0 = arith.constant 0 : i32
    %c0_i32_1 = arith.constant 0 : i32
    return %c0_i32, %c0_i32_0 : i32, i32
  }
  func.func @transform_4(%arg0: i32) -> (i32, i32) {
    %c0_i32 = arith.constant 0 : i32
    %c0_i32_0 = arith.constant 0 : i32
    %c0_i32_1 = arith.constant 0 : i32
    return %c0_i32, %c0_i32_0 : i32, i32
  }
  func.func @transform_5(%arg0: i32) -> (i32, i32) {
    %c0_i32 = arith.constant 0 : i32
    %c0_i32_0 = arith.constant 0 : i32
    %c0_i32_1 = arith.constant 0 : i32
    return %c0_i32, %c0_i32_0 : i32, i32
  }
}

</mosaic_0001>

<bundles_post_ra>
// kernel: _forward_impl.7
= control target key start
LH: loop header
LB: loop body
LE: loop exit
PB: predicated region body
PF: predicated region fallthrough
CT: control target
= control target key end

     0   :  { %vm374_vm0 = vcmask 261120   ;;  %s2230_s1 = inlined_call_operand.vmem [shape: bf16[32,128], index: 1, kind: input, shape index: {}]   ;;  %s2231_s0 = inlined_call_operand.vmem [shape: bf16[768,32], index: 0, kind: input, shape index: {}]   ;;  %s2232_s2 = inlined_call_operand.vmem [shape: f32[1,128], index: 2, kind: input, shape index: {}]   ;;  %s2233_s3 = inlined_call_operand.vmem [shape: f32[768,128], index: 3, kind: output, shape index: {}]  }
   0x1   :  { %v1577_v0 = vld [vmem:[%s2230_s1] sm:$0xff]   ;;  %v1578_v1 = vld [vmem:[%s2230_s1 + $0x8] sm:$0xff]   ;;  %v1583_v6 = vld [vmem:[%s2231_s0 + $0x10] sm:$0xff]  }
   0x2   :  { %1473 = vmatprep.subr.bf16.mxu0 %v1577_v0  ;;  %1573 = vmatprep.subr.bf16.mxu1 %v1577_v0  ;;  %v1579_v2 = vld [vmem:[%s2231_s0] sm:$0xff]   ;;  %v1581_v4 = vld [vmem:[%s2231_s0 + $0x8] sm:$0xff]   ;;  %v1584_v7 = vld [vmem:[%s2231_s0 + $0xd0] sm:$0xff]  }
   0x3   :  { %1474 = vmatpush3.bf16.msra.mxu0 %v1577_v0  ;;  %1575 = vmatpush3.bf16.msra.mxu1 %v1577_v0  ;;  %v1580_v3 = vld [vmem:[%s2231_s0 + $0xc0] sm:$0xff]   ;;  %v1582_v5 = vld [vmem:[%s2231_s0 + $0xc8] sm:$0xff]   ;;  %v1585_v8 = vld [vmem:[%s2231_s0 + $0x18] sm:$0xff]  }
   0x4   :  { %1475 = vmatprep.subr.bf16.mxu0 %v1578_v1  ;;  %1574 = vmatprep.subr.bf16.mxu1 %v1578_v1  ;;  %v1586_v9 = vld [vmem:[%s2231_s0 + $0xd8] sm:$0xff]   ;;  %v1587_v10 = vld [vmem:[%s2231_s0 + $0x20] sm:$0xff]   ;;  %v1589_v12 = vld [vmem:[%s2231_s0 + $0x28] sm:$0xff]  }
   0x5   :  { %1477 = vmatprep.mubr.msk.bf16.mxu0 %vm374_vm0, %v1579_v2  ;;  %1525 = vmatprep.mubr.msk.bf16.mxu1 %vm374_vm0, %v1580_v3  ;;  %v1588_v11 = vld [vmem:[%s2231_s0 + $0xe0] sm:$0xff]   ;;  %v1590_v13 = vld [vmem:[%s2231_s0 + $0xe8] sm:$0xff]   ;;  %v1591_v14 = vld [vmem:[%s2231_s0 + $0x30] sm:$0xff]  }
   0x6   :  { %v1592_v15 = vld [vmem:[%s2231_s0 + $0xf0] sm:$0xff]   ;;  %v1593_v16 = vld [vmem:[%s2231_s0 + $0x38] sm:$0xff]   ;;  %v1595_v18 = vld [vmem:[%s2231_s0 + $0x40] sm:$0xff]  }
   0x7   :  { %1476 = vmatpush3.bf16.msra.mxu0 %v1578_v1  ;;  %1576 = vmatpush3.bf16.msra.mxu1 %v1578_v1  ;;  %v1594_v17 = vld [vmem:[%s2231_s0 + $0xf8] sm:$0xff]   ;;  %v1596_v19 = vld [vmem:[%s2231_s0 + $0x100] sm:$0xff]   ;;  %v1597_v20 = vld [vmem:[%s2231_s0 + $0x48] sm:$0xff]  }
   0x8   :  { %v1598_v21 = vld [vmem:[%s2231_s0 + $0x108] sm:$0xff]   ;;  %v1599_v22 = vld [vmem:[%s2231_s0 + $0x50] sm:$0xff]   ;;  %v1601_v24 = vld [vmem:[%s2231_s0 + $0x58] sm:$0xff]  }
   0x9   :  { %v1600_v23 = vld [vmem:[%s2231_s0 + $0x110] sm:$0xff]   ;;  %v1602_v25 = vld [vmem:[%s2231_s0 + $0x118] sm:$0xff]   ;;  %v1603_v26 = vld [vmem:[%s2231_s0 + $0x60] sm:$0xff]  }
   0xa   :  { %1478 = vmatmul.mubr.msk.bf16.vlgmr.msra.gmra.mrb[0].mxu0 %vm374_vm0, %v1581_v4  ;;  %1526 = vmatmul.mubr.msk.bf16.vlgmr.msra.gmra.mrb[0].mxu1 %vm374_vm0, %v1582_v5  ;;  %v1604_v27 = vld [vmem:[%s2231_s0 + $0x120] sm:$0xff]   ;;  %v1605_v28 = vld [vmem:[%s2231_s0 + $0x68] sm:$0xff]   ;;  %v1607_v30 = vld [vmem:[%s2231_s0 + $0x70] sm:$0xff]  }
   0xb   :  { %1481 = vmatprep.mubr.msk.bf16.mxu0 %vm374_vm0, %v1583_v6  ;;  %1529 = vmatprep.mubr.msk.bf16.mxu1 %vm374_vm0, %v1584_v7  ;;  %v1606_v29 = vld [vmem:[%s2231_s0 + $0x128] sm:$0xff]   ;;  %v1608_v31 = vld [vmem:[%s2231_s0 + $0x130] sm:$0xff]   ;;  %v1609_v32 = vld [vmem:[%s2231_s0 + $0x78] sm:$0xff]  }
   0xc   :  { %v1610_v33 = vld [vmem:[%s2231_s0 + $0x138] sm:$0xff]   ;;  %v1611_v34 = vld [vmem:[%s2231_s0 + $0x80] sm:$0xff]   ;;  %v1613_v36 = vld [vmem:[%s2231_s0 + $0x88] sm:$0xff]  }
   0xd   :  { %v1612_v35 = vld [vmem:[%s2231_s0 + $0x140] sm:$0xff]   ;;  %v1614_v37 = vld [vmem:[%s2231_s0 + $0x148] sm:$0xff]   ;;  %v1615_v38 = vld [vmem:[%s2231_s0 + $0x90] sm:$0xff]  }
   0xe   :  { %v1616_v39 = vld [vmem:[%s2231_s0 + $0x150] sm:$0xff]   ;;  %v1617_v40 = vld [vmem:[%s2231_s0 + $0x98] sm:$0xff]   ;;  %v1619_v42 = vld [vmem:[%s2231_s0 + $0xa0] sm:$0xff]  }
   0xf   :  { %v1618_v41 = vld [vmem:[%s2231_s0 + $0x158] sm:$0xff]   ;;  %v1620_v43 = vld [vmem:[%s2231_s0 + $0x160] sm:$0xff]   ;;  %v1621_v44 = vld [vmem:[%s2231_s0 + $0xa8] sm:$0xff]  }
  0x10   :  { %v1622_v45 = vld [vmem:[%s2231_s0 + $0x168] sm:$0xff]   ;;  %v1623_v46 = vld [vmem:[%s2231_s0 + $0xb0] sm:$0xff]   ;;  %v1625_v48 = vld [vmem:[%s2231_s0 + $0xb8] sm:$0xff]  }
  0x11   :  { %v1624_v47 = vld [vmem:[%s2231_s0 + $0x170] sm:$0xff]   ;;  %v1626_v49 = vld [vmem:[%s2231_s0 + $0x178] sm:$0xff]   ;;  %v1849_v50 = vld [vmem:[%s2232_s2] ss:$0 sm:$0xff] }
  0x12   :  { %1482 = vmatmul.mubr.msk.bf16.gmra.mrb[4].mxu0 %vm374_vm0, %v1585_v8  ;;  %1530 = vmatmul.mubr.msk.bf16.gmra.mrb[4].mxu1 %vm374_vm0, %v1586_v9 }
  0x13   :  { %1485 = vmatprep.mubr.msk.bf16.mxu0 %vm374_vm0, %v1587_v10  ;;  %1533 = vmatprep.mubr.msk.bf16.mxu1 %vm374_vm0, %v1588_v11 }
  0x1a   :  { %1486 = vmatmul.mubr.msk.bf16.gmra.mrb[8].mxu0 %vm374_vm0, %v1589_v12  ;;  %1534 = vmatmul.mubr.msk.bf16.gmra.mrb[8].mxu1 %vm374_vm0, %v1590_v13 }
  0x1b   :  { %1489 = vmatprep.mubr.msk.bf16.mxu0 %vm374_vm0, %v1591_v14  ;;  %1537 = vmatprep.mubr.msk.bf16.mxu1 %vm374_vm0, %v1592_v15 }
  0x22   :  { %1490 = vmatmul.mubr.msk.bf16.gmra.mrb[12].mxu0 %vm374_vm0, %v1593_v16  ;;  %1538 = vmatmul.mubr.msk.bf16.gmra.mrb[12].mxu1 %vm374_vm0, %v1594_v17 }
  0x23   :  { %1493 = vmatprep.mubr.msk.bf16.mxu0 %vm374_vm0, %v1595_v18  ;;  %1541 = vmatprep.mubr.msk.bf16.mxu1 %vm374_vm0, %v1596_v19 }
  0x2a   :  { %1494 = vmatmul.mubr.msk.bf16.gmra.mrb[16].mxu0 %vm374_vm0, %v1597_v20  ;;  %1542 = vmatmul.mubr.msk.bf16.gmra.mrb[16].mxu1 %vm374_vm0, %v1598_v21 }
  0x2b   :  { %1497 = vmatprep.mubr.msk.bf16.mxu0 %vm374_vm0, %v1599_v22  ;;  %1545 = vmatprep.mubr.msk.bf16.mxu1 %vm374_vm0, %v1600_v23 }
  0x32   :  { %1498 = vmatmul.mubr.msk.bf16.gmra.mrb[20].mxu0 %vm374_vm0, %v1601_v24  ;;  %1546 = vmatmul.mubr.msk.bf16.gmra.mrb[20].mxu1 %vm374_vm0, %v1602_v25 }
  0x33   :  { %1501 = vmatprep.mubr.msk.bf16.mxu0 %vm374_vm0, %v1603_v26  ;;  %1549 = vmatprep.mubr.msk.bf16.mxu1 %vm374_vm0, %v1604_v27 }
  0x3a   :  { %1502 = vmatmul.mubr.msk.bf16.gmra.mrb[24].mxu0 %vm374_vm0, %v1605_v28  ;;  %1550 = vmatmul.mubr.msk.bf16.gmra.mrb[24].mxu1 %vm374_vm0, %v1606_v29 }
  0x3b   :  { %1505 = vmatprep.mubr.msk.bf16.mxu0 %vm374_vm0, %v1607_v30  ;;  %1553 = vmatprep.mubr.msk.bf16.mxu1 %vm374_vm0, %v1608_v31 }
  0x42   :  { %1506 = vmatmul.mubr.msk.bf16.gmra.mrb[28].mxu0 %vm374_vm0, %v1609_v32  ;;  %1554 = vmatmul.mubr.msk.bf16.gmra.mrb[28].mxu1 %vm374_vm0, %v1610_v33 }
  0x43   :  { %1509 = vmatprep.mubr.msk.bf16.mxu0 %vm374_vm0, %v1611_v34  ;;  %1557 = vmatprep.mubr.msk.bf16.mxu1 %vm374_vm0, %v1612_v35 }
  0x4a   :  { %1510 = vmatmul.mubr.msk.bf16.gmra.mrb[32].mxu0 %vm374_vm0, %v1613_v36  ;;  %1558 = vmatmul.mubr.msk.bf16.gmra.mrb[32].mxu1 %vm374_vm0, %v1614_v37 }
  0x4b   :  { %1513 = vmatprep.mubr.msk.bf16.mxu0 %vm374_vm0, %v1615_v38  ;;  %1561 = vmatprep.mubr.msk.bf16.mxu1 %vm374_vm0, %v1616_v39 }
  0x52   :  { %1514 = vmatmul.mubr.msk.bf16.gmra.mrb[36].mxu0 %vm374_vm0, %v1617_v40  ;;  %1562 = vmatmul.mubr.msk.bf16.gmra.mrb[36].mxu1 %vm374_vm0, %v1618_v41 }
  0x53   :  { %1517 = vmatprep.mubr.msk.bf16.mxu0 %vm374_vm0, %v1619_v42  ;;  %1565 = vmatprep.mubr.msk.bf16.mxu1 %vm374_vm0, %v1620_v43 }
  0x5a   :  { %1518 = vmatmul.mubr.msk.bf16.gmra.mrb[40].mxu0 %vm374_vm0, %v1621_v44  ;;  %1566 = vmatmul.mubr.msk.bf16.gmra.mrb[40].mxu1 %vm374_vm0, %v1622_v45 }
  0x5b   :  { %1521 = vmatprep.mubr.msk.bf16.mxu0 %vm374_vm0, %v1623_v46  ;;  %1569 = vmatprep.mubr.msk.bf16.mxu1 %vm374_vm0, %v1624_v47 }
  0x62   :  { %1522 = vmatmul.mubr.msk.bf16.gmra.mrb[44].mxu0 %vm374_vm0, %v1625_v48  ;;  %1570 = vmatmul.mubr.msk.bf16.gmra.mrb[44].mxu1 %vm374_vm0, %v1626_v49 }
  0xdd   :  { %v1479_v51 = vpop.f32.mrb[0].mxu0  ;;  %v1527_v52 = vpop.f32.mrb[0].mxu1 }
  0xde   :  { %v562_v53 = vadd.f32 %v1479_v51, %v1849_v50  ;;  %v754_v54 = vadd.f32 %v1527_v52, %v1849_v50  ;;  %v553_v55 = vpop.f32.mrb[1].mxu0  ;;  %v745_v56 = vpop.f32.mrb[1].mxu1 }
  0xdf   :  { %v554_v57 = vadd.f32 %v1849_v50, %v553_v55  ;;  %v746_v58 = vadd.f32 %v1849_v50, %v745_v56  ;;  %v1480_v59 = vpop.f32.mrb[2].mxu0  ;;  %v1528_v60 = vpop.f32.mrb[2].mxu1 }
  0xe0   :  { %vm938_vm1 = vcmp.ge.f32.partialorder %v562_v53, 0.0  ;;  %v1034_v61 = vmul.f32 0.2, %v562_v53  ;;  %vm986_vm2 = vcmp.ge.f32.partialorder %v754_v54, 0.0  ;;  %v1082_v62 = vmul.f32 0.2, %v754_v54 }
  0xe1   :  { %vm936_vm3 = vcmp.ge.f32.partialorder %v554_v57, 0.0  ;;  %v1032_v63 = vmul.f32 0.2, %v554_v57  ;;  %vm984_vm4 = vcmp.ge.f32.partialorder %v746_v58, 0.0  ;;  %v1080_v0 = vmul.f32 0.2, %v746_v58 }
  0xe2   :  { %v1130_v1 = vsel %vm938_vm1, %v562_v53, %v1034_v61  ;;  %v1178_v2 = vsel %vm986_vm2, %v754_v54, %v1082_v62  ;;  %v565_v3 = vadd.f32 %v1480_v59, %v1849_v50  ;;  %v757_v4 = vadd.f32 %v1528_v60, %v1849_v50  ;;  %v556_v5 = vpop.f32.mrb[3].mxu0  ;;  %v748_v6 = vpop.f32.mrb[3].mxu1 }
  0xe3   :  { %1226 = vst [vmem:[%s2233_s3 + $0x10] sm:$0xff] %v1130_v1  ;;  %1274 = vst [vmem:[%s2233_s3 + $0x190] sm:$0xff] %v1178_v2  ;;  %v1128_v7 = vsel %vm936_vm3, %v554_v57, %v1032_v63  ;;  %v1176_v8 = vsel %vm984_vm4, %v746_v58, %v1080_v0  ;;  %v557_v9 = vadd.f32 %v1849_v50, %v556_v5 }
  0xe4   :  { %v749_v10 = vadd.f32 %v1849_v50, %v748_v6  ;;  %1224 = vst [vmem:[%s2233_s3] sm:$0xff] %v1128_v7  ;;  %1272 = vst [vmem:[%s2233_s3 + $0x180] sm:$0xff] %v1176_v8  ;;  %vm939_vm5 = vcmp.ge.f32.partialorder %v565_v3, 0.0  ;;  %v1035_v11 = vmul.f32 0.2, %v565_v3  ;;  %vm987_vm6 = vcmp.ge.f32.partialorder %v757_v4, 0.0 }
  0xe5   :  { %v1083_v12 = vmul.f32 0.2, %v757_v4  ;;  %vm937_vm7 = vcmp.ge.f32.partialorder %v557_v9, 0.0  ;;  %v1033_v13 = vmul.f32 0.2, %v557_v9  ;;  %v1483_v17 = vpop.f32.mrb[4].mxu0 }
  0xe6   :  { %vm985_vm8 = vcmp.ge.f32.partialorder %v749_v10, 0.0  ;;  %v1081_v14 = vmul.f32 0.2, %v749_v10  ;;  %v1131_v15 = vsel %vm939_vm5, %v565_v3, %v1035_v11  ;;  %v1531_v18 = vpop.f32.mrb[4].mxu1  ;;  %v578_v21 = vadd.f32 %v1483_v17, %v1849_v50  ;;  %v569_v23 = vpop.f32.mrb[5].mxu0 }
  0xe7   :  { %v1179_v16 = vsel %vm987_vm6, %v757_v4, %v1083_v12  ;;  %1227 = vst [vmem:[%s2233_s3 + $0x18] sm:$0xff] %v1131_v15  ;;  %v1129_v19 = vsel %vm937_vm7, %v557_v9, %v1033_v13  ;;  %v770_v22 = vadd.f32 %v1531_v18, %v1849_v50  ;;  %v761_v24 = vpop.f32.mrb[5].mxu1  ;;  %v570_v25 = vadd.f32 %v1849_v50, %v569_v23  ;;  %v1484_v27 = vpop.f32.mrb[6].mxu0 }
  0xe8   :  { %1275 = vst [vmem:[%s2233_s3 + $0x198] sm:$0xff] %v1179_v16  ;;  %v1177_v20 = vsel %vm985_vm8, %v749_v10, %v1081_v14  ;;  %1225 = vst [vmem:[%s2233_s3 + $0x8] sm:$0xff] %v1129_v19  ;;  %v762_v26 = vadd.f32 %v1849_v50, %v761_v24  ;;  %v1532_v28 = vpop.f32.mrb[6].mxu1  ;;  %vm942_vm9 = vcmp.ge.f32.partialorder %v578_v21, 0.0  ;;  %v1038_v29 = vmul.f32 0.2, %v578_v21 }
  0xe9   :  { %1273 = vst [vmem:[%s2233_s3 + $0x188] sm:$0xff] %v1177_v20  ;;  %vm990_vm10 = vcmp.ge.f32.partialorder %v770_v22, 0.0  ;;  %v1086_v30 = vmul.f32 0.2, %v770_v22  ;;  %vm940_vm11 = vcmp.ge.f32.partialorder %v570_v25, 0.0  ;;  %v581_v35 = vadd.f32 %v1484_v27, %v1849_v50  ;;  %v572_v37 = vpop.f32.mrb[7].mxu0 }
  0xea   :  { %v1036_v31 = vmul.f32 0.2, %v570_v25  ;;  %vm988_vm12 = vcmp.ge.f32.partialorder %v762_v26, 0.0  ;;  %v1084_v32 = vmul.f32 0.2, %v762_v26  ;;  %v1134_v33 = vsel %vm942_vm9, %v578_v21, %v1038_v29  ;;  %v764_v38 = vpop.f32.mrb[7].mxu1 }
  0xeb   :  { %v1182_v34 = vsel %vm990_vm10, %v770_v22, %v1086_v30  ;;  %v773_v36 = vadd.f32 %v1532_v28, %v1849_v50  ;;  %1230 = vst [vmem:[%s2233_s3 + $0x30] sm:$0xff] %v1134_v33  ;;  %v573_v41 = vadd.f32 %v1849_v50, %v572_v37  ;;  %v765_v42 = vadd.f32 %v1849_v50, %v764_v38 }
  0xec   :  { %1278 = vst [vmem:[%s2233_s3 + $0x1b0] sm:$0xff] %v1182_v34  ;;  %v1132_v39 = vsel %vm940_vm11, %v570_v25, %v1036_v31  ;;  %v1180_v40 = vsel %vm988_vm12, %v762_v26, %v1084_v32  ;;  %vm943_vm13 = vcmp.ge.f32.partialorder %v581_v35, 0.0  ;;  %v1039_v43 = vmul.f32 0.2, %v581_v35 }
  0xed   :  { %1228 = vst [vmem:[%s2233_s3 + $0x20] sm:$0xff] %v1132_v39  ;;  %1276 = vst [vmem:[%s2233_s3 + $0x1a0] sm:$0xff] %v1180_v40  ;;  %vm991_vm14 = vcmp.ge.f32.partialorder %v773_v36, 0.0  ;;  %v1087_v44 = vmul.f32 0.2, %v773_v36  ;;  %vm941_vm15 = vcmp.ge.f32.partialorder %v573_v41, 0.0 }
  0xee   :  { %v1037_v45 = vmul.f32 0.2, %v573_v41  ;;  %vm989_vm0 = vcmp.ge.f32.partialorder %v765_v42, 0.0  ;;  %v1085_v46 = vmul.f32 0.2, %v765_v42  ;;  %v1135_v47 = vsel %vm943_vm13, %v581_v35, %v1039_v43  ;;  %v1487_v49 = vpop.f32.mrb[8].mxu0 }
  0xef   :  { %v1183_v48 = vsel %vm991_vm14, %v773_v36, %v1087_v44  ;;  %v1535_v51 = vpop.f32.mrb[8].mxu1  ;;  %1231 = vst [vmem:[%s2233_s3 + $0x38] sm:$0xff] %v1135_v47  ;;  %v594_v54 = vadd.f32 %v1487_v49, %v1849_v50  ;;  %v585_v56 = vpop.f32.mrb[9].mxu0 }
  0xf0   :  { %1279 = vst [vmem:[%s2233_s3 + $0x1b8] sm:$0xff] %v1183_v48  ;;  %v1133_v52 = vsel %vm941_vm15, %v573_v41, %v1037_v45  ;;  %v1181_v53 = vsel %vm989_vm0, %v765_v42, %v1085_v46  ;;  %v786_v55 = vadd.f32 %v1535_v51, %v1849_v50  ;;  %v777_v57 = vpop.f32.mrb[9].mxu1  ;;  %v586_v58 = vadd.f32 %v1849_v50, %v585_v56  ;;  %v1488_v60 = vpop.f32.mrb[10].mxu0 }
  0xf1   :  { %1229 = vst [vmem:[%s2233_s3 + $0x28] sm:$0xff] %v1133_v52  ;;  %1277 = vst [vmem:[%s2233_s3 + $0x1a8] sm:$0xff] %v1181_v53  ;;  %v778_v59 = vadd.f32 %v1849_v50, %v777_v57  ;;  %v1536_v61 = vpop.f32.mrb[10].mxu1  ;;  %vm946_vm1 = vcmp.ge.f32.partialorder %v594_v54, 0.0  ;;  %v1042_v62 = vmul.f32 0.2, %v594_v54  ;;  %v597_v4 = vadd.f32 %v1488_v60, %v1849_v50 }
  0xf2   :  { %vm994_vm2 = vcmp.ge.f32.partialorder %v786_v55, 0.0  ;;  %v1090_v63 = vmul.f32 0.2, %v786_v55  ;;  %vm944_vm3 = vcmp.ge.f32.partialorder %v586_v58, 0.0  ;;  %v1040_v0 = vmul.f32 0.2, %v586_v58 }
  0xf3   :  { %vm992_vm4 = vcmp.ge.f32.partialorder %v778_v59, 0.0  ;;  %v1088_v1 = vmul.f32 0.2, %v778_v59  ;;  %v1138_v2 = vsel %vm946_vm1, %v594_v54, %v1042_v62  ;;  %v789_v5 = vadd.f32 %v1536_v61, %v1849_v50  ;;  %v588_v6 = vpop.f32.mrb[11].mxu0  ;;  %v780_v7 = vpop.f32.mrb[11].mxu1 }
  0xf4   :  { %v1186_v3 = vsel %vm994_vm2, %v786_v55, %v1090_v63  ;;  %1234 = vst [vmem:[%s2233_s3 + $0x50] sm:$0xff] %v1138_v2  ;;  %v1136_v8 = vsel %vm944_vm3, %v586_v58, %v1040_v0  ;;  %v589_v10 = vadd.f32 %v1849_v50, %v588_v6  ;;  %v781_v11 = vadd.f32 %v1849_v50, %v780_v7 }
  0xf5   :  { %1282 = vst [vmem:[%s2233_s3 + $0x1d0] sm:$0xff] %v1186_v3  ;;  %v1184_v9 = vsel %vm992_vm4, %v778_v59, %v1088_v1  ;;  %v1491_v12 = vpop.f32.mrb[12].mxu0  ;;  %v1539_v13 = vpop.f32.mrb[12].mxu1  ;;  %1232 = vst [vmem:[%s2233_s3 + $0x40] sm:$0xff] %v1136_v8  ;;  %vm947_vm5 = vcmp.ge.f32.partialorder %v597_v4, 0.0  ;;  %vm995_vm6 = vcmp.ge.f32.partialorder %v789_v5, 0.0 }
  0xf6   :  { %1280 = vst [vmem:[%s2233_s3 + $0x1c0] sm:$0xff] %v1184_v9  ;;  %v1043_v14 = vmul.f32 0.2, %v597_v4  ;;  %v1091_v15 = vmul.f32 0.2, %v789_v5  ;;  %vm945_vm7 = vcmp.ge.f32.partialorder %v589_v10, 0.0  ;;  %v610_v20 = vadd.f32 %v1491_v12, %v1849_v50 }
  0xf7   :  { %v1041_v16 = vmul.f32 0.2, %v589_v10  ;;  %vm993_vm8 = vcmp.ge.f32.partialorder %v781_v11, 0.0  ;;  %v1089_v17 = vmul.f32 0.2, %v781_v11  ;;  %v802_v21 = vadd.f32 %v1539_v13, %v1849_v50  ;;  %v601_v22 = vpop.f32.mrb[13].mxu0 }
  0xf8   :  { %v1139_v18 = vsel %vm947_vm5, %v597_v4, %v1043_v14  ;;  %v1187_v19 = vsel %vm995_vm6, %v789_v5, %v1091_v15  ;;  %v793_v23 = vpop.f32.mrb[13].mxu1  ;;  %v602_v26 = vadd.f32 %v1849_v50, %v601_v22  ;;  %v1492_v28 = vpop.f32.mrb[14].mxu0  ;;  %vm950_vm9 = vcmp.ge.f32.partialorder %v610_v20, 0.0 }
  0xf9   :  { %1235 = vst [vmem:[%s2233_s3 + $0x58] sm:$0xff] %v1139_v18  ;;  %1283 = vst [vmem:[%s2233_s3 + $0x1d8] sm:$0xff] %v1187_v19  ;;  %v1137_v24 = vsel %vm945_vm7, %v589_v10, %v1041_v16  ;;  %v1185_v25 = vsel %vm993_vm8, %v781_v11, %v1089_v17  ;;  %v794_v27 = vadd.f32 %v1849_v50, %v793_v23  ;;  %v1540_v29 = vpop.f32.mrb[14].mxu1  ;;  %v1046_v30 = vmul.f32 0.2, %v610_v20  ;;  %v604_v38 = vpop.f32.mrb[15].mxu0 }
  0xfa   :  { %1233 = vst [vmem:[%s2233_s3 + $0x48] sm:$0xff] %v1137_v24  ;;  %1281 = vst [vmem:[%s2233_s3 + $0x1c8] sm:$0xff] %v1185_v25  ;;  %vm998_vm10 = vcmp.ge.f32.partialorder %v802_v21, 0.0  ;;  %v1094_v31 = vmul.f32 0.2, %v802_v21  ;;  %vm948_vm11 = vcmp.ge.f32.partialorder %v602_v26, 0.0  ;;  %v613_v36 = vadd.f32 %v1492_v28, %v1849_v50 }
  0xfb   :  { %v1044_v32 = vmul.f32 0.2, %v602_v26  ;;  %vm996_vm12 = vcmp.ge.f32.partialorder %v794_v27, 0.0  ;;  %v1092_v33 = vmul.f32 0.2, %v794_v27  ;;  %v1142_v34 = vsel %vm950_vm9, %v610_v20, %v1046_v30  ;;  %v796_v39 = vpop.f32.mrb[15].mxu1 }
  0xfc   :  { %v1190_v35 = vsel %vm998_vm10, %v802_v21, %v1094_v31  ;;  %v805_v37 = vadd.f32 %v1540_v29, %v1849_v50  ;;  %1238 = vst [vmem:[%s2233_s3 + $0x70] sm:$0xff] %v1142_v34  ;;  %v605_v42 = vadd.f32 %v1849_v50, %v604_v38  ;;  %v797_v43 = vadd.f32 %v1849_v50, %v796_v39 }
  0xfd   :  { %1286 = vst [vmem:[%s2233_s3 + $0x1f0] sm:$0xff] %v1190_v35  ;;  %v1140_v40 = vsel %vm948_vm11, %v602_v26, %v1044_v32  ;;  %v1188_v41 = vsel %vm996_vm12, %v794_v27, %v1092_v33  ;;  %v1495_v44 = vpop.f32.mrb[16].mxu0  ;;  %v1543_v45 = vpop.f32.mrb[16].mxu1  ;;  %vm951_vm13 = vcmp.ge.f32.partialorder %v613_v36, 0.0  ;;  %v1047_v46 = vmul.f32 0.2, %v613_v36 }
  0xfe   :  { %1236 = vst [vmem:[%s2233_s3 + $0x60] sm:$0xff] %v1140_v40  ;;  %1284 = vst [vmem:[%s2233_s3 + $0x1e0] sm:$0xff] %v1188_v41  ;;  %vm999_vm14 = vcmp.ge.f32.partialorder %v805_v37, 0.0  ;;  %v1095_v47 = vmul.f32 0.2, %v805_v37  ;;  %vm949_vm15 = vcmp.ge.f32.partialorder %v605_v42, 0.0  ;;  %v626_v53 = vadd.f32 %v1495_v44, %v1849_v50 }
  0xff   :  { %v1045_v48 = vmul.f32 0.2, %v605_v42  ;;  %vm997_vm0 = vcmp.ge.f32.partialorder %v797_v43, 0.0  ;;  %v1093_v49 = vmul.f32 0.2, %v797_v43  ;;  %v1143_v51 = vsel %vm951_vm13, %v613_v36, %v1047_v46  ;;  %v617_v55 = vpop.f32.mrb[17].mxu0 }
 0x100   :  { %v1191_v52 = vsel %vm999_vm14, %v805_v37, %v1095_v47  ;;  %v818_v54 = vadd.f32 %v1543_v45, %v1849_v50  ;;  %v809_v56 = vpop.f32.mrb[17].mxu1  ;;  %1239 = vst [vmem:[%s2233_s3 + $0x78] sm:$0xff] %v1143_v51  ;;  %v618_v59 = vadd.f32 %v1849_v50, %v617_v55  ;;  %v1496_v61 = vpop.f32.mrb[18].mxu0  ;;  %vm954_vm1 = vcmp.ge.f32.partialorder %v626_v53, 0.0 }
 0x101   :  { %1287 = vst [vmem:[%s2233_s3 + $0x1f8] sm:$0xff] %v1191_v52  ;;  %v1141_v57 = vsel %vm949_vm15, %v605_v42, %v1045_v48  ;;  %v1189_v58 = vsel %vm997_vm0, %v797_v43, %v1093_v49  ;;  %v810_v60 = vadd.f32 %v1849_v50, %v809_v56  ;;  %v1544_v62 = vpop.f32.mrb[18].mxu1  ;;  %v1050_v63 = vmul.f32 0.2, %v626_v53  ;;  %v620_v7 = vpop.f32.mrb[19].mxu0 }
 0x102   :  { %1237 = vst [vmem:[%s2233_s3 + $0x68] sm:$0xff] %v1141_v57  ;;  %1285 = vst [vmem:[%s2233_s3 + $0x1e8] sm:$0xff] %v1189_v58  ;;  %vm1002_vm2 = vcmp.ge.f32.partialorder %v818_v54, 0.0  ;;  %v1098_v0 = vmul.f32 0.2, %v818_v54  ;;  %vm952_vm3 = vcmp.ge.f32.partialorder %v618_v59, 0.0  ;;  %v629_v5 = vadd.f32 %v1496_v61, %v1849_v50 }
 0x103   :  { %v1048_v1 = vmul.f32 0.2, %v618_v59  ;;  %vm1000_vm4 = vcmp.ge.f32.partialorder %v810_v60, 0.0  ;;  %v1096_v2 = vmul.f32 0.2, %v810_v60  ;;  %v1146_v3 = vsel %vm954_vm1, %v626_v53, %v1050_v63  ;;  %v812_v8 = vpop.f32.mrb[19].mxu1 }
 0x104   :  { %v1194_v4 = vsel %vm1002_vm2, %v818_v54, %v1098_v0  ;;  %v821_v6 = vadd.f32 %v1544_v62, %v1849_v50  ;;  %1242 = vst [vmem:[%s2233_s3 + $0x90] sm:$0xff] %v1146_v3  ;;  %v621_v11 = vadd.f32 %v1849_v50, %v620_v7  ;;  %v813_v12 = vadd.f32 %v1849_v50, %v812_v8 }
 0x105   :  { %1290 = vst [vmem:[%s2233_s3 + $0x210] sm:$0xff] %v1194_v4  ;;  %v1144_v9 = vsel %vm952_vm3, %v618_v59, %v1048_v1  ;;  %v1192_v10 = vsel %vm1000_vm4, %v810_v60, %v1096_v2  ;;  %v1499_v13 = vpop.f32.mrb[20].mxu0  ;;  %v1547_v14 = vpop.f32.mrb[20].mxu1  ;;  %vm955_vm5 = vcmp.ge.f32.partialorder %v629_v5, 0.0  ;;  %v1051_v15 = vmul.f32 0.2, %v629_v5 }
 0x106   :  { %1240 = vst [vmem:[%s2233_s3 + $0x80] sm:$0xff] %v1144_v9  ;;  %1288 = vst [vmem:[%s2233_s3 + $0x200] sm:$0xff] %v1192_v10  ;;  %vm1003_vm6 = vcmp.ge.f32.partialorder %v821_v6, 0.0  ;;  %v1099_v16 = vmul.f32 0.2, %v821_v6  ;;  %vm953_vm7 = vcmp.ge.f32.partialorder %v621_v11, 0.0  ;;  %v642_v21 = vadd.f32 %v1499_v13, %v1849_v50 }
 0x107   :  { %v1049_v17 = vmul.f32 0.2, %v621_v11  ;;  %vm1001_vm8 = vcmp.ge.f32.partialorder %v813_v12, 0.0  ;;  %v1097_v18 = vmul.f32 0.2, %v813_v12  ;;  %v1147_v19 = vsel %vm955_vm5, %v629_v5, %v1051_v15  ;;  %v633_v23 = vpop.f32.mrb[21].mxu0 }
 0x108   :  { %v1195_v20 = vsel %vm1003_vm6, %v821_v6, %v1099_v16  ;;  %v834_v22 = vadd.f32 %v1547_v14, %v1849_v50  ;;  %v825_v24 = vpop.f32.mrb[21].mxu1  ;;  %1243 = vst [vmem:[%s2233_s3 + $0x98] sm:$0xff] %v1147_v19  ;;  %v634_v27 = vadd.f32 %v1849_v50, %v633_v23  ;;  %v1500_v29 = vpop.f32.mrb[22].mxu0  ;;  %vm958_vm9 = vcmp.ge.f32.partialorder %v642_v21, 0.0 }
 0x109   :  { %1291 = vst [vmem:[%s2233_s3 + $0x218] sm:$0xff] %v1195_v20  ;;  %v1145_v25 = vsel %vm953_vm7, %v621_v11, %v1049_v17  ;;  %v1193_v26 = vsel %vm1001_vm8, %v813_v12, %v1097_v18  ;;  %v826_v28 = vadd.f32 %v1849_v50, %v825_v24  ;;  %v1548_v30 = vpop.f32.mrb[22].mxu1  ;;  %v1054_v31 = vmul.f32 0.2, %v642_v21  ;;  %v636_v39 = vpop.f32.mrb[23].mxu0 }
 0x10a   :  { %1241 = vst [vmem:[%s2233_s3 + $0x88] sm:$0xff] %v1145_v25  ;;  %1289 = vst [vmem:[%s2233_s3 + $0x208] sm:$0xff] %v1193_v26  ;;  %vm1006_vm10 = vcmp.ge.f32.partialorder %v834_v22, 0.0  ;;  %v1102_v32 = vmul.f32 0.2, %v834_v22  ;;  %vm956_vm11 = vcmp.ge.f32.partialorder %v634_v27, 0.0  ;;  %v645_v37 = vadd.f32 %v1500_v29, %v1849_v50 }
 0x10b   :  { %v1052_v33 = vmul.f32 0.2, %v634_v27  ;;  %vm1004_vm12 = vcmp.ge.f32.partialorder %v826_v28, 0.0  ;;  %v1100_v34 = vmul.f32 0.2, %v826_v28  ;;  %v1150_v35 = vsel %vm958_vm9, %v642_v21, %v1054_v31  ;;  %v828_v40 = vpop.f32.mrb[23].mxu1 }
 0x10c   :  { %v1198_v36 = vsel %vm1006_vm10, %v834_v22, %v1102_v32  ;;  %v837_v38 = vadd.f32 %v1548_v30, %v1849_v50  ;;  %1246 = vst [vmem:[%s2233_s3 + $0xb0] sm:$0xff] %v1150_v35  ;;  %v637_v43 = vadd.f32 %v1849_v50, %v636_v39  ;;  %v829_v44 = vadd.f32 %v1849_v50, %v828_v40 }
 0x10d   :  { %1294 = vst [vmem:[%s2233_s3 + $0x230] sm:$0xff] %v1198_v36  ;;  %v1148_v41 = vsel %vm956_vm11, %v634_v27, %v1052_v33  ;;  %v1196_v42 = vsel %vm1004_vm12, %v826_v28, %v1100_v34  ;;  %v1503_v45 = vpop.f32.mrb[24].mxu0  ;;  %v1551_v46 = vpop.f32.mrb[24].mxu1  ;;  %vm959_vm13 = vcmp.ge.f32.partialorder %v645_v37, 0.0  ;;  %v1055_v47 = vmul.f32 0.2, %v645_v37 }
 0x10e   :  { %1244 = vst [vmem:[%s2233_s3 + $0xa0] sm:$0xff] %v1148_v41  ;;  %1292 = vst [vmem:[%s2233_s3 + $0x220] sm:$0xff] %v1196_v42  ;;  %vm1007_vm14 = vcmp.ge.f32.partialorder %v837_v38, 0.0  ;;  %v1103_v48 = vmul.f32 0.2, %v837_v38  ;;  %vm957_vm15 = vcmp.ge.f32.partialorder %v637_v43, 0.0  ;;  %v658_v54 = vadd.f32 %v1503_v45, %v1849_v50 }
 0x10f   :  { %v1053_v49 = vmul.f32 0.2, %v637_v43  ;;  %vm1005_vm0 = vcmp.ge.f32.partialorder %v829_v44, 0.0  ;;  %v1101_v51 = vmul.f32 0.2, %v829_v44  ;;  %v1151_v52 = vsel %vm959_vm13, %v645_v37, %v1055_v47  ;;  %v649_v56 = vpop.f32.mrb[25].mxu0 }
 0x110   :  { %v1199_v53 = vsel %vm1007_vm14, %v837_v38, %v1103_v48  ;;  %v850_v55 = vadd.f32 %v1551_v46, %v1849_v50  ;;  %v841_v57 = vpop.f32.mrb[25].mxu1  ;;  %1247 = vst [vmem:[%s2233_s3 + $0xb8] sm:$0xff] %v1151_v52  ;;  %v650_v60 = vadd.f32 %v1849_v50, %v649_v56  ;;  %v1504_v62 = vpop.f32.mrb[26].mxu0  ;;  %vm962_vm1 = vcmp.ge.f32.partialorder %v658_v54, 0.0 }
 0x111   :  { %1295 = vst [vmem:[%s2233_s3 + $0x238] sm:$0xff] %v1199_v53  ;;  %v1149_v58 = vsel %vm957_vm15, %v637_v43, %v1053_v49  ;;  %v1197_v59 = vsel %vm1005_vm0, %v829_v44, %v1101_v51  ;;  %v842_v61 = vadd.f32 %v1849_v50, %v841_v57  ;;  %v1552_v63 = vpop.f32.mrb[26].mxu1  ;;  %v1058_v0 = vmul.f32 0.2, %v658_v54  ;;  %v652_v8 = vpop.f32.mrb[27].mxu0 }
 0x112   :  { %1245 = vst [vmem:[%s2233_s3 + $0xa8] sm:$0xff] %v1149_v58  ;;  %1293 = vst [vmem:[%s2233_s3 + $0x228] sm:$0xff] %v1197_v59  ;;  %vm1010_vm2 = vcmp.ge.f32.partialorder %v850_v55, 0.0  ;;  %v1106_v1 = vmul.f32 0.2, %v850_v55  ;;  %vm960_vm3 = vcmp.ge.f32.partialorder %v650_v60, 0.0  ;;  %v661_v6 = vadd.f32 %v1504_v62, %v1849_v50 }
 0x113   :  { %v1056_v2 = vmul.f32 0.2, %v650_v60  ;;  %vm1008_vm4 = vcmp.ge.f32.partialorder %v842_v61, 0.0  ;;  %v1104_v3 = vmul.f32 0.2, %v842_v61  ;;  %v1154_v4 = vsel %vm962_vm1, %v658_v54, %v1058_v0  ;;  %v844_v9 = vpop.f32.mrb[27].mxu1 }
 0x114   :  { %v1202_v5 = vsel %vm1010_vm2, %v850_v55, %v1106_v1  ;;  %v853_v7 = vadd.f32 %v1552_v63, %v1849_v50  ;;  %1250 = vst [vmem:[%s2233_s3 + $0xd0] sm:$0xff] %v1154_v4  ;;  %v653_v12 = vadd.f32 %v1849_v50, %v652_v8  ;;  %v845_v13 = vadd.f32 %v1849_v50, %v844_v9 }
 0x115   :  { %1298 = vst [vmem:[%s2233_s3 + $0x250] sm:$0xff] %v1202_v5  ;;  %v1152_v10 = vsel %vm960_vm3, %v650_v60, %v1056_v2  ;;  %v1200_v11 = vsel %vm1008_vm4, %v842_v61, %v1104_v3  ;;  %v1507_v14 = vpop.f32.mrb[28].mxu0  ;;  %v1555_v15 = vpop.f32.mrb[28].mxu1  ;;  %vm963_vm5 = vcmp.ge.f32.partialorder %v661_v6, 0.0  ;;  %v1059_v16 = vmul.f32 0.2, %v661_v6 }
 0x116   :  { %1248 = vst [vmem:[%s2233_s3 + $0xc0] sm:$0xff] %v1152_v10  ;;  %1296 = vst [vmem:[%s2233_s3 + $0x240] sm:$0xff] %v1200_v11  ;;  %vm1011_vm6 = vcmp.ge.f32.partialorder %v853_v7, 0.0  ;;  %v1107_v17 = vmul.f32 0.2, %v853_v7  ;;  %vm961_vm7 = vcmp.ge.f32.partialorder %v653_v12, 0.0  ;;  %v674_v22 = vadd.f32 %v1507_v14, %v1849_v50 }
 0x117   :  { %v1057_v18 = vmul.f32 0.2, %v653_v12  ;;  %vm1009_vm8 = vcmp.ge.f32.partialorder %v845_v13, 0.0  ;;  %v1105_v19 = vmul.f32 0.2, %v845_v13  ;;  %v1155_v20 = vsel %vm963_vm5, %v661_v6, %v1059_v16  ;;  %v665_v24 = vpop.f32.mrb[29].mxu0 }
 0x118   :  { %v1203_v21 = vsel %vm1011_vm6, %v853_v7, %v1107_v17  ;;  %v866_v23 = vadd.f32 %v1555_v15, %v1849_v50  ;;  %v857_v25 = vpop.f32.mrb[29].mxu1  ;;  %1251 = vst [vmem:[%s2233_s3 + $0xd8] sm:$0xff] %v1155_v20  ;;  %v666_v28 = vadd.f32 %v1849_v50, %v665_v24  ;;  %v1508_v30 = vpop.f32.mrb[30].mxu0  ;;  %vm966_vm9 = vcmp.ge.f32.partialorder %v674_v22, 0.0 }
 0x119   :  { %1299 = vst [vmem:[%s2233_s3 + $0x258] sm:$0xff] %v1203_v21  ;;  %v1153_v26 = vsel %vm961_vm7, %v653_v12, %v1057_v18  ;;  %v1201_v27 = vsel %vm1009_vm8, %v845_v13, %v1105_v19  ;;  %v858_v29 = vadd.f32 %v1849_v50, %v857_v25  ;;  %v1556_v31 = vpop.f32.mrb[30].mxu1  ;;  %v1062_v32 = vmul.f32 0.2, %v674_v22  ;;  %v668_v40 = vpop.f32.mrb[31].mxu0 }
 0x11a   :  { %1249 = vst [vmem:[%s2233_s3 + $0xc8] sm:$0xff] %v1153_v26  ;;  %1297 = vst [vmem:[%s2233_s3 + $0x248] sm:$0xff] %v1201_v27  ;;  %vm1014_vm10 = vcmp.ge.f32.partialorder %v866_v23, 0.0  ;;  %v1110_v33 = vmul.f32 0.2, %v866_v23  ;;  %vm964_vm11 = vcmp.ge.f32.partialorder %v666_v28, 0.0  ;;  %v677_v38 = vadd.f32 %v1508_v30, %v1849_v50 }
 0x11b   :  { %v1060_v34 = vmul.f32 0.2, %v666_v28  ;;  %vm1012_vm12 = vcmp.ge.f32.partialorder %v858_v29, 0.0  ;;  %v1108_v35 = vmul.f32 0.2, %v858_v29  ;;  %v1158_v36 = vsel %vm966_vm9, %v674_v22, %v1062_v32  ;;  %v860_v41 = vpop.f32.mrb[31].mxu1 }
 0x11c   :  { %v1206_v37 = vsel %vm1014_vm10, %v866_v23, %v1110_v33  ;;  %v869_v39 = vadd.f32 %v1556_v31, %v1849_v50  ;;  %1254 = vst [vmem:[%s2233_s3 + $0xf0] sm:$0xff] %v1158_v36  ;;  %v669_v44 = vadd.f32 %v1849_v50, %v668_v40  ;;  %v861_v45 = vadd.f32 %v1849_v50, %v860_v41 }
 0x11d   :  { %1302 = vst [vmem:[%s2233_s3 + $0x270] sm:$0xff] %v1206_v37  ;;  %v1156_v42 = vsel %vm964_vm11, %v666_v28, %v1060_v34  ;;  %v1204_v43 = vsel %vm1012_vm12, %v858_v29, %v1108_v35  ;;  %v1511_v46 = vpop.f32.mrb[32].mxu0  ;;  %v1559_v47 = vpop.f32.mrb[32].mxu1  ;;  %vm967_vm13 = vcmp.ge.f32.partialorder %v677_v38, 0.0  ;;  %v1063_v48 = vmul.f32 0.2, %v677_v38 }
 0x11e   :  { %1252 = vst [vmem:[%s2233_s3 + $0xe0] sm:$0xff] %v1156_v42  ;;  %1300 = vst [vmem:[%s2233_s3 + $0x260] sm:$0xff] %v1204_v43  ;;  %vm1015_vm14 = vcmp.ge.f32.partialorder %v869_v39, 0.0  ;;  %v1111_v49 = vmul.f32 0.2, %v869_v39  ;;  %vm965_vm15 = vcmp.ge.f32.partialorder %v669_v44, 0.0  ;;  %v690_v55 = vadd.f32 %v1511_v46, %v1849_v50 }
 0x11f   :  { %v1061_v51 = vmul.f32 0.2, %v669_v44  ;;  %vm1013_vm0 = vcmp.ge.f32.partialorder %v861_v45, 0.0  ;;  %v1109_v52 = vmul.f32 0.2, %v861_v45  ;;  %v1159_v53 = vsel %vm967_vm13, %v677_v38, %v1063_v48  ;;  %v681_v57 = vpop.f32.mrb[33].mxu0 }
 0x120   :  { %v1207_v54 = vsel %vm1015_vm14, %v869_v39, %v1111_v49  ;;  %v882_v56 = vadd.f32 %v1559_v47, %v1849_v50  ;;  %v873_v58 = vpop.f32.mrb[33].mxu1  ;;  %1255 = vst [vmem:[%s2233_s3 + $0xf8] sm:$0xff] %v1159_v53  ;;  %v682_v61 = vadd.f32 %v1849_v50, %v681_v57  ;;  %v1512_v63 = vpop.f32.mrb[34].mxu0  ;;  %vm970_vm1 = vcmp.ge.f32.partialorder %v690_v55, 0.0 }
 0x121   :  { %1303 = vst [vmem:[%s2233_s3 + $0x278] sm:$0xff] %v1207_v54  ;;  %v1157_v59 = vsel %vm965_vm15, %v669_v44, %v1061_v51  ;;  %v1205_v60 = vsel %vm1013_vm0, %v861_v45, %v1109_v52  ;;  %v874_v62 = vadd.f32 %v1849_v50, %v873_v58  ;;  %v1560_v0 = vpop.f32.mrb[34].mxu1  ;;  %v1066_v1 = vmul.f32 0.2, %v690_v55  ;;  %v684_v9 = vpop.f32.mrb[35].mxu0 }
 0x122   :  { %1253 = vst [vmem:[%s2233_s3 + $0xe8] sm:$0xff] %v1157_v59  ;;  %1301 = vst [vmem:[%s2233_s3 + $0x268] sm:$0xff] %v1205_v60  ;;  %vm1018_vm2 = vcmp.ge.f32.partialorder %v882_v56, 0.0  ;;  %v1114_v2 = vmul.f32 0.2, %v882_v56  ;;  %vm968_vm3 = vcmp.ge.f32.partialorder %v682_v61, 0.0  ;;  %v693_v7 = vadd.f32 %v1512_v63, %v1849_v50 }
 0x123   :  { %v1064_v3 = vmul.f32 0.2, %v682_v61  ;;  %vm1016_vm4 = vcmp.ge.f32.partialorder %v874_v62, 0.0  ;;  %v1112_v4 = vmul.f32 0.2, %v874_v62  ;;  %v1162_v5 = vsel %vm970_vm1, %v690_v55, %v1066_v1  ;;  %v876_v10 = vpop.f32.mrb[35].mxu1 }
 0x124   :  { %v1210_v6 = vsel %vm1018_vm2, %v882_v56, %v1114_v2  ;;  %v885_v8 = vadd.f32 %v1560_v0, %v1849_v50  ;;  %1258 = vst [vmem:[%s2233_s3 + $0x110] sm:$0xff] %v1162_v5  ;;  %v685_v13 = vadd.f32 %v1849_v50, %v684_v9  ;;  %v877_v14 = vadd.f32 %v1849_v50, %v876_v10 }
 0x125   :  { %1306 = vst [vmem:[%s2233_s3 + $0x290] sm:$0xff] %v1210_v6  ;;  %v1160_v11 = vsel %vm968_vm3, %v682_v61, %v1064_v3  ;;  %v1208_v12 = vsel %vm1016_vm4, %v874_v62, %v1112_v4  ;;  %v1515_v15 = vpop.f32.mrb[36].mxu0  ;;  %v1563_v16 = vpop.f32.mrb[36].mxu1  ;;  %vm971_vm5 = vcmp.ge.f32.partialorder %v693_v7, 0.0  ;;  %v1067_v17 = vmul.f32 0.2, %v693_v7 }
 0x126   :  { %1256 = vst [vmem:[%s2233_s3 + $0x100] sm:$0xff] %v1160_v11  ;;  %1304 = vst [vmem:[%s2233_s3 + $0x280] sm:$0xff] %v1208_v12  ;;  %vm1019_vm6 = vcmp.ge.f32.partialorder %v885_v8, 0.0  ;;  %v1115_v18 = vmul.f32 0.2, %v885_v8  ;;  %vm969_vm7 = vcmp.ge.f32.partialorder %v685_v13, 0.0  ;;  %v706_v23 = vadd.f32 %v1515_v15, %v1849_v50 }
 0x127   :  { %v1065_v19 = vmul.f32 0.2, %v685_v13  ;;  %vm1017_vm8 = vcmp.ge.f32.partialorder %v877_v14, 0.0  ;;  %v1113_v20 = vmul.f32 0.2, %v877_v14  ;;  %v1163_v21 = vsel %vm971_vm5, %v693_v7, %v1067_v17  ;;  %v697_v25 = vpop.f32.mrb[37].mxu0 }
 0x128   :  { %v1211_v22 = vsel %vm1019_vm6, %v885_v8, %v1115_v18  ;;  %v898_v24 = vadd.f32 %v1563_v16, %v1849_v50  ;;  %v889_v26 = vpop.f32.mrb[37].mxu1  ;;  %1259 = vst [vmem:[%s2233_s3 + $0x118] sm:$0xff] %v1163_v21  ;;  %v698_v29 = vadd.f32 %v1849_v50, %v697_v25  ;;  %v1516_v31 = vpop.f32.mrb[38].mxu0  ;;  %vm974_vm9 = vcmp.ge.f32.partialorder %v706_v23, 0.0 }
 0x129   :  { %1307 = vst [vmem:[%s2233_s3 + $0x298] sm:$0xff] %v1211_v22  ;;  %v1161_v27 = vsel %vm969_vm7, %v685_v13, %v1065_v19  ;;  %v1209_v28 = vsel %vm1017_vm8, %v877_v14, %v1113_v20  ;;  %v890_v30 = vadd.f32 %v1849_v50, %v889_v26  ;;  %v1564_v32 = vpop.f32.mrb[38].mxu1  ;;  %v1070_v33 = vmul.f32 0.2, %v706_v23  ;;  %v700_v41 = vpop.f32.mrb[39].mxu0 }
 0x12a   :  { %1257 = vst [vmem:[%s2233_s3 + $0x108] sm:$0xff] %v1161_v27  ;;  %1305 = vst [vmem:[%s2233_s3 + $0x288] sm:$0xff] %v1209_v28  ;;  %vm1022_vm10 = vcmp.ge.f32.partialorder %v898_v24, 0.0  ;;  %v1118_v34 = vmul.f32 0.2, %v898_v24  ;;  %vm972_vm11 = vcmp.ge.f32.partialorder %v698_v29, 0.0  ;;  %v709_v39 = vadd.f32 %v1516_v31, %v1849_v50 }
 0x12b   :  { %v1068_v35 = vmul.f32 0.2, %v698_v29  ;;  %vm1020_vm12 = vcmp.ge.f32.partialorder %v890_v30, 0.0  ;;  %v1116_v36 = vmul.f32 0.2, %v890_v30  ;;  %v1166_v37 = vsel %vm974_vm9, %v706_v23, %v1070_v33  ;;  %v892_v42 = vpop.f32.mrb[39].mxu1 }
 0x12c   :  { %v1214_v38 = vsel %vm1022_vm10, %v898_v24, %v1118_v34  ;;  %v901_v40 = vadd.f32 %v1564_v32, %v1849_v50  ;;  %1262 = vst [vmem:[%s2233_s3 + $0x130] sm:$0xff] %v1166_v37  ;;  %v701_v45 = vadd.f32 %v1849_v50, %v700_v41  ;;  %v893_v46 = vadd.f32 %v1849_v50, %v892_v42  ;;  %v1627_v23 = vld [vmem:[%s2232_s2] ss:$0 sm:$0xff] }
 0x12d   :  { %1310 = vst [vmem:[%s2233_s3 + $0x2b0] sm:$0xff] %v1214_v38  ;;  %v1164_v43 = vsel %vm972_vm11, %v698_v29, %v1068_v35  ;;  %v1212_v44 = vsel %vm1020_vm12, %v890_v30, %v1116_v36  ;;  %v1519_v47 = vpop.f32.mrb[40].mxu0  ;;  %v1567_v48 = vpop.f32.mrb[40].mxu1  ;;  %vm975_vm13 = vcmp.ge.f32.partialorder %v709_v39, 0.0  ;;  %v1071_v49 = vmul.f32 0.2, %v709_v39 }
 0x12e   :  { %1260 = vst [vmem:[%s2233_s3 + $0x120] sm:$0xff] %v1164_v43  ;;  %1308 = vst [vmem:[%s2233_s3 + $0x2a0] sm:$0xff] %v1212_v44  ;;  %vm1023_vm14 = vcmp.ge.f32.partialorder %v901_v40, 0.0  ;;  %v1119_v51 = vmul.f32 0.2, %v901_v40  ;;  %vm973_vm15 = vcmp.ge.f32.partialorder %v701_v45, 0.0  ;;  %v722_v56 = vadd.f32 %v1519_v47, %v1849_v50 }
 0x12f   :  { %v1069_v52 = vmul.f32 0.2, %v701_v45  ;;  %vm1021_vm0 = vcmp.ge.f32.partialorder %v893_v46, 0.0  ;;  %v1117_v53 = vmul.f32 0.2, %v893_v46  ;;  %v1167_v54 = vsel %vm975_vm13, %v709_v39, %v1071_v49  ;;  %v713_v58 = vpop.f32.mrb[41].mxu0 }
 0x130   :  { %v1215_v55 = vsel %vm1023_vm14, %v901_v40, %v1119_v51  ;;  %v914_v57 = vadd.f32 %v1567_v48, %v1849_v50  ;;  %v905_v59 = vpop.f32.mrb[41].mxu1  ;;  %1263 = vst [vmem:[%s2233_s3 + $0x138] sm:$0xff] %v1167_v54  ;;  %v714_v62 = vadd.f32 %v1849_v50, %v713_v58  ;;  %v1520_v0 = vpop.f32.mrb[42].mxu0  ;;  %vm978_vm1 = vcmp.ge.f32.partialorder %v722_v56, 0.0 }
 0x131   :  { %1311 = vst [vmem:[%s2233_s3 + $0x2b8] sm:$0xff] %v1215_v55  ;;  %v1165_v60 = vsel %vm973_vm15, %v701_v45, %v1069_v52  ;;  %v1213_v61 = vsel %vm1021_vm0, %v893_v46, %v1117_v53  ;;  %v906_v63 = vadd.f32 %v1849_v50, %v905_v59  ;;  %v1568_v1 = vpop.f32.mrb[42].mxu1  ;;  %v1074_v2 = vmul.f32 0.2, %v722_v56  ;;  %v716_v10 = vpop.f32.mrb[43].mxu0 }
 0x132   :  { %1261 = vst [vmem:[%s2233_s3 + $0x128] sm:$0xff] %v1165_v60  ;;  %1309 = vst [vmem:[%s2233_s3 + $0x2a8] sm:$0xff] %v1213_v61  ;;  %vm1026_vm2 = vcmp.ge.f32.partialorder %v914_v57, 0.0  ;;  %v1122_v3 = vmul.f32 0.2, %v914_v57  ;;  %vm976_vm3 = vcmp.ge.f32.partialorder %v714_v62, 0.0  ;;  %v725_v8 = vadd.f32 %v1520_v0, %v1849_v50 }
 0x133   :  { %v1072_v4 = vmul.f32 0.2, %v714_v62  ;;  %vm1024_vm4 = vcmp.ge.f32.partialorder %v906_v63, 0.0  ;;  %v1120_v5 = vmul.f32 0.2, %v906_v63  ;;  %v1170_v6 = vsel %vm978_vm1, %v722_v56, %v1074_v2  ;;  %v908_v11 = vpop.f32.mrb[43].mxu1 }
 0x134   :  { %v1218_v7 = vsel %vm1026_vm2, %v914_v57, %v1122_v3  ;;  %v917_v9 = vadd.f32 %v1568_v1, %v1849_v50  ;;  %1266 = vst [vmem:[%s2233_s3 + $0x150] sm:$0xff] %v1170_v6  ;;  %v717_v14 = vadd.f32 %v1849_v50, %v716_v10  ;;  %v909_v15 = vadd.f32 %v1849_v50, %v908_v11 }
 0x135   :  { %1314 = vst [vmem:[%s2233_s3 + $0x2d0] sm:$0xff] %v1218_v7  ;;  %v1168_v12 = vsel %vm976_vm3, %v714_v62, %v1072_v4  ;;  %v1216_v13 = vsel %vm1024_vm4, %v906_v63, %v1120_v5  ;;  %v1523_v16 = vpop.f32.mrb[44].mxu0  ;;  %v1571_v17 = vpop.f32.mrb[44].mxu1  ;;  %vm979_vm5 = vcmp.ge.f32.partialorder %v725_v8, 0.0  ;;  %v1075_v18 = vmul.f32 0.2, %v725_v8 }
 0x136   :  { %1264 = vst [vmem:[%s2233_s3 + $0x140] sm:$0xff] %v1168_v12  ;;  %1312 = vst [vmem:[%s2233_s3 + $0x2c0] sm:$0xff] %v1216_v13  ;;  %vm1027_vm6 = vcmp.ge.f32.partialorder %v917_v9, 0.0  ;;  %v1123_v19 = vmul.f32 0.2, %v917_v9  ;;  %vm977_vm7 = vcmp.ge.f32.partialorder %v717_v14, 0.0  ;;  %v738_v24 = vadd.f32 %v1627_v23, %v1523_v16 }
 0x137   :  { %v1073_v20 = vmul.f32 0.2, %v717_v14  ;;  %vm1025_vm8 = vcmp.ge.f32.partialorder %v909_v15, 0.0  ;;  %v1121_v21 = vmul.f32 0.2, %v909_v15  ;;  %v1171_v22 = vsel %vm979_vm5, %v725_v8, %v1075_v18  ;;  %v729_v26 = vpop.f32.mrb[45].mxu0 }
 0x138   :  { %v1219_v50 = vsel %vm1027_vm6, %v917_v9, %v1123_v19  ;;  %v930_v25 = vadd.f32 %v1627_v23, %v1571_v17  ;;  %v921_v27 = vpop.f32.mrb[45].mxu1  ;;  %1267 = vst [vmem:[%s2233_s3 + $0x158] sm:$0xff] %v1171_v22  ;;  %v730_v30 = vadd.f32 %v1627_v23, %v729_v26  ;;  %v1524_v32 = vpop.f32.mrb[46].mxu0  ;;  %vm982_vm9 = vcmp.ge.f32.partialorder %v738_v24, 0.0 }
 0x139   :  { %1315 = vst [vmem:[%s2233_s3 + $0x2d8] sm:$0xff] %v1219_v50  ;;  %v1169_v28 = vsel %vm977_vm7, %v717_v14, %v1073_v20  ;;  %v1217_v29 = vsel %vm1025_vm8, %v909_v15, %v1121_v21  ;;  %v922_v31 = vadd.f32 %v1627_v23, %v921_v27  ;;  %v1572_v33 = vpop.f32.mrb[46].mxu1  ;;  %v1078_v34 = vmul.f32 0.2, %v738_v24  ;;  %v732_v42 = vpop.f32.mrb[47].mxu0 }
 0x13a   :  { %1265 = vst [vmem:[%s2233_s3 + $0x148] sm:$0xff] %v1169_v28  ;;  %1313 = vst [vmem:[%s2233_s3 + $0x2c8] sm:$0xff] %v1217_v29  ;;  %vm1030_vm10 = vcmp.ge.f32.partialorder %v930_v25, 0.0  ;;  %v1126_v35 = vmul.f32 0.2, %v930_v25  ;;  %vm980_vm11 = vcmp.ge.f32.partialorder %v730_v30, 0.0  ;;  %v741_v40 = vadd.f32 %v1627_v23, %v1524_v32 }
 0x13b   :  { %v1076_v36 = vmul.f32 0.2, %v730_v30  ;;  %vm1028_vm12 = vcmp.ge.f32.partialorder %v922_v31, 0.0  ;;  %v1124_v37 = vmul.f32 0.2, %v922_v31  ;;  %v1174_v38 = vsel %vm982_vm9, %v738_v24, %v1078_v34  ;;  %v924_v43 = vpop.f32.mrb[47].mxu1 }
 0x13c   :  { %v1222_v39 = vsel %vm1030_vm10, %v930_v25, %v1126_v35  ;;  %v933_v41 = vadd.f32 %v1627_v23, %v1572_v33  ;;  %1270 = vst [vmem:[%s2233_s3 + $0x170] sm:$0xff] %v1174_v38  ;;  %v733_v46 = vadd.f32 %v1627_v23, %v732_v42  ;;  %v925_v47 = vadd.f32 %v1627_v23, %v924_v43 }
 0x13d   :  { %1318 = vst [vmem:[%s2233_s3 + $0x2f0] sm:$0xff] %v1222_v39  ;;  %v1172_v44 = vsel %vm980_vm11, %v730_v30, %v1076_v36  ;;  %v1220_v45 = vsel %vm1028_vm12, %v922_v31, %v1124_v37  ;;  %vm983_vm13 = vcmp.ge.f32.partialorder %v741_v40, 0.0  ;;  %v1079_v48 = vmul.f32 0.2, %v741_v40 }
 0x13e   :  { %1268 = vst [vmem:[%s2233_s3 + $0x160] sm:$0xff] %v1172_v44  ;;  %1316 = vst [vmem:[%s2233_s3 + $0x2e0] sm:$0xff] %v1220_v45  ;;  %vm1031_vm14 = vcmp.ge.f32.partialorder %v933_v41, 0.0  ;;  %v1127_v49 = vmul.f32 0.2, %v933_v41  ;;  %vm981_vm15 = vcmp.ge.f32.partialorder %v733_v46, 0.0 }
 0x13f   :  { %v1077_v51 = vmul.f32 0.2, %v733_v46  ;;  %vm1029_vm0 = vcmp.ge.f32.partialorder %v925_v47, 0.0  ;;  %v1125_v52 = vmul.f32 0.2, %v925_v47  ;;  %v1175_v53 = vsel %vm983_vm13, %v741_v40, %v1079_v48 }
 0x140   :  { %v1223_v54 = vsel %vm1031_vm14, %v933_v41, %v1127_v49  ;;  %1271 = vst [vmem:[%s2233_s3 + $0x178] sm:$0xff] %v1175_v53 }
 0x141   :  { %1319 = vst [vmem:[%s2233_s3 + $0x2f8] sm:$0xff] %v1223_v54  ;;  %v1173_v55 = vsel %vm981_vm15, %v733_v46, %v1077_v51  ;;  %v1221_v56 = vsel %vm1029_vm0, %v925_v47, %v1125_v52 }
 0x142   :  { %1269 = vst [vmem:[%s2233_s3 + $0x168] sm:$0xff] %v1173_v55  ;;  %1317 = vst [vmem:[%s2233_s3 + $0x2e8] sm:$0xff] %v1221_v56 }

// kernel: _forward_impl.8
= control target key start
LH: loop header
LB: loop body
LE: loop exit
PB: predicated region body
PF: predicated region fallthrough
CT: control target
= control target key end

     0   :  { %v602_v0 = vmov 0   ;;  %vm226_vm0 = vcmask 130048   ;;  %s835_s1 = inlined_call_operand.vmem [shape: bf16[144,128], index: 1, kind: input, shape index: {}]   ;;  %s836_s0 = inlined_call_operand.vmem [shape: bf16[192,144], index: 0, kind: input, shape index: {}]   ;;  %s837_s2 = inlined_call_operand.vmem [shape: f32[1,128], index: 2, kind: input, shape index: {}]   ;;  %s838_s3 = inlined_call_operand.vmem [shape: f32[192,128], index: 3, kind: output, shape index: {}]  }
   0x1   :  { %263 = vmatprep.subr.bf16.mxu0 %v602_v0  ;;  %538 = vmatprep.subr.bf16.mxu1 %v602_v0  ;;  %v557_v1 = vld [vmem:[%s835_s1] sm:$0xff]   ;;  %v558_v2 = vld [vmem:[%s835_s1 + $0x8] sm:$0xff]   ;;  %v559_v3 = vld [vmem:[%s835_s1 + $0x10] sm:$0xff]  }
   0x2   :  { %264 = vmatpush1.bf16.msra.mxu0 %v557_v1  ;;  %547 = vmatpush1.bf16.msra.mxu1 %v557_v1  ;;  %v560_v4 = vld [vmem:[%s835_s1 + $0x18] sm:$0xff]   ;;  %v568_v5 = vld [vmem:[%s836_s0 + $0x4] ss:$8 sps:$4 sm:$0xff]   ;;  %v563_v9 = vld [vmem:[%s835_s1 + $0x30] sm:$0xff]  }
   0x3   :  { %265 = vmatprep.subr.bf16.mxu0 %v602_v0  ;;  %539 = vmatprep.subr.bf16.mxu1 %v602_v0  ;;  %v571_v6 = vld [vmem:[%s836_s0 + $0x64] ss:$8 sps:$4 sm:$0xff]   ;;  %v564_v10 = vld [vmem:[%s835_s1 + $0x38] sm:$0xff]   ;;  %v566_v12 = vld [vmem:[%s836_s0] ss:$8 sps:$4 sm:$0xff]  }
   0x4   :  { %526 = vmatprep.mubr.msk.bf16.mxu0 %vm226_vm0, %v568_v5  ;;  %532 = vmatprep.mubr.msk.bf16.mxu1 %vm226_vm0, %v571_v6  ;;  %v561_v7 = vld [vmem:[%s835_s1 + $0x20] sm:$0xff]   ;;  %v562_v8 = vld [vmem:[%s835_s1 + $0x28] sm:$0xff]   ;;  %v572_v14 = vld [vmem:[%s836_s0 + $0x14] ss:$8 sps:$4 sm:$0xff]  }
   0x5   :  { %v565_v11 = vld [vmem:[%s835_s1 + $0x40] sm:$0xff]   ;;  %v574_v15 = vld [vmem:[%s836_s0 + $0x74] ss:$8 sps:$4 sm:$0xff]   ;;  %v576_v16 = vld [vmem:[%s836_s0 + $0x10] ss:$8 sps:$4 sm:$0xff]  }
   0x6   :  { %266 = vmatpush1.bf16.msra.mxu0 %v558_v2  ;;  %548 = vmatpush1.bf16.msra.mxu1 %v558_v2  ;;  %v569_v13 = vld [vmem:[%s836_s0 + $0x60] ss:$8 sps:$4 sm:$0xff]   ;;  %v577_v17 = vld [vmem:[%s836_s0 + $0x70] ss:$8 sps:$4 sm:$0xff]   ;;  %v578_v18 = vld [vmem:[%s836_s0 + $0x24] ss:$8 sps:$4 sm:$0xff]  }
   0x7   :  { %267 = vmatprep.subr.bf16.mxu0 %v602_v0  ;;  %540 = vmatprep.subr.bf16.mxu1 %v602_v0  ;;  %v580_v19 = vld [vmem:[%s836_s0 + $0x84] ss:$8 sps:$4 sm:$0xff]   ;;  %v582_v20 = vld [vmem:[%s836_s0 + $0x20] ss:$8 sps:$4 sm:$0xff]   ;;  %v584_v22 = vld [vmem:[%s836_s0 + $0x34] ss:$8 sps:$4 sm:$0xff]  }
   0x8   :  { %v583_v21 = vld [vmem:[%s836_s0 + $0x80] ss:$8 sps:$4 sm:$0xff]   ;;  %v586_v23 = vld [vmem:[%s836_s0 + $0x94] ss:$8 sps:$4 sm:$0xff]   ;;  %v588_v24 = vld [vmem:[%s836_s0 + $0x30] ss:$8 sps:$4 sm:$0xff]  }
   0x9   :  { %v589_v25 = vld [vmem:[%s836_s0 + $0x90] ss:$8 sps:$4 sm:$0xff]   ;;  %v590_v26 = vld [vmem:[%s836_s0 + $0x44] ss:$8 sps:$4 sm:$0xff]   ;;  %v594_v28 = vld [vmem:[%s836_s0 + $0x40] ss:$8 sps:$4 sm:$0xff]  }
   0xa   :  { %268 = vmatpush1.bf16.msra.mxu0 %v559_v3  ;;  %549 = vmatpush1.bf16.msra.mxu1 %v559_v3  ;;  %v592_v27 = vld [vmem:[%s836_s0 + $0xa4] ss:$8 sps:$4 sm:$0xff]   ;;  %v595_v29 = vld [vmem:[%s836_s0 + $0xa0] ss:$8 sps:$4 sm:$0xff]   ;;  %v596_v30 = vld [vmem:[%s836_s0 + $0x54] ss:$8 sps:$4 sm:$0xff]  }
   0xb   :  { %269 = vmatprep.subr.bf16.mxu0 %v602_v0  ;;  %541 = vmatprep.subr.bf16.mxu1 %v602_v0  ;;  %v598_v31 = vld [vmem:[%s836_s0 + $0xb4] ss:$8 sps:$4 sm:$0xff]   ;;  %v600_v32 = vld [vmem:[%s836_s0 + $0x50] ss:$8 sps:$4 sm:$0xff]   ;;  %v737_v34 = vld [vmem:[%s837_s2] ss:$0 sm:$0xff] }
   0xc   :  { %v601_v33 = vld [vmem:[%s836_s0 + $0xb0] ss:$8 sps:$4 sm:$0xff]  }
   0xe   :  { %270 = vmatpush1.bf16.msra.mxu0 %v560_v4  ;;  %550 = vmatpush1.bf16.msra.mxu1 %v560_v4 }
   0xf   :  { %271 = vmatprep.subr.bf16.mxu0 %v602_v0  ;;  %542 = vmatprep.subr.bf16.mxu1 %v602_v0 }
  0x12   :  { %272 = vmatpush1.bf16.msra.mxu0 %v561_v7  ;;  %551 = vmatpush1.bf16.msra.mxu1 %v561_v7 }
  0x13   :  { %273 = vmatprep.subr.bf16.mxu0 %v602_v0  ;;  %543 = vmatprep.subr.bf16.mxu1 %v602_v0 }
  0x16   :  { %274 = vmatpush1.bf16.msra.mxu0 %v562_v8  ;;  %552 = vmatpush1.bf16.msra.mxu1 %v562_v8 }
  0x17   :  { %275 = vmatprep.subr.bf16.mxu0 %v602_v0  ;;  %544 = vmatprep.subr.bf16.mxu1 %v602_v0 }
  0x1a   :  { %276 = vmatpush1.bf16.msra.mxu0 %v563_v9  ;;  %553 = vmatpush1.bf16.msra.mxu1 %v563_v9 }
  0x1b   :  { %277 = vmatprep.subr.bf16.mxu0 %v602_v0  ;;  %545 = vmatprep.subr.bf16.mxu1 %v602_v0 }
  0x1e   :  { %278 = vmatpush1.bf16.msra.mxu0 %v564_v10  ;;  %554 = vmatpush1.bf16.msra.mxu1 %v564_v10 }
  0x1f   :  { %279 = vmatprep.subr.bf16.mxu0 %v602_v0  ;;  %546 = vmatprep.subr.bf16.mxu1 %v602_v0 }
  0x22   :  { %280 = vmatpush1.bf16.msra.mxu0 %v565_v11  ;;  %555 = vmatpush1.bf16.msra.mxu1 %v565_v11 }
  0x25   :  { %296 = vmatmul.mubr.bf16.vlgmr.msra.gmra.mrb[0].mxu0 %v566_v12  ;;  %344 = vmatmul.mubr.bf16.vlgmr.msra.gmra.mrb[0].mxu1 %v569_v13 }
  0x26   :  { %527 = vmatprep.mubr.msk.bf16.mxu0 %vm226_vm0, %v572_v14  ;;  %533 = vmatprep.mubr.msk.bf16.mxu1 %vm226_vm0, %v574_v15 }
  0x2d   :  { %304 = vmatmul.mubr.bf16.gmra.mrb[4].mxu0 %v576_v16  ;;  %352 = vmatmul.mubr.bf16.gmra.mrb[4].mxu1 %v577_v17 }
  0x2e   :  { %528 = vmatprep.mubr.msk.bf16.mxu0 %vm226_vm0, %v578_v18  ;;  %534 = vmatprep.mubr.msk.bf16.mxu1 %vm226_vm0, %v580_v19 }
  0x35   :  { %312 = vmatmul.mubr.bf16.gmra.mrb[8].mxu0 %v582_v20  ;;  %360 = vmatmul.mubr.bf16.gmra.mrb[8].mxu1 %v583_v21 }
  0x36   :  { %529 = vmatprep.mubr.msk.bf16.mxu0 %vm226_vm0, %v584_v22  ;;  %535 = vmatprep.mubr.msk.bf16.mxu1 %vm226_vm0, %v586_v23 }
  0x3d   :  { %320 = vmatmul.mubr.bf16.gmra.mrb[12].mxu0 %v588_v24  ;;  %368 = vmatmul.mubr.bf16.gmra.mrb[12].mxu1 %v589_v25 }
  0x3e   :  { %530 = vmatprep.mubr.msk.bf16.mxu0 %vm226_vm0, %v590_v26  ;;  %536 = vmatprep.mubr.msk.bf16.mxu1 %vm226_vm0, %v592_v27 }
  0x45   :  { %328 = vmatmul.mubr.bf16.gmra.mrb[16].mxu0 %v594_v28  ;;  %376 = vmatmul.mubr.bf16.gmra.mrb[16].mxu1 %v595_v29 }
  0x46   :  { %531 = vmatprep.mubr.msk.bf16.mxu0 %vm226_vm0, %v596_v30  ;;  %537 = vmatprep.mubr.msk.bf16.mxu1 %vm226_vm0, %v598_v31 }
  0x4d   :  { %336 = vmatmul.mubr.bf16.gmra.mrb[20].mxu0 %v600_v32  ;;  %384 = vmatmul.mubr.bf16.gmra.mrb[20].mxu1 %v601_v33 }
  0xf8   :  { %v297_v35 = vpop.f32.mrb[0].mxu0  ;;  %v345_v36 = vpop.f32.mrb[0].mxu1 }
  0xf9   :  { %v298_v37 = vadd.f32 %v737_v34, %v297_v35  ;;  %v346_v38 = vadd.f32 %v737_v34, %v345_v36  ;;  %v299_v39 = vpop.f32.mrb[1].mxu0  ;;  %v347_v40 = vpop.f32.mrb[1].mxu1 }
  0xfa   :  { %v300_v41 = vpop.f32.mrb[2].mxu0  ;;  %v348_v42 = vpop.f32.mrb[2].mxu1 }
  0xfb   :  { %vm392_vm1 = vcmp.ge.f32.partialorder %v298_v37, 0.0  ;;  %v416_v43 = vmul.f32 0.2, %v298_v37  ;;  %vm404_vm2 = vcmp.ge.f32.partialorder %v346_v38, 0.0  ;;  %v428_v44 = vmul.f32 0.2, %v346_v38 }
  0xfc   :  { %v301_v45 = vadd.f32 %v737_v34, %v300_v41  ;;  %v349_v46 = vadd.f32 %v737_v34, %v348_v42  ;;  %v302_v47 = vpop.f32.mrb[3].mxu0  ;;  %v350_v48 = vpop.f32.mrb[3].mxu1 }
  0xfd   :  { %v440_v49 = vsel %vm392_vm1, %v298_v37, %v416_v43  ;;  %v452_v50 = vsel %vm404_vm2, %v346_v38, %v428_v44 }
  0xfe   :  { %464 = vst [vmem:[%s838_s3] sm:$0xff] %v440_v49  ;;  %476 = vst [vmem:[%s838_s3 + $0x60] sm:$0xff] %v452_v50  ;;  %vm393_vm3 = vcmp.ge.f32.partialorder %v301_v45, 0.0  ;;  %v417_v51 = vmul.f32 0.2, %v301_v45  ;;  %vm405_vm4 = vcmp.ge.f32.partialorder %v349_v46, 0.0 }
  0xff   :  { %v429_v52 = vmul.f32 0.2, %v349_v46 }
 0x100   :  { %v441_v53 = vsel %vm393_vm3, %v301_v45, %v417_v51  ;;  %v305_v55 = vpop.f32.mrb[4].mxu0  ;;  %v353_v56 = vpop.f32.mrb[4].mxu1 }
 0x101   :  { %v453_v54 = vsel %vm405_vm4, %v349_v46, %v429_v52  ;;  %465 = vst [vmem:[%s838_s3 + $0x8] sm:$0xff] %v441_v53  ;;  %v306_v57 = vadd.f32 %v737_v34, %v305_v55  ;;  %v354_v58 = vadd.f32 %v737_v34, %v353_v56  ;;  %v307_v59 = vpop.f32.mrb[5].mxu0  ;;  %v355_v60 = vpop.f32.mrb[5].mxu1 }
 0x102   :  { %477 = vst [vmem:[%s838_s3 + $0x68] sm:$0xff] %v453_v54  ;;  %v308_v61 = vpop.f32.mrb[6].mxu0  ;;  %v356_v62 = vpop.f32.mrb[6].mxu1 }
 0x103   :  { %vm394_vm5 = vcmp.ge.f32.partialorder %v306_v57, 0.0  ;;  %v418_v63 = vmul.f32 0.2, %v306_v57  ;;  %vm406_vm6 = vcmp.ge.f32.partialorder %v354_v58, 0.0  ;;  %v430_v0 = vmul.f32 0.2, %v354_v58 }
 0x104   :  { %v309_v1 = vadd.f32 %v737_v34, %v308_v61  ;;  %v357_v2 = vadd.f32 %v737_v34, %v356_v62  ;;  %v310_v3 = vpop.f32.mrb[7].mxu0  ;;  %v358_v4 = vpop.f32.mrb[7].mxu1 }
 0x105   :  { %v442_v5 = vsel %vm394_vm5, %v306_v57, %v418_v63  ;;  %v454_v6 = vsel %vm406_vm6, %v354_v58, %v430_v0 }
 0x106   :  { %466 = vst [vmem:[%s838_s3 + $0x10] sm:$0xff] %v442_v5  ;;  %478 = vst [vmem:[%s838_s3 + $0x70] sm:$0xff] %v454_v6  ;;  %vm395_vm7 = vcmp.ge.f32.partialorder %v309_v1, 0.0  ;;  %v419_v7 = vmul.f32 0.2, %v309_v1  ;;  %vm407_vm8 = vcmp.ge.f32.partialorder %v357_v2, 0.0 }
 0x107   :  { %v431_v8 = vmul.f32 0.2, %v357_v2 }
 0x108   :  { %v443_v9 = vsel %vm395_vm7, %v309_v1, %v419_v7  ;;  %v313_v11 = vpop.f32.mrb[8].mxu0  ;;  %v361_v12 = vpop.f32.mrb[8].mxu1 }
 0x109   :  { %v455_v10 = vsel %vm407_vm8, %v357_v2, %v431_v8  ;;  %467 = vst [vmem:[%s838_s3 + $0x18] sm:$0xff] %v443_v9  ;;  %v314_v13 = vadd.f32 %v737_v34, %v313_v11  ;;  %v362_v14 = vadd.f32 %v737_v34, %v361_v12  ;;  %v315_v15 = vpop.f32.mrb[9].mxu0  ;;  %v363_v16 = vpop.f32.mrb[9].mxu1 }
 0x10a   :  { %479 = vst [vmem:[%s838_s3 + $0x78] sm:$0xff] %v455_v10  ;;  %v316_v17 = vpop.f32.mrb[10].mxu0  ;;  %v364_v18 = vpop.f32.mrb[10].mxu1 }
 0x10b   :  { %vm396_vm9 = vcmp.ge.f32.partialorder %v314_v13, 0.0  ;;  %v420_v19 = vmul.f32 0.2, %v314_v13  ;;  %vm408_vm10 = vcmp.ge.f32.partialorder %v362_v14, 0.0  ;;  %v432_v20 = vmul.f32 0.2, %v362_v14 }
 0x10c   :  { %v317_v21 = vadd.f32 %v737_v34, %v316_v17  ;;  %v365_v22 = vadd.f32 %v737_v34, %v364_v18  ;;  %v318_v23 = vpop.f32.mrb[11].mxu0  ;;  %v366_v24 = vpop.f32.mrb[11].mxu1 }
 0x10d   :  { %v444_v25 = vsel %vm396_vm9, %v314_v13, %v420_v19  ;;  %v456_v26 = vsel %vm408_vm10, %v362_v14, %v432_v20 }
 0x10e   :  { %468 = vst [vmem:[%s838_s3 + $0x20] sm:$0xff] %v444_v25  ;;  %480 = vst [vmem:[%s838_s3 + $0x80] sm:$0xff] %v456_v26  ;;  %vm397_vm11 = vcmp.ge.f32.partialorder %v317_v21, 0.0  ;;  %v421_v27 = vmul.f32 0.2, %v317_v21  ;;  %vm409_vm12 = vcmp.ge.f32.partialorder %v365_v22, 0.0 }
 0x10f   :  { %v433_v28 = vmul.f32 0.2, %v365_v22 }
 0x110   :  { %v445_v29 = vsel %vm397_vm11, %v317_v21, %v421_v27  ;;  %v321_v31 = vpop.f32.mrb[12].mxu0  ;;  %v369_v32 = vpop.f32.mrb[12].mxu1 }
 0x111   :  { %v457_v30 = vsel %vm409_vm12, %v365_v22, %v433_v28  ;;  %469 = vst [vmem:[%s838_s3 + $0x28] sm:$0xff] %v445_v29  ;;  %v322_v33 = vadd.f32 %v737_v34, %v321_v31  ;;  %v370_v35 = vadd.f32 %v737_v34, %v369_v32  ;;  %v323_v36 = vpop.f32.mrb[13].mxu0  ;;  %v371_v37 = vpop.f32.mrb[13].mxu1 }
 0x112   :  { %481 = vst [vmem:[%s838_s3 + $0x88] sm:$0xff] %v457_v30  ;;  %v324_v38 = vpop.f32.mrb[14].mxu0  ;;  %v372_v39 = vpop.f32.mrb[14].mxu1 }
 0x113   :  { %vm398_vm13 = vcmp.ge.f32.partialorder %v322_v33, 0.0  ;;  %v422_v40 = vmul.f32 0.2, %v322_v33  ;;  %vm410_vm14 = vcmp.ge.f32.partialorder %v370_v35, 0.0  ;;  %v434_v41 = vmul.f32 0.2, %v370_v35 }
 0x114   :  { %v325_v42 = vadd.f32 %v737_v34, %v324_v38  ;;  %v373_v43 = vadd.f32 %v737_v34, %v372_v39  ;;  %v326_v44 = vpop.f32.mrb[15].mxu0  ;;  %v374_v45 = vpop.f32.mrb[15].mxu1 }
 0x115   :  { %v446_v46 = vsel %vm398_vm13, %v322_v33, %v422_v40  ;;  %v458_v47 = vsel %vm410_vm14, %v370_v35, %v434_v41 }
 0x116   :  { %470 = vst [vmem:[%s838_s3 + $0x30] sm:$0xff] %v446_v46  ;;  %482 = vst [vmem:[%s838_s3 + $0x90] sm:$0xff] %v458_v47  ;;  %vm399_vm15 = vcmp.ge.f32.partialorder %v325_v42, 0.0  ;;  %v423_v48 = vmul.f32 0.2, %v325_v42  ;;  %vm411_vm0 = vcmp.ge.f32.partialorder %v373_v43, 0.0 }
 0x117   :  { %v435_v49 = vmul.f32 0.2, %v373_v43 }
 0x118   :  { %v447_v50 = vsel %vm399_vm15, %v325_v42, %v423_v48  ;;  %v329_v52 = vpop.f32.mrb[16].mxu0  ;;  %v377_v53 = vpop.f32.mrb[16].mxu1 }
 0x119   :  { %v459_v51 = vsel %vm411_vm0, %v373_v43, %v435_v49  ;;  %471 = vst [vmem:[%s838_s3 + $0x38] sm:$0xff] %v447_v50  ;;  %v330_v54 = vadd.f32 %v737_v34, %v329_v52  ;;  %v378_v55 = vadd.f32 %v737_v34, %v377_v53  ;;  %v331_v56 = vpop.f32.mrb[17].mxu0  ;;  %v379_v57 = vpop.f32.mrb[17].mxu1 }
 0x11a   :  { %483 = vst [vmem:[%s838_s3 + $0x98] sm:$0xff] %v459_v51  ;;  %v332_v58 = vpop.f32.mrb[18].mxu0  ;;  %v380_v59 = vpop.f32.mrb[18].mxu1 }
 0x11b   :  { %vm400_vm1 = vcmp.ge.f32.partialorder %v330_v54, 0.0  ;;  %v424_v60 = vmul.f32 0.2, %v330_v54  ;;  %vm412_vm2 = vcmp.ge.f32.partialorder %v378_v55, 0.0  ;;  %v436_v61 = vmul.f32 0.2, %v378_v55 }
 0x11c   :  { %v333_v62 = vadd.f32 %v737_v34, %v332_v58  ;;  %v381_v63 = vadd.f32 %v737_v34, %v380_v59  ;;  %v334_v0 = vpop.f32.mrb[19].mxu0  ;;  %v382_v1 = vpop.f32.mrb[19].mxu1 }
 0x11d   :  { %v448_v2 = vsel %vm400_vm1, %v330_v54, %v424_v60  ;;  %v460_v3 = vsel %vm412_vm2, %v378_v55, %v436_v61 }
 0x11e   :  { %472 = vst [vmem:[%s838_s3 + $0x40] sm:$0xff] %v448_v2  ;;  %484 = vst [vmem:[%s838_s3 + $0xa0] sm:$0xff] %v460_v3  ;;  %vm401_vm3 = vcmp.ge.f32.partialorder %v333_v62, 0.0  ;;  %v425_v4 = vmul.f32 0.2, %v333_v62  ;;  %vm413_vm4 = vcmp.ge.f32.partialorder %v381_v63, 0.0 }
 0x11f   :  { %v437_v5 = vmul.f32 0.2, %v381_v63 }
 0x120   :  { %v449_v6 = vsel %vm401_vm3, %v333_v62, %v425_v4  ;;  %v337_v8 = vpop.f32.mrb[20].mxu0  ;;  %v385_v9 = vpop.f32.mrb[20].mxu1 }
 0x121   :  { %v461_v7 = vsel %vm413_vm4, %v381_v63, %v437_v5  ;;  %473 = vst [vmem:[%s838_s3 + $0x48] sm:$0xff] %v449_v6  ;;  %v338_v10 = vadd.f32 %v737_v34, %v337_v8  ;;  %v386_v11 = vadd.f32 %v737_v34, %v385_v9  ;;  %v339_v12 = vpop.f32.mrb[21].mxu0  ;;  %v387_v13 = vpop.f32.mrb[21].mxu1 }
 0x122   :  { %485 = vst [vmem:[%s838_s3 + $0xa8] sm:$0xff] %v461_v7  ;;  %v340_v14 = vpop.f32.mrb[22].mxu0  ;;  %v388_v15 = vpop.f32.mrb[22].mxu1 }
 0x123   :  { %vm402_vm5 = vcmp.ge.f32.partialorder %v338_v10, 0.0  ;;  %v426_v16 = vmul.f32 0.2, %v338_v10  ;;  %vm414_vm6 = vcmp.ge.f32.partialorder %v386_v11, 0.0  ;;  %v438_v17 = vmul.f32 0.2, %v386_v11 }
 0x124   :  { %v341_v18 = vadd.f32 %v737_v34, %v340_v14  ;;  %v389_v19 = vadd.f32 %v737_v34, %v388_v15  ;;  %v342_v20 = vpop.f32.mrb[23].mxu0  ;;  %v390_v21 = vpop.f32.mrb[23].mxu1 }
 0x125   :  { %v450_v22 = vsel %vm402_vm5, %v338_v10, %v426_v16  ;;  %v462_v23 = vsel %vm414_vm6, %v386_v11, %v438_v17 }
 0x126   :  { %474 = vst [vmem:[%s838_s3 + $0x50] sm:$0xff] %v450_v22  ;;  %486 = vst [vmem:[%s838_s3 + $0xb0] sm:$0xff] %v462_v23  ;;  %vm403_vm7 = vcmp.ge.f32.partialorder %v341_v18, 0.0  ;;  %v427_v24 = vmul.f32 0.2, %v341_v18  ;;  %vm415_vm8 = vcmp.ge.f32.partialorder %v389_v19, 0.0 }
 0x127   :  { %v439_v25 = vmul.f32 0.2, %v389_v19 }
 0x128   :  { %v451_v26 = vsel %vm403_vm7, %v341_v18, %v427_v24 }
 0x129   :  { %v463_v27 = vsel %vm415_vm8, %v389_v19, %v439_v25  ;;  %475 = vst [vmem:[%s838_s3 + $0x58] sm:$0xff] %v451_v26 }
 0x12a   :  { %487 = vst [vmem:[%s838_s3 + $0xb8] sm:$0xff] %v463_v27 }

// kernel: squeeze.21
= control target key start
LH: loop header
LB: loop body
LE: loop exit
PB: predicated region body
PF: predicated region fallthrough
CT: control target
= control target key end

     0   :  { %s35_s8 = smov 96   ;;  %vm3_vm0 = vcmask 261120   ;;  %s37_s15 = smov 64   ;;  %vm9_vm1 = vcmask 1048320   ;;  %vm15_vm2 = vcmask 785920   ;;  %vm21_vm3 = vcmask 523520   ;;  %s63_s0 = inlined_call_operand.vmem [shape: f32[16,32], index: 0, kind: input, shape index: {}]   ;;  %s64_s1 = inlined_call_operand.vmem [shape: f32[4,128], index: 1, kind: output, shape index: {}]  }
   0x1   :  { %v29_v0 = vld [vmem:[%s63_s0 + $0x3] ss:$4 sm:$0xf]   ;;  %v30_v1 = vld [vmem:[%s63_s0 + $0x2] ss:$4 sm:$0xf]  }
   0x2   :  { %7 = vrot.lane.b32.xlu0 %v29_v0, %s35_s8  ;;  %v31_v2 = vld [vmem:[%s63_s0 + $0x1] ss:$4 sm:$0xf]   ;;  %v2_v3 = vld [vmem:[%s63_s0] ss:$4 sm:$0xf]  }
   0x3   :  { %s36_s0 = smov 32   ;;  %4 = vst.msk [vmem:[#allocation0] sm:$0xf] %vm3_vm0, %v2_v3  }
   0x4   :  { %19 = vrot.lane.b32.xlu1 %v31_v2, %s36_s0 }
   0x6   :  { %13 = vrot.lane.b32.xlu0 %v30_v1, %s37_s15 }
  0x74   :  { %v8_v4 = vpop.permute.xlu0 %7  }
  0x75   :  { %10 = vst.msk [vmem:[#allocation0] sm:$0xf] %vm9_vm1, %v8_v4  }
  0x76   :  { %v20_v5 = vpop.permute.xlu1 %19  }
  0x78   :  { %v14_v6 = vpop.permute.xlu0 %13  }
  0x79   :  { %16 = vst.msk [vmem:[#allocation0] sm:$0xf] %vm15_vm2, %v14_v6  }
  0x7a   :  { %22 = vst.msk [vmem:[#allocation0] sm:$0xf] %vm21_vm3, %v20_v5  }
  0x81   :  { %v26_v7 = vld [vmem:[#allocation0] sm:$0xf] }
  0x82   :  { %28 = vst [vmem:[%s64_s1] sm:$0xf] %v26_v7 }

// kernel: _forward_impl.9
= control target key start
LH: loop header
LB: loop body
LE: loop exit
PB: predicated region body
PF: predicated region fallthrough
CT: control target
= control target key end

     0   :  { %v686_v1 = vmov 0.0   ;;  %vm687_vm0 = vmmov 0   ;;  %vm229_vm1 = vcmask 261120   ;;  %s872_s1 = inlined_call_operand.vmem [shape: bf16[288,128], index: 1, kind: input, shape index: {}]   ;;  %s873_s0 = inlined_call_operand.vmem [shape: bf16[48,288], index: 0, kind: input, shape index: {}]   ;;  %s874_s3 = inlined_call_operand.vmem [shape: bf16[128,128], index: 3, kind: input, shape index: {}]   ;;  %s875_s2 = inlined_call_operand.vmem [shape: f32[1,128], index: 2, kind: input, shape index: {}]   ;;  %s876_s4 = inlined_call_operand.vmem [shape: f32[1,128], index: 4, kind: input, shape index: {}]   ;;  %s877_s5 = inlined_call_operand.vmem [shape: f32[48,128], index: 5, kind: output, shape index: {}]  }
   0x1   :  { %v648_v0 = vld [vmem:[%s872_s1 + $0x40] sm:$0xff]   ;;  %602 = vmatprep.subr.bf16.mxu1 %v686_v1  ;;  %606 = vmatprep.mubr.msk.bf16.mxu1 %vm687_vm0, %v686_v1  ;;  %v650_v3 = vld [vmem:[%s872_s1 + $0x48] sm:$0xff]   ;;  %v652_v5 = vld [vmem:[%s872_s1 + $0x50] sm:$0xff]  }
   0x2   :  { %v649_v2 = vld [vmem:[%s872_s1] sm:$0xff]   ;;  %552 = vmatprep.subr.bf16.mxu0 %v648_v0  ;;  %v651_v4 = vld [vmem:[%s872_s1 + $0x8] sm:$0xff]   ;;  %v653_v6 = vld [vmem:[%s872_s1 + $0x10] sm:$0xff]  }
   0x3   :  { %553 = vmatpush3.bf16.msra.mxu0 %v649_v2  ;;  %v654_v7 = vld [vmem:[%s872_s1 + $0x58] sm:$0xff]   ;;  %v656_v9 = vld [vmem:[%s872_s1 + $0x60] sm:$0xff]   ;;  %v658_v12 = vld [vmem:[%s872_s1 + $0x68] sm:$0xff]  }
   0x4   :  { %554 = vmatprep.subr.bf16.mxu0 %v650_v3  ;;  %v655_v8 = vld [vmem:[%s872_s1 + $0x18] sm:$0xff]   ;;  %v662_v10 = vld [vmem:[%s872_s1 + $0x80] sm:$0xff]   ;;  %v659_v13 = vld [vmem:[%s872_s1 + $0x28] sm:$0xff]  }
   0x5   :  { %v657_v11 = vld [vmem:[%s872_s1 + $0x20] sm:$0xff]   ;;  %603 = vmatpush3.bf16.msra.mxu1 %v662_v10  ;;  %v660_v14 = vld [vmem:[%s872_s1 + $0x70] sm:$0xff]   ;;  %v668_v16 = vld [vmem:[%s872_s1 + $0x88] sm:$0xff]  }
   0x6   :  { %604 = vmatprep.subr.bf16.mxu1 %v686_v1  ;;  %v667_v15 = vld [vmem:[%s873_s0 + $0x4] ss:$12 sps:$4 sm:$0xff]   ;;  %v669_v17 = vld [vmem:[%s873_s0 + $0x8] ss:$12 sps:$4 sm:$0xff]   ;;  %v663_v19 = vld [vmem:[%s872_s1 + $0x78] sm:$0xff]  }
   0x7   :  { %555 = vmatpush3.bf16.msra.mxu0 %v651_v4  ;;  %271 = vmatprep.mubr.bf16.mxu0 %v667_v15  ;;  %v661_v18 = vld [vmem:[%s872_s1 + $0x30] sm:$0xff]   ;;  %v678_v20 = vld [vmem:[%s874_s3] sm:$0xff]   ;;  %v664_v21 = vld [vmem:[%s872_s1 + $0x38] sm:$0xff]  }
   0x8   :  { %556 = vmatprep.subr.bf16.mxu0 %v652_v5  ;;  %v679_v22 = vld [vmem:[%s874_s3 + $0x8] sm:$0xff]   ;;  %v680_v26 = vld [vmem:[%s874_s3 + $0x10] sm:$0xff]   ;;  %v681_v27 = vld [vmem:[%s874_s3 + $0x18] sm:$0xff]  }
   0x9   :  { %605 = vmatpush3.bf16.msra.mxu1 %v668_v16  ;;  %v665_v23 = vld [vmem:[%s873_s0] ss:$12 sps:$4 sm:$0xff]   ;;  %v670_v25 = vld [vmem:[%s873_s0 + $0x1c] ss:$12 sps:$4 sm:$0xff]   ;;  %v677_v28 = vld [vmem:[%s873_s0 + $0x38] ss:$12 sps:$4 sm:$0xff]  }
   0xa   :  { %618 = vmatprep.subr.bf16.mxu1 %v686_v1  ;;  %v673_v24 = vld [vmem:[%s873_s0 + $0x20] ss:$12 sps:$4 sm:$0xff]   ;;  %v672_v29 = vld [vmem:[%s873_s0 + $0x18] ss:$12 sps:$4 sm:$0xff]   ;;  %v676_v31 = vld [vmem:[%s873_s0 + $0x30] ss:$12 sps:$4 sm:$0xff]  }
   0xb   :  { %557 = vmatpush3.bf16.msra.mxu0 %v653_v6  ;;  %v674_v30 = vld [vmem:[%s873_s0 + $0x34] ss:$12 sps:$4 sm:$0xff]   ;;  %v683_v33 = vld [vmem:[%s874_s3 + $0x28] sm:$0xff]   ;;  %v685_v35 = vld [vmem:[%s874_s3 + $0x38] sm:$0xff]  }
   0xc   :  { %558 = vmatprep.subr.bf16.mxu0 %v654_v7  ;;  %607 = vmatmul.mubr.msk.bf16.vlgmr.msra.gmra.mrb[0].mxu1 %vm229_vm1, %v669_v17  ;;  %v682_v32 = vld [vmem:[%s874_s3 + $0x20] sm:$0xff]   ;;  %v684_v34 = vld [vmem:[%s874_s3 + $0x30] sm:$0xff]  }
   0xd   :  { %610 = vmatprep.mubr.msk.bf16.mxu1 %vm687_vm0, %v686_v1  ;;  %619 = vmatpush3.bf16.msra.mxu1 %v678_v20  ;;  %v512_v45 = vld [vmem:[%s875_s2] ss:$0 sm:$0xff] }
   0xe   :  { %620 = vmatprep.subr.bf16.mxu1 %v686_v1 }
   0xf   :  { %559 = vmatpush3.bf16.msra.mxu0 %v655_v8 }
  0x10   :  { %560 = vmatprep.subr.bf16.mxu0 %v656_v9 }
  0x11   :  { %621 = vmatpush3.bf16.msra.mxu1 %v679_v22 }
  0x12   :  { %622 = vmatprep.subr.bf16.mxu1 %v686_v1 }
  0x13   :  { %561 = vmatpush3.bf16.msra.mxu0 %v657_v11 }
  0x14   :  { %562 = vmatprep.subr.bf16.mxu0 %v658_v12  ;;  %611 = vmatmul.mubr.msk.bf16.gmra.mrb[4].mxu1 %vm229_vm1, %v673_v24 }
  0x15   :  { %614 = vmatprep.mubr.msk.bf16.mxu1 %vm687_vm0, %v686_v1  ;;  %623 = vmatpush3.bf16.msra.mxu1 %v680_v26 }
  0x16   :  { %624 = vmatprep.subr.bf16.mxu1 %v686_v1 }
  0x17   :  { %563 = vmatpush3.bf16.msra.mxu0 %v659_v13 }
  0x18   :  { %564 = vmatprep.subr.bf16.mxu0 %v660_v14 }
  0x19   :  { %625 = vmatpush3.bf16.msra.mxu1 %v681_v27 }
  0x1a   :  { %626 = vmatprep.subr.bf16.mxu1 %v686_v1 }
  0x1b   :  { %565 = vmatpush3.bf16.msra.mxu0 %v661_v18 }
  0x1c   :  { %566 = vmatprep.subr.bf16.mxu0 %v663_v19  ;;  %615 = vmatmul.mubr.msk.bf16.gmra.mrb[8].mxu1 %vm229_vm1, %v677_v28 }
  0x1d   :  { %634 = vmatprep.mubr.msk.bf16.mxu1 %vm687_vm0, %v686_v1  ;;  %627 = vmatpush3.bf16.msra.mxu1 %v682_v32 }
  0x1e   :  { %628 = vmatprep.subr.bf16.mxu1 %v686_v1 }
  0x1f   :  { %567 = vmatpush3.bf16.msra.mxu0 %v664_v21 }
  0x21   :  { %629 = vmatpush3.bf16.msra.mxu1 %v683_v33 }
  0x22   :  { %272 = vmatmul.mubr.bf16.vlgmr.msra.gmra.mrb[0].mxu0 %v665_v23  ;;  %630 = vmatprep.subr.bf16.mxu1 %v686_v1 }
  0x23   :  { %279 = vmatprep.mubr.bf16.mxu0 %v670_v25 }
  0x25   :  { %631 = vmatpush3.bf16.msra.mxu1 %v684_v34 }
  0x26   :  { %632 = vmatprep.subr.bf16.mxu1 %v686_v1 }
  0x29   :  { %633 = vmatpush3.bf16.msra.mxu1 %v685_v35 }
  0x2a   :  { %280 = vmatmul.mubr.bf16.gmra.mrb[4].mxu0 %v672_v29 }
  0x2b   :  { %287 = vmatprep.mubr.bf16.mxu0 %v674_v30 }
  0x32   :  { %288 = vmatmul.mubr.bf16.gmra.mrb[8].mxu0 %v676_v31  ;;  %v543_v31 = vld [vmem:[%s876_s4] ss:$0 sm:$0xff] }
  0xdf   :  { %v330_v36 = vpop.f32.mrb[0].mxu1 }
  0xe0   :  { %v608_v37 = vpop.f32.mrb[1].mxu1 }
  0xe1   :  { %v333_v38 = vpop.f32.mrb[2].mxu1 }
  0xe2   :  { %v609_v39 = vpop.f32.mrb[3].mxu1 }
  0xe7   :  { %v338_v40 = vpop.f32.mrb[4].mxu1 }
  0xe8   :  { %v612_v41 = vpop.f32.mrb[5].mxu1 }
  0xe9   :  { %v341_v43 = vpop.f32.mrb[6].mxu1 }
  0xea   :  { %v613_v46 = vpop.f32.mrb[7].mxu1 }
  0xef   :  { %v346_v54 = vpop.f32.mrb[8].mxu1 }
  0xf0   :  { %v616_v55 = vpop.f32.mrb[9].mxu1 }
  0xf1   :  { %v349_v59 = vpop.f32.mrb[10].mxu1 }
  0xf2   :  { %v617_v61 = vpop.f32.mrb[11].mxu1 }
  0xf5   :  { %v568_v42 = vpop.f32.mrb[0].mxu0 }
  0xf6   :  { %v569_v44 = vpop.f32.mrb[1].mxu0 }
  0xf7   :  { %v570_v47 = vadd.f32 %v569_v44, %v568_v42  ;;  %v571_v48 = vpop.f32.mrb[2].mxu0 }
  0xf8   :  { %v572_v49 = vpop.f32.mrb[3].mxu0 }
  0xf9   :  { %v274_v50 = vadd.f32 %v570_v47, %v512_v45  ;;  %v573_v51 = vadd.f32 %v572_v49, %v571_v48 }
  0xfb   :  { %v331_v52 = vadd.f32 %v330_v36, %v274_v50  ;;  %v277_v53 = vadd.f32 %v573_v51, %v512_v45 }
  0xfd   :  { %v359_v56 = vmul.f32 0.2, %v331_v52  ;;  %v334_v57 = vadd.f32 %v333_v38, %v277_v53  ;;  %v574_v58 = vpop.f32.mrb[4].mxu0  ;;  %vm353_vm2 = vcmp.ge.f32.partialorder %v331_v52, 0.0 }
  0xfe   :  { %v575_v60 = vpop.f32.mrb[5].mxu0 }
  0xff   :  { %vm354_vm3 = vcmp.ge.f32.partialorder %v334_v57, 0.0  ;;  %v360_v62 = vmul.f32 0.2, %v334_v57  ;;  %v576_v63 = vadd.f32 %v575_v60, %v574_v58  ;;  %v577_v0 = vpop.f32.mrb[6].mxu0  ;;  %v365_v3 = vsel %vm353_vm2, %v331_v52, %v359_v56 }
 0x100   :  { %v578_v2 = vpop.f32.mrb[7].mxu0 }
 0x101   :  { %v366_v4 = vsel %vm354_vm3, %v334_v57, %v360_v62  ;;  %v282_v5 = vadd.f32 %v576_v63, %v512_v45  ;;  %v579_v6 = vadd.f32 %v578_v2, %v577_v0 }
 0x102   :  { %v371_v7 = vpack.c.bf16 %v366_v4, %v365_v3 }
 0x103   :  { %v339_v8 = vadd.f32 %v338_v40, %v282_v5  ;;  %v285_v9 = vadd.f32 %v579_v6, %v512_v45 }
 0x104   :  { %635 = vmatmul.mubr.bf16.vlgmr.msra.gmra.mrb[12].mxu1 %v371_v7 }
 0x105   :  { %v361_v10 = vmul.f32 0.2, %v339_v8  ;;  %v342_v11 = vadd.f32 %v341_v43, %v285_v9  ;;  %v580_v12 = vpop.f32.mrb[8].mxu0  ;;  %638 = vmatprep.mubr.msk.bf16.mxu1 %vm687_vm0, %v686_v1  ;;  %vm355_vm4 = vcmp.ge.f32.partialorder %v339_v8, 0.0 }
 0x106   :  { %v581_v13 = vpop.f32.mrb[9].mxu0 }
 0x107   :  { %vm356_vm5 = vcmp.ge.f32.partialorder %v342_v11, 0.0  ;;  %v362_v14 = vmul.f32 0.2, %v342_v11  ;;  %v582_v15 = vadd.f32 %v581_v13, %v580_v12  ;;  %v583_v16 = vpop.f32.mrb[10].mxu0  ;;  %v367_v20 = vsel %vm355_vm4, %v339_v8, %v361_v10 }
 0x108   :  { %v584_v17 = vpop.f32.mrb[11].mxu0 }
 0x109   :  { %v290_v18 = vadd.f32 %v582_v15, %v512_v45  ;;  %v585_v19 = vadd.f32 %v584_v17, %v583_v16  ;;  %v368_v21 = vsel %vm356_vm5, %v342_v11, %v362_v14 }
 0x10a   :  { %v372_v22 = vpack.c.bf16 %v368_v21, %v367_v20 }
 0x10b   :  { %v347_v23 = vadd.f32 %v346_v54, %v290_v18  ;;  %v293_v24 = vadd.f32 %v585_v19, %v512_v45 }
 0x10c   :  { %639 = vmatmul.mubr.bf16.gmra.mrb[16].mxu1 %v372_v22 }
 0x10d   :  { %v363_v25 = vmul.f32 0.2, %v347_v23  ;;  %v350_v26 = vadd.f32 %v349_v59, %v293_v24  ;;  %642 = vmatprep.mubr.msk.bf16.mxu1 %vm687_vm0, %v686_v1  ;;  %vm357_vm6 = vcmp.ge.f32.partialorder %v347_v23, 0.0 }
 0x10f   :  { %vm358_vm7 = vcmp.ge.f32.partialorder %v350_v26, 0.0  ;;  %v364_v27 = vmul.f32 0.2, %v350_v26  ;;  %v369_v28 = vsel %vm357_vm6, %v347_v23, %v363_v25 }
 0x111   :  { %v370_v29 = vsel %vm358_vm7, %v350_v26, %v364_v27 }
 0x112   :  { %v373_v30 = vpack.c.bf16 %v370_v29, %v369_v28 }
 0x114   :  { %643 = vmatmul.mubr.bf16.gmra.mrb[20].mxu1 %v373_v30 }
 0x1d7   :  { %v479_v32 = vpop.f32.mrb[12].mxu1 }
 0x1d8   :  { %v480_v33 = vadd.f32 %v543_v31, %v479_v32  ;;  %v636_v34 = vpop.f32.mrb[13].mxu1 }
 0x1d9   :  { %v482_v35 = vpop.f32.mrb[14].mxu1 }
 0x1da   :  { %502 = vst [vmem:[%s877_s5] sm:$0xff] %v480_v33  ;;  %v483_v1 = vadd.f32 %v543_v31, %v482_v35  ;;  %v637_v36 = vpop.f32.mrb[15].mxu1 }
 0x1dc   :  { %503 = vst [vmem:[%s877_s5 + $0x8] sm:$0xff] %v483_v1 }
 0x1df   :  { %v487_v37 = vpop.f32.mrb[16].mxu1 }
 0x1e0   :  { %v488_v38 = vadd.f32 %v543_v31, %v487_v37  ;;  %v640_v39 = vpop.f32.mrb[17].mxu1 }
 0x1e1   :  { %v490_v40 = vpop.f32.mrb[18].mxu1 }
 0x1e2   :  { %504 = vst [vmem:[%s877_s5 + $0x10] sm:$0xff] %v488_v38  ;;  %v491_v41 = vadd.f32 %v543_v31, %v490_v40  ;;  %v641_v42 = vpop.f32.mrb[19].mxu1 }
 0x1e4   :  { %505 = vst [vmem:[%s877_s5 + $0x18] sm:$0xff] %v491_v41 }
 0x1e7   :  { %v495_v43 = vpop.f32.mrb[20].mxu1 }
 0x1e8   :  { %v496_v44 = vadd.f32 %v543_v31, %v495_v43  ;;  %v644_v45 = vpop.f32.mrb[21].mxu1 }
 0x1e9   :  { %v498_v46 = vpop.f32.mrb[22].mxu1 }
 0x1ea   :  { %506 = vst [vmem:[%s877_s5 + $0x20] sm:$0xff] %v496_v44  ;;  %v499_v47 = vadd.f32 %v543_v31, %v498_v46  ;;  %v645_v48 = vpop.f32.mrb[23].mxu1 }
 0x1ec   :  { %507 = vst [vmem:[%s877_s5 + $0x28] sm:$0xff] %v499_v47 }

// kernel: _forward_impl.10
= control target key start
LH: loop header
LB: loop body
LE: loop exit
PB: predicated region body
PF: predicated region fallthrough
CT: control target
= control target key end

     0   :  { %s74_s0 = inlined_call_operand.vmem [shape: f32[4,128], index: 0, kind: input, shape index: {}]   ;;  %s75_s1 = inlined_call_operand.vmem [shape: f32[2,4,128], index: 1, kind: input, shape index: {}]   ;;  %s76_s2 = inlined_call_operand.vmem [shape: f32[2,4,128], index: 2, kind: input, shape index: {}]   ;;  %s77_s3 = inlined_call_operand.vmem [shape: f32[4,128], index: 3, kind: output, shape index: {}]  }
   0x1   :  { %v14_v0 = vld [vmem:[%s74_s0] sm:$0xf]  ;;  %v34_v5 = vld [vmem:[%s76_s2 + $0x4] sm:$0xf] }
   0x2   :  { %v15_v1 = vld [vmem:[%s76_s2] sm:$0xf]  ;;  %v35_v6 = vld [vmem:[%s75_s1 + $0x4] sm:$0xf]  ;;  %v23_v8 = vsub.f32 1.0, %v34_v5 }
   0x3   :  { %v18_v2 = vld [vmem:[%s75_s1] sm:$0xf]  ;;  %v16_v3 = vsub.f32 1.0, %v15_v1  ;;  %v27_v10 = vmul.f32 %v35_v6, %v34_v5 }
   0x4   :  { %v19_v4 = vmul.f32 %v18_v2, %v15_v1 }
   0x5   :  { %v17_v7 = vmul.f32 %v16_v3, %v14_v0 }
   0x7   :  { %v20_v9 = vadd.f32 %v19_v4, %v17_v7 }
   0x9   :  { %v24_v11 = vmul.f32 %v23_v8, %v20_v9 }
   0xb   :  { %v28_v12 = vadd.f32 %v27_v10, %v24_v11 }
   0xd   :  { %29 = vst [vmem:[%s77_s3] sm:$0xf] %v28_v12 }

// kernel: _forward_impl.11
= control target key start
LH: loop header
LB: loop body
LE: loop exit
PB: predicated region body
PF: predicated region fallthrough
CT: control target
= control target key end

     0   :  { %v363_v1 = vmov 0.0   ;;  %vm364_vm0 = vmmov 0   ;;  %vm185_vm1 = vcmask 261120   ;;  %s457_s1 = inlined_call_operand.vmem [shape: bf16[288,128], index: 1, kind: input, shape index: {}]   ;;  %s458_s0 = inlined_call_operand.vmem [shape: bf16[16,288], index: 0, kind: input, shape index: {}]   ;;  %s459_s2 = inlined_call_operand.vmem [shape: f32[1,128], index: 2, kind: input, shape index: {}]   ;;  %s460_s3 = inlined_call_operand.vmem [shape: f32[16,128], index: 3, kind: output, shape index: {}]  }
   0x1   :  { %v341_v0 = vld [vmem:[%s457_s1 + $0x40] sm:$0xff]   ;;  %331 = vmatprep.subr.bf16.mxu1 %v363_v1  ;;  %335 = vmatprep.mubr.msk.bf16.mxu1 %vm364_vm0, %v363_v1  ;;  %v343_v3 = vld [vmem:[%s457_s1 + $0x48] sm:$0xff]   ;;  %v345_v5 = vld [vmem:[%s457_s1 + $0x50] sm:$0xff]  }
   0x2   :  { %v342_v2 = vld [vmem:[%s457_s1] sm:$0xff]   ;;  %306 = vmatprep.subr.bf16.mxu0 %v341_v0  ;;  %v344_v4 = vld [vmem:[%s457_s1 + $0x8] sm:$0xff]   ;;  %v346_v6 = vld [vmem:[%s457_s1 + $0x10] sm:$0xff]  }
   0x3   :  { %307 = vmatpush3.bf16.msra.mxu0 %v342_v2  ;;  %v347_v7 = vld [vmem:[%s457_s1 + $0x58] sm:$0xff]   ;;  %v349_v9 = vld [vmem:[%s457_s1 + $0x60] sm:$0xff]   ;;  %v351_v12 = vld [vmem:[%s457_s1 + $0x68] sm:$0xff]  }
   0x4   :  { %308 = vmatprep.subr.bf16.mxu0 %v343_v3  ;;  %v348_v8 = vld [vmem:[%s457_s1 + $0x18] sm:$0xff]   ;;  %v355_v10 = vld [vmem:[%s457_s1 + $0x80] sm:$0xff]   ;;  %v352_v13 = vld [vmem:[%s457_s1 + $0x28] sm:$0xff]  }
   0x5   :  { %v350_v11 = vld [vmem:[%s457_s1 + $0x20] sm:$0xff]   ;;  %332 = vmatpush3.bf16.msra.mxu1 %v355_v10  ;;  %v361_v15 = vld [vmem:[%s457_s1 + $0x88] sm:$0xff]   ;;  %v353_v16 = vld [vmem:[%s457_s1 + $0x70] sm:$0xff]  }
   0x6   :  { %333 = vmatprep.subr.bf16.mxu1 %v363_v1  ;;  %v360_v14 = vld [vmem:[%s458_s0 + $0x4] ss:$12 sps:$4 sm:$0xff]   ;;  %v362_v17 = vld [vmem:[%s458_s0 + $0x8] ss:$12 sps:$4 sm:$0xff]   ;;  %v356_v19 = vld [vmem:[%s457_s1 + $0x78] sm:$0xff]  }
   0x7   :  { %309 = vmatpush3.bf16.msra.mxu0 %v344_v4  ;;  %221 = vmatprep.mubr.bf16.mxu0 %v360_v14  ;;  %v354_v18 = vld [vmem:[%s457_s1 + $0x30] sm:$0xff]   ;;  %v357_v20 = vld [vmem:[%s457_s1 + $0x38] sm:$0xff]   ;;  %v358_v21 = vld [vmem:[%s458_s0] ss:$12 sps:$4 sm:$0xff]  }
   0x8   :  { %310 = vmatprep.subr.bf16.mxu0 %v345_v5  ;;  %v283_v28 = vld [vmem:[%s459_s2] ss:$0 sm:$0xff] }
   0x9   :  { %334 = vmatpush3.bf16.msra.mxu1 %v361_v15 }
   0xb   :  { %311 = vmatpush3.bf16.msra.mxu0 %v346_v6 }
   0xc   :  { %312 = vmatprep.subr.bf16.mxu0 %v347_v7  ;;  %336 = vmatmul.mubr.msk.bf16.vlgmr.msra.gmra.mrb[0].mxu1 %vm185_vm1, %v362_v17 }
   0xf   :  { %313 = vmatpush3.bf16.msra.mxu0 %v348_v8 }
  0x10   :  { %314 = vmatprep.subr.bf16.mxu0 %v349_v9 }
  0x13   :  { %315 = vmatpush3.bf16.msra.mxu0 %v350_v11 }
  0x14   :  { %316 = vmatprep.subr.bf16.mxu0 %v351_v12 }
  0x17   :  { %317 = vmatpush3.bf16.msra.mxu0 %v352_v13 }
  0x18   :  { %318 = vmatprep.subr.bf16.mxu0 %v353_v16 }
  0x1b   :  { %319 = vmatpush3.bf16.msra.mxu0 %v354_v18 }
  0x1c   :  { %320 = vmatprep.subr.bf16.mxu0 %v356_v19 }
  0x1f   :  { %321 = vmatpush3.bf16.msra.mxu0 %v357_v20 }
  0x22   :  { %222 = vmatmul.mubr.bf16.vlgmr.msra.gmra.mrb[0].mxu0 %v358_v21 }
  0xdf   :  { %v264_v22 = vpop.f32.mrb[0].mxu1 }
  0xe0   :  { %v337_v23 = vpop.f32.mrb[1].mxu1 }
  0xe1   :  { %v267_v24 = vpop.f32.mrb[2].mxu1 }
  0xe2   :  { %v338_v25 = vpop.f32.mrb[3].mxu1 }
  0xf5   :  { %v322_v26 = vpop.f32.mrb[0].mxu0 }
  0xf6   :  { %v323_v27 = vpop.f32.mrb[1].mxu0 }
  0xf7   :  { %v324_v29 = vadd.f32 %v323_v27, %v322_v26  ;;  %v325_v30 = vpop.f32.mrb[2].mxu0 }
  0xf8   :  { %v326_v31 = vpop.f32.mrb[3].mxu0 }
  0xf9   :  { %v224_v32 = vadd.f32 %v324_v29, %v283_v28  ;;  %v327_v33 = vadd.f32 %v326_v31, %v325_v30 }
  0xfb   :  { %v265_v34 = vadd.f32 %v264_v22, %v224_v32  ;;  %v227_v35 = vadd.f32 %v327_v33, %v283_v28 }
  0xfd   :  { %vm271_vm2 = vcmp.ge.f32.partialorder %v265_v34, 0.0  ;;  %v273_v36 = vmul.f32 0.2, %v265_v34  ;;  %v268_v37 = vadd.f32 %v267_v24, %v227_v35 }
  0xff   :  { %v275_v38 = vsel %vm271_vm2, %v265_v34, %v273_v36  ;;  %vm272_vm3 = vcmp.ge.f32.partialorder %v268_v37, 0.0  ;;  %v274_v39 = vmul.f32 0.2, %v268_v37 }
 0x100   :  { %277 = vst [vmem:[%s460_s3] sm:$0xff] %v275_v38 }
 0x101   :  { %v276_v40 = vsel %vm272_vm3, %v268_v37, %v274_v39 }
 0x102   :  { %278 = vst [vmem:[%s460_s3 + $0x8] sm:$0xff] %v276_v40 }

// kernel: _forward_impl.12
= control target key start
LH: loop header
LB: loop body
LE: loop exit
PB: predicated region body
PF: predicated region fallthrough
CT: control target
= control target key end

     0   :  { %vm242_vm0 = vcmask 261120   ;;  %s705_s1 = inlined_call_operand.vmem [shape: bf16[288,128], index: 1, kind: input, shape index: {}]   ;;  %s706_s0 = inlined_call_operand.vmem [shape: bf16[64,288], index: 0, kind: input, shape index: {}]   ;;  %s707_s2 = inlined_call_operand.vmem [shape: f32[1,128], index: 2, kind: input, shape index: {}]   ;;  %s708_s3 = inlined_call_operand.vmem [shape: f32[64,128], index: 3, kind: output, shape index: {}]  }
   0x1   :  { %v530_v0 = vld [vmem:[%s705_s1 + $0x40] sm:$0xff]   ;;  %v532_v2 = vld [vmem:[%s705_s1 + $0x48] sm:$0xff]   ;;  %v534_v4 = vld [vmem:[%s705_s1 + $0x50] sm:$0xff]  }
   0x2   :  { %v531_v1 = vld [vmem:[%s705_s1] sm:$0xff]   ;;  %456 = vmatprep.subr.bf16.mxu0 %v530_v0  ;;  %514 = vmatprep.subr.bf16.mxu1 %v530_v0  ;;  %v533_v3 = vld [vmem:[%s705_s1 + $0x8] sm:$0xff]   ;;  %v535_v5 = vld [vmem:[%s705_s1 + $0x10] sm:$0xff]  }
   0x3   :  { %457 = vmatpush3.bf16.msra.mxu0 %v531_v1  ;;  %522 = vmatpush3.bf16.msra.mxu1 %v531_v1  ;;  %v536_v6 = vld [vmem:[%s705_s1 + $0x58] sm:$0xff]   ;;  %v538_v8 = vld [vmem:[%s705_s1 + $0x60] sm:$0xff]   ;;  %v540_v10 = vld [vmem:[%s705_s1 + $0x68] sm:$0xff]  }
   0x4   :  { %458 = vmatprep.subr.bf16.mxu0 %v532_v2  ;;  %515 = vmatprep.subr.bf16.mxu1 %v532_v2  ;;  %v537_v7 = vld [vmem:[%s705_s1 + $0x18] sm:$0xff]   ;;  %v539_v9 = vld [vmem:[%s705_s1 + $0x20] sm:$0xff]   ;;  %v541_v13 = vld [vmem:[%s705_s1 + $0x28] sm:$0xff]  }
   0x5   :  { %v548_v11 = vld [vmem:[%s706_s0 + $0x4] ss:$12 sps:$4 sm:$0xff]   ;;  %v551_v12 = vld [vmem:[%s706_s0 + $0x4c] ss:$12 sps:$4 sm:$0xff]   ;;  %v549_v20 = vld [vmem:[%s706_s0 + $0x48] ss:$12 sps:$4 sm:$0xff]  }
   0x6   :  { %v542_v14 = vld [vmem:[%s705_s1 + $0x70] sm:$0xff]   ;;  %287 = vmatprep.mubr.bf16.mxu0 %v548_v11  ;;  %311 = vmatprep.mubr.bf16.mxu1 %v551_v12  ;;  %v544_v16 = vld [vmem:[%s705_s1 + $0x78] sm:$0xff]   ;;  %v552_v18 = vld [vmem:[%s705_s1 + $0x80] sm:$0xff]  }
   0x7   :  { %459 = vmatpush3.bf16.msra.mxu0 %v533_v3  ;;  %523 = vmatpush3.bf16.msra.mxu1 %v533_v3  ;;  %v543_v15 = vld [vmem:[%s705_s1 + $0x30] sm:$0xff]   ;;  %v545_v17 = vld [vmem:[%s705_s1 + $0x38] sm:$0xff]   ;;  %v546_v19 = vld [vmem:[%s706_s0] ss:$12 sps:$4 sm:$0xff]  }
   0x8   :  { %460 = vmatprep.subr.bf16.mxu0 %v534_v4  ;;  %516 = vmatprep.subr.bf16.mxu1 %v534_v4  ;;  %v554_v21 = vld [vmem:[%s706_s0 + $0x1c] ss:$12 sps:$4 sm:$0xff]   ;;  %v557_v24 = vld [vmem:[%s706_s0 + $0x18] ss:$12 sps:$4 sm:$0xff]   ;;  %v558_v25 = vld [vmem:[%s706_s0 + $0x20] ss:$12 sps:$4 sm:$0xff]  }
   0x9   :  { %v553_v22 = vld [vmem:[%s705_s1 + $0x88] sm:$0xff]   ;;  %v559_v26 = vld [vmem:[%s706_s0 + $0x34] ss:$12 sps:$4 sm:$0xff]   ;;  %v561_v27 = vld [vmem:[%s706_s0 + $0x38] ss:$12 sps:$4 sm:$0xff]  }
   0xa   :  { %v556_v23 = vld [vmem:[%s706_s0 + $0x8] ss:$12 sps:$4 sm:$0xff]   ;;  %v562_v28 = vld [vmem:[%s706_s0 + $0x30] ss:$12 sps:$4 sm:$0xff]   ;;  %v421_v42 = vld [vmem:[%s707_s2] ss:$0 sm:$0xff] }
   0xb   :  { %461 = vmatpush3.bf16.msra.mxu0 %v535_v5  ;;  %524 = vmatpush3.bf16.msra.mxu1 %v535_v5  ;;  %v563_v29 = vld [vmem:[%s706_s0 + $0x50] ss:$12 sps:$4 sm:$0xff]  }
   0xc   :  { %462 = vmatprep.subr.bf16.mxu0 %v536_v6  ;;  %517 = vmatprep.subr.bf16.mxu1 %v536_v6 }
   0xf   :  { %463 = vmatpush3.bf16.msra.mxu0 %v537_v7  ;;  %525 = vmatpush3.bf16.msra.mxu1 %v537_v7 }
  0x10   :  { %464 = vmatprep.subr.bf16.mxu0 %v538_v8  ;;  %518 = vmatprep.subr.bf16.mxu1 %v538_v8 }
  0x13   :  { %465 = vmatpush3.bf16.msra.mxu0 %v539_v9  ;;  %526 = vmatpush3.bf16.msra.mxu1 %v539_v9 }
  0x14   :  { %466 = vmatprep.subr.bf16.mxu0 %v540_v10  ;;  %519 = vmatprep.subr.bf16.mxu1 %v540_v10 }
  0x17   :  { %467 = vmatpush3.bf16.msra.mxu0 %v541_v13  ;;  %527 = vmatpush3.bf16.msra.mxu1 %v541_v13 }
  0x18   :  { %468 = vmatprep.subr.bf16.mxu0 %v542_v14  ;;  %520 = vmatprep.subr.bf16.mxu1 %v542_v14 }
  0x1b   :  { %469 = vmatpush3.bf16.msra.mxu0 %v543_v15  ;;  %528 = vmatpush3.bf16.msra.mxu1 %v543_v15 }
  0x1c   :  { %470 = vmatprep.subr.bf16.mxu0 %v544_v16  ;;  %521 = vmatprep.subr.bf16.mxu1 %v544_v16 }
  0x1f   :  { %471 = vmatpush3.bf16.msra.mxu0 %v545_v17  ;;  %529 = vmatpush3.bf16.msra.mxu1 %v545_v17 }
  0x20   :  { %502 = vmatprep.subr.bf16.mxu1 %v552_v18 }
  0x22   :  { %288 = vmatmul.mubr.bf16.vlgmr.msra.gmra.mrb[0].mxu0 %v546_v19  ;;  %312 = vmatmul.mubr.bf16.vlgmr.msra.gmra.mrb[0].mxu1 %v549_v20 }
  0x23   :  { %503 = vmatpush3.bf16.msra.mxu1 %v552_v18  ;;  %295 = vmatprep.mubr.bf16.mxu0 %v554_v21 }
  0x24   :  { %504 = vmatprep.subr.bf16.mxu1 %v553_v22  ;;  %506 = vmatprep.mubr.msk.bf16.mxu1 %vm242_vm0, %v556_v23 }
  0x27   :  { %505 = vmatpush3.bf16.msra.mxu1 %v553_v22 }
  0x2a   :  { %296 = vmatmul.mubr.bf16.gmra.mrb[4].mxu0 %v557_v24  ;;  %507 = vmatmul.mubr.msk.bf16.vlgmr.msra.gmra.mrb[4].mxu1 %vm242_vm0, %v558_v25 }
  0x2b   :  { %303 = vmatprep.mubr.bf16.mxu0 %v559_v26  ;;  %510 = vmatprep.mubr.msk.bf16.mxu1 %vm242_vm0, %v561_v27 }
  0x32   :  { %304 = vmatmul.mubr.bf16.gmra.mrb[8].mxu0 %v562_v28  ;;  %511 = vmatmul.mubr.msk.bf16.gmra.mrb[8].mxu1 %vm242_vm0, %v563_v29 }
  0xf5   :  { %v472_v30 = vpop.f32.mrb[0].mxu0  ;;  %v490_v31 = vpop.f32.mrb[0].mxu1 }
  0xf6   :  { %v473_v32 = vpop.f32.mrb[1].mxu0  ;;  %v491_v33 = vpop.f32.mrb[1].mxu1 }
  0xf7   :  { %v474_v34 = vadd.f32 %v473_v32, %v472_v30  ;;  %v475_v35 = vpop.f32.mrb[2].mxu0  ;;  %v492_v36 = vadd.f32 %v491_v33, %v490_v31  ;;  %v493_v37 = vpop.f32.mrb[2].mxu1 }
  0xf8   :  { %v476_v38 = vpop.f32.mrb[3].mxu0  ;;  %v494_v39 = vpop.f32.mrb[3].mxu1 }
  0xf9   :  { %v477_v40 = vadd.f32 %v476_v38, %v475_v35  ;;  %v495_v41 = vadd.f32 %v494_v39, %v493_v37  ;;  %v290_v45 = vadd.f32 %v474_v34, %v421_v42  ;;  %v314_v63 = vadd.f32 %v492_v36, %v421_v42 }
  0xfb   :  { %v293_v53 = vadd.f32 %v477_v40, %v421_v42  ;;  %v317_v8 = vadd.f32 %v495_v41, %v421_v42 }
  0xfd   :  { %v478_v43 = vpop.f32.mrb[4].mxu0  ;;  %v508_v44 = vpop.f32.mrb[4].mxu1 }
  0xfe   :  { %v479_v46 = vpop.f32.mrb[5].mxu0  ;;  %v354_v47 = vpop.f32.mrb[5].mxu1 }
  0xff   :  { %v480_v48 = vadd.f32 %v479_v46, %v478_v43  ;;  %v355_v49 = vadd.f32 %v354_v47, %v290_v45  ;;  %v481_v50 = vpop.f32.mrb[6].mxu0  ;;  %v509_v51 = vpop.f32.mrb[6].mxu1 }
 0x100   :  { %v482_v52 = vpop.f32.mrb[7].mxu0  ;;  %v357_v54 = vpop.f32.mrb[7].mxu1 }
 0x101   :  { %v298_v55 = vadd.f32 %v480_v48, %v421_v42  ;;  %vm385_vm1 = vcmp.ge.f32.partialorder %v355_v49, 0.0  ;;  %v393_v56 = vmul.f32 0.2, %v355_v49  ;;  %v483_v57 = vadd.f32 %v482_v52, %v481_v50 }
 0x102   :  { %v358_v58 = vadd.f32 %v357_v54, %v293_v53 }
 0x103   :  { %v363_v59 = vadd.f32 %v508_v44, %v298_v55  ;;  %v401_v60 = vsel %vm385_vm1, %v355_v49, %v393_v56  ;;  %v301_v61 = vadd.f32 %v483_v57, %v421_v42 }
 0x104   :  { %409 = vst [vmem:[%s708_s3] sm:$0xff] %v401_v60  ;;  %vm386_vm2 = vcmp.ge.f32.partialorder %v358_v58, 0.0  ;;  %v394_v62 = vmul.f32 0.2, %v358_v58 }
 0x105   :  { %vm387_vm3 = vcmp.ge.f32.partialorder %v363_v59, 0.0  ;;  %v395_v0 = vmul.f32 0.2, %v363_v59  ;;  %v366_v1 = vadd.f32 %v509_v51, %v301_v61  ;;  %v484_v2 = vpop.f32.mrb[8].mxu0  ;;  %v512_v3 = vpop.f32.mrb[8].mxu1 }
 0x106   :  { %v402_v4 = vsel %vm386_vm2, %v358_v58, %v394_v62  ;;  %v379_v5 = vadd.f32 %v512_v3, %v314_v63  ;;  %v485_v6 = vpop.f32.mrb[9].mxu0  ;;  %v370_v7 = vpop.f32.mrb[9].mxu1 }
 0x107   :  { %v403_v9 = vsel %vm387_vm3, %v363_v59, %v395_v0  ;;  %vm388_vm4 = vcmp.ge.f32.partialorder %v366_v1, 0.0  ;;  %v396_v10 = vmul.f32 0.2, %v366_v1  ;;  %410 = vst [vmem:[%s708_s3 + $0x8] sm:$0xff] %v402_v4  ;;  %v486_v11 = vadd.f32 %v485_v6, %v484_v2  ;;  %v487_v12 = vpop.f32.mrb[10].mxu0  ;;  %v513_v13 = vpop.f32.mrb[10].mxu1 }
 0x108   :  { %411 = vst [vmem:[%s708_s3 + $0x10] sm:$0xff] %v403_v9  ;;  %vm391_vm5 = vcmp.ge.f32.partialorder %v379_v5, 0.0  ;;  %v399_v14 = vmul.f32 0.2, %v379_v5  ;;  %v382_v15 = vadd.f32 %v513_v13, %v317_v8  ;;  %v488_v16 = vpop.f32.mrb[11].mxu0  ;;  %v373_v17 = vpop.f32.mrb[11].mxu1 }
 0x109   :  { %v404_v18 = vsel %vm388_vm4, %v366_v1, %v396_v10  ;;  %v306_v19 = vadd.f32 %v486_v11, %v421_v42  ;;  %v489_v20 = vadd.f32 %v488_v16, %v487_v12 }
 0x10a   :  { %412 = vst [vmem:[%s708_s3 + $0x18] sm:$0xff] %v404_v18  ;;  %v407_v21 = vsel %vm391_vm5, %v379_v5, %v399_v14  ;;  %vm392_vm6 = vcmp.ge.f32.partialorder %v382_v15, 0.0  ;;  %v400_v22 = vmul.f32 0.2, %v382_v15 }
 0x10b   :  { %415 = vst [vmem:[%s708_s3 + $0x30] sm:$0xff] %v407_v21  ;;  %v371_v23 = vadd.f32 %v370_v7, %v306_v19  ;;  %v309_v24 = vadd.f32 %v489_v20, %v421_v42 }
 0x10c   :  { %v408_v25 = vsel %vm392_vm6, %v382_v15, %v400_v22 }
 0x10d   :  { %vm389_vm7 = vcmp.ge.f32.partialorder %v371_v23, 0.0  ;;  %v397_v26 = vmul.f32 0.2, %v371_v23  ;;  %416 = vst [vmem:[%s708_s3 + $0x38] sm:$0xff] %v408_v25  ;;  %v374_v27 = vadd.f32 %v373_v17, %v309_v24 }
 0x10f   :  { %v405_v28 = vsel %vm389_vm7, %v371_v23, %v397_v26  ;;  %vm390_vm8 = vcmp.ge.f32.partialorder %v374_v27, 0.0  ;;  %v398_v29 = vmul.f32 0.2, %v374_v27 }
 0x110   :  { %413 = vst [vmem:[%s708_s3 + $0x20] sm:$0xff] %v405_v28 }
 0x111   :  { %v406_v30 = vsel %vm390_vm8, %v374_v27, %v398_v29 }
 0x112   :  { %414 = vst [vmem:[%s708_s3 + $0x28] sm:$0xff] %v406_v30 }

// kernel: _forward_impl.13
= control target key start
LH: loop header
LB: loop body
LE: loop exit
PB: predicated region body
PF: predicated region fallthrough
CT: control target
= control target key end

     0   :  { %v1089_v0 = vmov 0   ;;  %vm276_vm0 = vcmask 130048   ;;  %s1489_s1 = inlined_call_operand.vmem [shape: bf16[144,128], index: 1, kind: input, shape index: {}]   ;;  %s1490_s0 = inlined_call_operand.vmem [shape: bf16[256,144], index: 0, kind: input, shape index: {}]   ;;  %s1491_s3 = inlined_call_operand.vmem [shape: bf16[128,128], index: 3, kind: input, shape index: {}]   ;;  %s1492_s2 = inlined_call_operand.vmem [shape: f32[1,128], index: 2, kind: input, shape index: {}]   ;;  %s1493_s4 = inlined_call_operand.vmem [shape: f32[1,128], index: 4, kind: input, shape index: {}]   ;;  %s1494_s5 = inlined_call_operand.vmem [shape: f32[256,128], index: 5, kind: output, shape index: {}]  }
   0x1   :  { %325 = vmatprep.subr.bf16.mxu0 %v1089_v0  ;;  %v1024_v1 = vld [vmem:[%s1489_s1] sm:$0xff]   ;;  %1005 = vmatprep.subr.bf16.mxu1 %v1089_v0  ;;  %v1025_v2 = vld [vmem:[%s1489_s1 + $0x8] sm:$0xff]   ;;  %v1026_v3 = vld [vmem:[%s1489_s1 + $0x10] sm:$0xff]  }
   0x2   :  { %326 = vmatpush1.bf16.msra.mxu0 %v1024_v1  ;;  %1014 = vmatpush1.bf16.msra.mxu1 %v1024_v1  ;;  %v1027_v4 = vld [vmem:[%s1489_s1 + $0x18] sm:$0xff]   ;;  %v1035_v5 = vld [vmem:[%s1490_s0 + $0x4] ss:$8 sps:$4 sm:$0xff]   ;;  %v1030_v8 = vld [vmem:[%s1489_s1 + $0x30] sm:$0xff]  }
   0x3   :  { %327 = vmatprep.subr.bf16.mxu0 %v1089_v0  ;;  %1006 = vmatprep.subr.bf16.mxu1 %v1089_v0  ;;  %v1028_v6 = vld [vmem:[%s1489_s1 + $0x20] sm:$0xff]   ;;  %v1029_v7 = vld [vmem:[%s1489_s1 + $0x28] sm:$0xff]   ;;  %v1031_v10 = vld [vmem:[%s1489_s1 + $0x38] sm:$0xff]  }
   0x4   :  { %908 = vmatprep.mubr.msk.bf16.mxu0 %vm276_vm0, %v1035_v5  ;;  %v1065_v9 = vld [vmem:[%s1490_s0 + $0xc4] ss:$8 sps:$4 sm:$0xff]   ;;  %v1033_v12 = vld [vmem:[%s1490_s0] ss:$8 sps:$4 sm:$0xff]   ;;  %v1036_v14 = vld [vmem:[%s1490_s0 + $0x14] ss:$8 sps:$4 sm:$0xff]  }
   0x5   :  { %920 = vmatprep.mubr.msk.bf16.mxu1 %vm276_vm0, %v1065_v9  ;;  %v1032_v11 = vld [vmem:[%s1489_s1 + $0x40] sm:$0xff]   ;;  %v1069_v16 = vld [vmem:[%s1490_s0 + $0xd4] ss:$8 sps:$4 sm:$0xff]   ;;  %v1082_v17 = vld [vmem:[%s1491_s3 + $0x8] sm:$0xff]  }
   0x6   :  { %328 = vmatpush1.bf16.msra.mxu0 %v1025_v2  ;;  %1015 = vmatpush1.bf16.msra.mxu1 %v1025_v2  ;;  %v1081_v13 = vld [vmem:[%s1491_s3] sm:$0xff]   ;;  %v1083_v18 = vld [vmem:[%s1491_s3 + $0x10] sm:$0xff]   ;;  %v1084_v23 = vld [vmem:[%s1491_s3 + $0x18] sm:$0xff]  }
   0x7   :  { %329 = vmatprep.subr.bf16.mxu0 %v1089_v0  ;;  %1007 = vmatprep.subr.bf16.mxu1 %v1089_v0  ;;  %v1063_v15 = vld [vmem:[%s1490_s0 + $0xc0] ss:$8 sps:$4 sm:$0xff]   ;;  %v1038_v19 = vld [vmem:[%s1490_s0 + $0x10] ss:$8 sps:$4 sm:$0xff]   ;;  %v1039_v21 = vld [vmem:[%s1490_s0 + $0x24] ss:$8 sps:$4 sm:$0xff]  }
   0x8   :  { %v1071_v20 = vld [vmem:[%s1490_s0 + $0xd0] ss:$8 sps:$4 sm:$0xff]   ;;  %v1075_v22 = vld [vmem:[%s1490_s0 + $0xe4] ss:$8 sps:$4 sm:$0xff]   ;;  %v1041_v24 = vld [vmem:[%s1490_s0 + $0x20] ss:$8 sps:$4 sm:$0xff]  }
   0x9   :  { %v1077_v25 = vld [vmem:[%s1490_s0 + $0xe0] ss:$8 sps:$4 sm:$0xff]   ;;  %v1042_v26 = vld [vmem:[%s1490_s0 + $0x34] ss:$8 sps:$4 sm:$0xff]   ;;  %v1044_v28 = vld [vmem:[%s1490_s0 + $0x30] ss:$8 sps:$4 sm:$0xff]  }
   0xa   :  { %330 = vmatpush1.bf16.msra.mxu0 %v1026_v3  ;;  %1016 = vmatpush1.bf16.msra.mxu1 %v1026_v3  ;;  %v1078_v27 = vld [vmem:[%s1490_s0 + $0xf4] ss:$8 sps:$4 sm:$0xff]   ;;  %v1080_v29 = vld [vmem:[%s1490_s0 + $0xf0] ss:$8 sps:$4 sm:$0xff]   ;;  %v1045_v30 = vld [vmem:[%s1490_s0 + $0x44] ss:$8 sps:$4 sm:$0xff]  }
   0xb   :  { %331 = vmatprep.subr.bf16.mxu0 %v1089_v0  ;;  %1008 = vmatprep.subr.bf16.mxu1 %v1089_v0  ;;  %v1047_v31 = vld [vmem:[%s1490_s0 + $0x40] ss:$8 sps:$4 sm:$0xff]   ;;  %v1048_v32 = vld [vmem:[%s1490_s0 + $0x54] ss:$8 sps:$4 sm:$0xff]   ;;  %v1050_v33 = vld [vmem:[%s1490_s0 + $0x50] ss:$8 sps:$4 sm:$0xff]  }
   0xc   :  { %v1051_v34 = vld [vmem:[%s1490_s0 + $0x64] ss:$8 sps:$4 sm:$0xff]   ;;  %v1053_v35 = vld [vmem:[%s1490_s0 + $0x60] ss:$8 sps:$4 sm:$0xff]   ;;  %v1054_v36 = vld [vmem:[%s1490_s0 + $0x74] ss:$8 sps:$4 sm:$0xff]  }
   0xd   :  { %v1056_v37 = vld [vmem:[%s1490_s0 + $0x70] ss:$8 sps:$4 sm:$0xff]   ;;  %v1057_v38 = vld [vmem:[%s1490_s0 + $0x84] ss:$8 sps:$4 sm:$0xff]   ;;  %v1059_v39 = vld [vmem:[%s1490_s0 + $0x80] ss:$8 sps:$4 sm:$0xff]  }
   0xe   :  { %332 = vmatpush1.bf16.msra.mxu0 %v1027_v4  ;;  %1017 = vmatpush1.bf16.msra.mxu1 %v1027_v4  ;;  %v1060_v40 = vld [vmem:[%s1490_s0 + $0x94] ss:$8 sps:$4 sm:$0xff]   ;;  %v1062_v41 = vld [vmem:[%s1490_s0 + $0x90] ss:$8 sps:$4 sm:$0xff]   ;;  %v1066_v42 = vld [vmem:[%s1490_s0 + $0xa4] ss:$8 sps:$4 sm:$0xff]  }
   0xf   :  { %333 = vmatprep.subr.bf16.mxu0 %v1089_v0  ;;  %1009 = vmatprep.subr.bf16.mxu1 %v1089_v0  ;;  %v1068_v43 = vld [vmem:[%s1490_s0 + $0xa0] ss:$8 sps:$4 sm:$0xff]   ;;  %v1072_v44 = vld [vmem:[%s1490_s0 + $0xb4] ss:$8 sps:$4 sm:$0xff]   ;;  %v1074_v46 = vld [vmem:[%s1490_s0 + $0xb0] ss:$8 sps:$4 sm:$0xff]  }
  0x10   :  { %v1085_v45 = vld [vmem:[%s1491_s3 + $0x20] sm:$0xff]   ;;  %v1086_v47 = vld [vmem:[%s1491_s3 + $0x28] sm:$0xff]   ;;  %v1087_v48 = vld [vmem:[%s1491_s3 + $0x30] sm:$0xff]  }
  0x11   :  { %v1088_v49 = vld [vmem:[%s1491_s3 + $0x38] sm:$0xff]   ;;  %v1286_v50 = vld [vmem:[%s1492_s2] ss:$0 sm:$0xff] }
  0x12   :  { %334 = vmatpush1.bf16.msra.mxu0 %v1028_v6  ;;  %1018 = vmatpush1.bf16.msra.mxu1 %v1028_v6 }
  0x13   :  { %335 = vmatprep.subr.bf16.mxu0 %v1089_v0  ;;  %1010 = vmatprep.subr.bf16.mxu1 %v1089_v0 }
  0x16   :  { %336 = vmatpush1.bf16.msra.mxu0 %v1029_v7  ;;  %1019 = vmatpush1.bf16.msra.mxu1 %v1029_v7 }
  0x17   :  { %337 = vmatprep.subr.bf16.mxu0 %v1089_v0  ;;  %1011 = vmatprep.subr.bf16.mxu1 %v1089_v0 }
  0x1a   :  { %338 = vmatpush1.bf16.msra.mxu0 %v1030_v8  ;;  %1020 = vmatpush1.bf16.msra.mxu1 %v1030_v8 }
  0x1b   :  { %339 = vmatprep.subr.bf16.mxu0 %v1089_v0  ;;  %1012 = vmatprep.subr.bf16.mxu1 %v1089_v0 }
  0x1e   :  { %340 = vmatpush1.bf16.msra.mxu0 %v1031_v10  ;;  %1021 = vmatpush1.bf16.msra.mxu1 %v1031_v10 }
  0x1f   :  { %341 = vmatprep.subr.bf16.mxu0 %v1089_v0  ;;  %1013 = vmatprep.subr.bf16.mxu1 %v1089_v0 }
  0x22   :  { %342 = vmatpush1.bf16.msra.mxu0 %v1032_v11  ;;  %1022 = vmatpush1.bf16.msra.mxu1 %v1032_v11 }
  0x23   :  { %957 = vmatprep.subr.bf16.mxu1 %v1081_v13 }
  0x25   :  { %358 = vmatmul.mubr.bf16.vlgmr.msra.gmra.mrb[0].mxu0 %v1033_v12  ;;  %454 = vmatmul.mubr.bf16.vlgmr.msra.gmra.mrb[0].mxu1 %v1063_v15 }
  0x26   :  { %909 = vmatprep.mubr.msk.bf16.mxu0 %vm276_vm0, %v1036_v14  ;;  %921 = vmatprep.mubr.msk.bf16.mxu1 %vm276_vm0, %v1069_v16 }
  0x27   :  { %958 = vmatpush3.bf16.msra.mxu1 %v1081_v13 }
  0x28   :  { %959 = vmatprep.subr.bf16.mxu1 %v1082_v17 }
  0x2b   :  { %960 = vmatpush3.bf16.msra.mxu1 %v1082_v17 }
  0x2c   :  { %961 = vmatprep.subr.bf16.mxu1 %v1083_v18 }
  0x2d   :  { %366 = vmatmul.mubr.bf16.gmra.mrb[4].mxu0 %v1038_v19  ;;  %462 = vmatmul.mubr.bf16.gmra.mrb[4].mxu1 %v1071_v20 }
  0x2e   :  { %910 = vmatprep.mubr.msk.bf16.mxu0 %vm276_vm0, %v1039_v21  ;;  %922 = vmatprep.mubr.msk.bf16.mxu1 %vm276_vm0, %v1075_v22 }
  0x2f   :  { %962 = vmatpush3.bf16.msra.mxu1 %v1083_v18 }
  0x30   :  { %963 = vmatprep.subr.bf16.mxu1 %v1084_v23 }
  0x33   :  { %964 = vmatpush3.bf16.msra.mxu1 %v1084_v23 }
  0x34   :  { %965 = vmatprep.subr.bf16.mxu1 %v1085_v45 }
  0x35   :  { %374 = vmatmul.mubr.bf16.gmra.mrb[8].mxu0 %v1041_v24  ;;  %470 = vmatmul.mubr.bf16.gmra.mrb[8].mxu1 %v1077_v25 }
  0x36   :  { %911 = vmatprep.mubr.msk.bf16.mxu0 %vm276_vm0, %v1042_v26  ;;  %923 = vmatprep.mubr.msk.bf16.mxu1 %vm276_vm0, %v1078_v27 }
  0x37   :  { %966 = vmatpush3.bf16.msra.mxu1 %v1085_v45 }
  0x38   :  { %967 = vmatprep.subr.bf16.mxu1 %v1086_v47 }
  0x3b   :  { %968 = vmatpush3.bf16.msra.mxu1 %v1086_v47 }
  0x3c   :  { %969 = vmatprep.subr.bf16.mxu1 %v1087_v48 }
  0x3d   :  { %382 = vmatmul.mubr.bf16.gmra.mrb[12].mxu0 %v1044_v28  ;;  %478 = vmatmul.mubr.bf16.gmra.mrb[12].mxu1 %v1080_v29 }
  0x3e   :  { %912 = vmatprep.mubr.msk.bf16.mxu0 %vm276_vm0, %v1045_v30 }
  0x3f   :  { %970 = vmatpush3.bf16.msra.mxu1 %v1087_v48 }
  0x40   :  { %971 = vmatprep.subr.bf16.mxu1 %v1088_v49 }
  0x43   :  { %972 = vmatpush3.bf16.msra.mxu1 %v1088_v49 }
  0x45   :  { %390 = vmatmul.mubr.bf16.gmra.mrb[16].mxu0 %v1047_v31 }
  0x46   :  { %913 = vmatprep.mubr.msk.bf16.mxu0 %vm276_vm0, %v1048_v32 }
  0x4d   :  { %398 = vmatmul.mubr.bf16.gmra.mrb[20].mxu0 %v1050_v33 }
  0x4e   :  { %914 = vmatprep.mubr.msk.bf16.mxu0 %vm276_vm0, %v1051_v34 }
  0x55   :  { %406 = vmatmul.mubr.bf16.gmra.mrb[24].mxu0 %v1053_v35 }
  0x56   :  { %915 = vmatprep.mubr.msk.bf16.mxu0 %vm276_vm0, %v1054_v36 }
  0x5d   :  { %414 = vmatmul.mubr.bf16.gmra.mrb[28].mxu0 %v1056_v37 }
  0x5e   :  { %916 = vmatprep.mubr.msk.bf16.mxu0 %vm276_vm0, %v1057_v38 }
  0x65   :  { %422 = vmatmul.mubr.bf16.gmra.mrb[32].mxu0 %v1059_v39 }
  0x66   :  { %917 = vmatprep.mubr.msk.bf16.mxu0 %vm276_vm0, %v1060_v40 }
  0x6d   :  { %430 = vmatmul.mubr.bf16.gmra.mrb[36].mxu0 %v1062_v41 }
  0x6e   :  { %918 = vmatprep.mubr.msk.bf16.mxu0 %vm276_vm0, %v1066_v42 }
  0x75   :  { %438 = vmatmul.mubr.bf16.gmra.mrb[40].mxu0 %v1068_v43 }
  0x76   :  { %919 = vmatprep.mubr.msk.bf16.mxu0 %vm276_vm0, %v1072_v44 }
  0x7d   :  { %446 = vmatmul.mubr.bf16.gmra.mrb[44].mxu0 %v1074_v46 }
  0xf8   :  { %v359_v51 = vpop.f32.mrb[0].mxu0  ;;  %v455_v52 = vpop.f32.mrb[0].mxu1 }
  0xf9   :  { %v360_v53 = vadd.f32 %v1286_v50, %v359_v51  ;;  %v361_v54 = vpop.f32.mrb[1].mxu0  ;;  %v456_v55 = vadd.f32 %v1286_v50, %v455_v52  ;;  %v457_v56 = vpop.f32.mrb[1].mxu1 }
  0xfa   :  { %v362_v57 = vpop.f32.mrb[2].mxu0  ;;  %v458_v58 = vpop.f32.mrb[2].mxu1 }
  0xfb   :  { %v518_v59 = vmul.f32 0.2, %v360_v53  ;;  %v363_v60 = vadd.f32 %v1286_v50, %v362_v57  ;;  %v364_v61 = vpop.f32.mrb[3].mxu0  ;;  %vm510_vm1 = vcmp.ge.f32.partialorder %v456_v55, 0.0  ;;  %v460_v62 = vpop.f32.mrb[3].mxu1  ;;  %vm486_vm2 = vcmp.ge.f32.partialorder %v360_v53, 0.0 }
  0xfc   :  { %v542_v63 = vmul.f32 0.2, %v456_v55  ;;  %v459_v0 = vadd.f32 %v1286_v50, %v458_v58 }
  0xfd   :  { %vm487_vm3 = vcmp.ge.f32.partialorder %v363_v60, 0.0  ;;  %v519_v1 = vmul.f32 0.2, %v363_v60  ;;  %v550_v4 = vsel %vm486_vm2, %v360_v53, %v518_v59 }
  0xfe   :  { %vm511_vm4 = vcmp.ge.f32.partialorder %v459_v0, 0.0  ;;  %v543_v2 = vmul.f32 0.2, %v459_v0  ;;  %v1292_v3 = vsel %vm510_vm1, %v456_v55, %v542_v63 }
  0xff   :  { %v551_v5 = vsel %vm487_vm3, %v363_v60, %v519_v1 }
 0x100   :  { %v367_v6 = vpop.f32.mrb[4].mxu0  ;;  %v582_v7 = vpack.c.bf16 %v551_v5, %v550_v4  ;;  %v463_v8 = vpop.f32.mrb[4].mxu1  ;;  %v1294_v9 = vsel %vm511_vm4, %v459_v0, %v543_v2 }
 0x101   :  { %v368_v10 = vadd.f32 %v1286_v50, %v367_v6  ;;  %v369_v11 = vpop.f32.mrb[5].mxu0  ;;  %v464_v12 = vadd.f32 %v1286_v50, %v463_v8  ;;  %v465_v13 = vpop.f32.mrb[5].mxu1  ;;  %v594_v14 = vpack.c.bf16 %v1294_v9, %v1292_v3 }
 0x102   :  { %v370_v15 = vpop.f32.mrb[6].mxu0  ;;  %973 = vmatprep.mubr.bf16.mxu1 %v582_v7  ;;  %v466_v16 = vpop.f32.mrb[6].mxu1 }
 0x103   :  { %v520_v17 = vmul.f32 0.2, %v368_v10  ;;  %v371_v18 = vadd.f32 %v1286_v50, %v370_v15  ;;  %v372_v19 = vpop.f32.mrb[7].mxu0  ;;  %vm512_vm5 = vcmp.ge.f32.partialorder %v464_v12, 0.0  ;;  %v468_v20 = vpop.f32.mrb[7].mxu1  ;;  %vm488_vm6 = vcmp.ge.f32.partialorder %v368_v10, 0.0 }
 0x104   :  { %v544_v21 = vmul.f32 0.2, %v464_v12  ;;  %v467_v22 = vadd.f32 %v1286_v50, %v466_v16 }
 0x105   :  { %vm489_vm7 = vcmp.ge.f32.partialorder %v371_v18, 0.0  ;;  %v521_v23 = vmul.f32 0.2, %v371_v18  ;;  %v552_v26 = vsel %vm488_vm6, %v368_v10, %v520_v17 }
 0x106   :  { %vm513_vm8 = vcmp.ge.f32.partialorder %v467_v22, 0.0  ;;  %v545_v24 = vmul.f32 0.2, %v467_v22  ;;  %v1302_v25 = vsel %vm512_vm5, %v464_v12, %v544_v21 }
 0x107   :  { %v553_v27 = vsel %vm489_vm7, %v371_v18, %v521_v23 }
 0x108   :  { %v583_v28 = vpack.c.bf16 %v553_v27, %v552_v26  ;;  %v375_v29 = vpop.f32.mrb[8].mxu0  ;;  %v471_v30 = vpop.f32.mrb[8].mxu1  ;;  %v1304_v31 = vsel %vm513_vm8, %v467_v22, %v545_v24 }
 0x109   :  { %v376_v32 = vadd.f32 %v1286_v50, %v375_v29  ;;  %v377_v33 = vpop.f32.mrb[9].mxu0  ;;  %v472_v34 = vadd.f32 %v1286_v50, %v471_v30  ;;  %v473_v35 = vpop.f32.mrb[9].mxu1  ;;  %v595_v36 = vpack.c.bf16 %v1304_v31, %v1302_v25 }
 0x10a   :  { %v378_v37 = vpop.f32.mrb[10].mxu0  ;;  %974 = vmatmul.mubr.bf16.vlgmr.msra.gmra.mrb[16].mxu1 %v583_v28  ;;  %v474_v38 = vpop.f32.mrb[10].mxu1 }
 0x10b   :  { %v522_v39 = vmul.f32 0.2, %v376_v32  ;;  %v379_v40 = vadd.f32 %v1286_v50, %v378_v37  ;;  %v380_v41 = vpop.f32.mrb[11].mxu0  ;;  %vm514_vm9 = vcmp.ge.f32.partialorder %v472_v34, 0.0  ;;  %v476_v42 = vpop.f32.mrb[11].mxu1  ;;  %vm490_vm10 = vcmp.ge.f32.partialorder %v376_v32, 0.0 }
 0x10c   :  { %v546_v43 = vmul.f32 0.2, %v472_v34  ;;  %v475_v44 = vadd.f32 %v1286_v50, %v474_v38 }
 0x10d   :  { %vm491_vm11 = vcmp.ge.f32.partialorder %v379_v40, 0.0  ;;  %v523_v45 = vmul.f32 0.2, %v379_v40  ;;  %v554_v48 = vsel %vm490_vm10, %v376_v32, %v522_v39 }
 0x10e   :  { %vm515_vm12 = vcmp.ge.f32.partialorder %v475_v44, 0.0  ;;  %v547_v46 = vmul.f32 0.2, %v475_v44  ;;  %v1312_v47 = vsel %vm514_vm9, %v472_v34, %v546_v43 }
 0x10f   :  { %v555_v49 = vsel %vm491_vm11, %v379_v40, %v523_v45 }
 0x110   :  { %v383_v51 = vpop.f32.mrb[12].mxu0  ;;  %v584_v52 = vpack.c.bf16 %v555_v49, %v554_v48  ;;  %v479_v53 = vpop.f32.mrb[12].mxu1  ;;  %v1314_v54 = vsel %vm515_vm12, %v475_v44, %v547_v46 }
 0x111   :  { %v384_v55 = vadd.f32 %v1286_v50, %v383_v51  ;;  %v385_v56 = vpop.f32.mrb[13].mxu0  ;;  %v480_v57 = vadd.f32 %v1286_v50, %v479_v53  ;;  %v481_v58 = vpop.f32.mrb[13].mxu1  ;;  %v596_v59 = vpack.c.bf16 %v1314_v54, %v1312_v47 }
 0x112   :  { %v386_v60 = vpop.f32.mrb[14].mxu0  ;;  %977 = vmatprep.mubr.bf16.mxu1 %v584_v52  ;;  %v482_v61 = vpop.f32.mrb[14].mxu1 }
 0x113   :  { %v524_v62 = vmul.f32 0.2, %v384_v55  ;;  %v387_v63 = vadd.f32 %v1286_v50, %v386_v60  ;;  %v388_v0 = vpop.f32.mrb[15].mxu0  ;;  %vm516_vm13 = vcmp.ge.f32.partialorder %v480_v57, 0.0  ;;  %v484_v1 = vpop.f32.mrb[15].mxu1  ;;  %vm492_vm14 = vcmp.ge.f32.partialorder %v384_v55, 0.0 }
 0x114   :  { %v548_v2 = vmul.f32 0.2, %v480_v57  ;;  %v483_v4 = vadd.f32 %v1286_v50, %v482_v61 }
 0x115   :  { %vm493_vm15 = vcmp.ge.f32.partialorder %v387_v63, 0.0  ;;  %v525_v5 = vmul.f32 0.2, %v387_v63  ;;  %v556_v8 = vsel %vm492_vm14, %v384_v55, %v524_v62 }
 0x116   :  { %vm517_vm0 = vcmp.ge.f32.partialorder %v483_v4, 0.0  ;;  %v549_v6 = vmul.f32 0.2, %v483_v4  ;;  %v1322_v7 = vsel %vm516_vm13, %v480_v57, %v548_v2 }
 0x117   :  { %v557_v10 = vsel %vm493_vm15, %v387_v63, %v525_v5 }
 0x118   :  { %v391_v11 = vpop.f32.mrb[16].mxu0  ;;  %v585_v12 = vpack.c.bf16 %v557_v10, %v556_v8  ;;  %v1324_v13 = vsel %vm517_vm0, %v483_v4, %v549_v6 }
 0x119   :  { %v392_v15 = vadd.f32 %v1286_v50, %v391_v11  ;;  %v393_v16 = vpop.f32.mrb[17].mxu0  ;;  %v597_v17 = vpack.c.bf16 %v1324_v13, %v1322_v7 }
 0x11a   :  { %v394_v18 = vpop.f32.mrb[18].mxu0  ;;  %978 = vmatmul.mubr.bf16.gmra.mrb[20].mxu1 %v585_v12 }
 0x11b   :  { %v526_v19 = vmul.f32 0.2, %v392_v15  ;;  %v395_v20 = vadd.f32 %v1286_v50, %v394_v18  ;;  %v396_v21 = vpop.f32.mrb[19].mxu0  ;;  %vm494_vm1 = vcmp.ge.f32.partialorder %v392_v15, 0.0 }
 0x11d   :  { %vm495_vm2 = vcmp.ge.f32.partialorder %v395_v20, 0.0  ;;  %v527_v22 = vmul.f32 0.2, %v395_v20  ;;  %v558_v23 = vsel %vm494_vm1, %v392_v15, %v526_v19 }
 0x11f   :  { %v559_v24 = vsel %vm495_vm2, %v395_v20, %v527_v22 }
 0x120   :  { %v399_v26 = vpop.f32.mrb[20].mxu0  ;;  %v586_v27 = vpack.c.bf16 %v559_v24, %v558_v23 }
 0x121   :  { %v400_v28 = vadd.f32 %v1286_v50, %v399_v26  ;;  %v401_v29 = vpop.f32.mrb[21].mxu0 }
 0x122   :  { %v402_v30 = vpop.f32.mrb[22].mxu0  ;;  %981 = vmatprep.mubr.bf16.mxu1 %v586_v27 }
 0x123   :  { %v528_v32 = vmul.f32 0.2, %v400_v28  ;;  %v403_v33 = vadd.f32 %v1286_v50, %v402_v30  ;;  %v404_v34 = vpop.f32.mrb[23].mxu0  ;;  %vm496_vm3 = vcmp.ge.f32.partialorder %v400_v28, 0.0 }
 0x125   :  { %vm497_vm4 = vcmp.ge.f32.partialorder %v403_v33, 0.0  ;;  %v529_v35 = vmul.f32 0.2, %v403_v33  ;;  %v560_v37 = vsel %vm496_vm3, %v400_v28, %v528_v32 }
 0x127   :  { %v561_v38 = vsel %vm497_vm4, %v403_v33, %v529_v35 }
 0x128   :  { %v407_v39 = vpop.f32.mrb[24].mxu0  ;;  %v587_v40 = vpack.c.bf16 %v561_v38, %v560_v37 }
 0x129   :  { %v408_v41 = vadd.f32 %v1286_v50, %v407_v39  ;;  %v409_v42 = vpop.f32.mrb[25].mxu0 }
 0x12a   :  { %v410_v43 = vpop.f32.mrb[26].mxu0  ;;  %982 = vmatmul.mubr.bf16.gmra.mrb[24].mxu1 %v587_v40 }
 0x12b   :  { %v530_v44 = vmul.f32 0.2, %v408_v41  ;;  %v411_v45 = vadd.f32 %v1286_v50, %v410_v43  ;;  %v412_v46 = vpop.f32.mrb[27].mxu0  ;;  %vm498_vm5 = vcmp.ge.f32.partialorder %v408_v41, 0.0 }
 0x12d   :  { %vm499_vm6 = vcmp.ge.f32.partialorder %v411_v45, 0.0  ;;  %v531_v48 = vmul.f32 0.2, %v411_v45  ;;  %v562_v49 = vsel %vm498_vm5, %v408_v41, %v530_v44 }
 0x12f   :  { %v563_v51 = vsel %vm499_vm6, %v411_v45, %v531_v48 }
 0x130   :  { %v415_v52 = vpop.f32.mrb[28].mxu0  ;;  %v588_v53 = vpack.c.bf16 %v563_v51, %v562_v49 }
 0x131   :  { %v416_v55 = vadd.f32 %v1286_v50, %v415_v52  ;;  %v417_v56 = vpop.f32.mrb[29].mxu0 }
 0x132   :  { %v418_v57 = vpop.f32.mrb[30].mxu0  ;;  %985 = vmatprep.mubr.bf16.mxu1 %v588_v53 }
 0x133   :  { %v532_v58 = vmul.f32 0.2, %v416_v55  ;;  %v419_v60 = vadd.f32 %v1286_v50, %v418_v57  ;;  %v420_v61 = vpop.f32.mrb[31].mxu0  ;;  %vm500_vm7 = vcmp.ge.f32.partialorder %v416_v55, 0.0 }
 0x135   :  { %vm501_vm8 = vcmp.ge.f32.partialorder %v419_v60, 0.0  ;;  %v533_v62 = vmul.f32 0.2, %v419_v60  ;;  %v564_v63 = vsel %vm500_vm7, %v416_v55, %v532_v58 }
 0x137   :  { %v565_v0 = vsel %vm501_vm8, %v419_v60, %v533_v62 }
 0x138   :  { %v423_v1 = vpop.f32.mrb[32].mxu0  ;;  %v589_v2 = vpack.c.bf16 %v565_v0, %v564_v63 }
 0x139   :  { %v424_v4 = vadd.f32 %v1286_v50, %v423_v1  ;;  %v425_v5 = vpop.f32.mrb[33].mxu0 }
 0x13a   :  { %v426_v6 = vpop.f32.mrb[34].mxu0  ;;  %986 = vmatmul.mubr.bf16.gmra.mrb[28].mxu1 %v589_v2 }
 0x13b   :  { %v534_v8 = vmul.f32 0.2, %v424_v4  ;;  %v427_v10 = vadd.f32 %v1286_v50, %v426_v6  ;;  %v428_v11 = vpop.f32.mrb[35].mxu0  ;;  %vm502_vm9 = vcmp.ge.f32.partialorder %v424_v4, 0.0 }
 0x13d   :  { %vm503_vm10 = vcmp.ge.f32.partialorder %v427_v10, 0.0  ;;  %v535_v12 = vmul.f32 0.2, %v427_v10  ;;  %v566_v15 = vsel %vm502_vm9, %v424_v4, %v534_v8 }
 0x13f   :  { %v567_v16 = vsel %vm503_vm10, %v427_v10, %v535_v12 }
 0x140   :  { %v431_v18 = vpop.f32.mrb[36].mxu0  ;;  %v590_v19 = vpack.c.bf16 %v567_v16, %v566_v15 }
 0x141   :  { %v432_v20 = vadd.f32 %v1286_v50, %v431_v18  ;;  %v433_v21 = vpop.f32.mrb[37].mxu0 }
 0x142   :  { %v434_v22 = vpop.f32.mrb[38].mxu0  ;;  %989 = vmatprep.mubr.bf16.mxu1 %v590_v19 }
 0x143   :  { %v536_v23 = vmul.f32 0.2, %v432_v20  ;;  %v435_v24 = vadd.f32 %v1286_v50, %v434_v22  ;;  %v436_v26 = vpop.f32.mrb[39].mxu0  ;;  %vm504_vm11 = vcmp.ge.f32.partialorder %v432_v20, 0.0 }
 0x145   :  { %vm505_vm12 = vcmp.ge.f32.partialorder %v435_v24, 0.0  ;;  %v537_v27 = vmul.f32 0.2, %v435_v24  ;;  %v568_v28 = vsel %vm504_vm11, %v432_v20, %v536_v23 }
 0x147   :  { %v569_v29 = vsel %vm505_vm12, %v435_v24, %v537_v27 }
 0x148   :  { %v439_v30 = vpop.f32.mrb[40].mxu0  ;;  %v591_v32 = vpack.c.bf16 %v569_v29, %v568_v28 }
 0x149   :  { %v440_v33 = vadd.f32 %v1286_v50, %v439_v30  ;;  %v441_v34 = vpop.f32.mrb[41].mxu0 }
 0x14a   :  { %v442_v35 = vpop.f32.mrb[42].mxu0  ;;  %990 = vmatmul.mubr.bf16.gmra.mrb[32].mxu1 %v591_v32 }
 0x14b   :  { %v538_v37 = vmul.f32 0.2, %v440_v33  ;;  %v443_v38 = vadd.f32 %v1286_v50, %v442_v35  ;;  %v444_v39 = vpop.f32.mrb[43].mxu0  ;;  %vm506_vm13 = vcmp.ge.f32.partialorder %v440_v33, 0.0 }
 0x14d   :  { %vm507_vm14 = vcmp.ge.f32.partialorder %v443_v38, 0.0  ;;  %v539_v40 = vmul.f32 0.2, %v443_v38  ;;  %v570_v41 = vsel %vm506_vm13, %v440_v33, %v538_v37 }
 0x14f   :  { %v571_v42 = vsel %vm507_vm14, %v443_v38, %v539_v40 }
 0x150   :  { %v447_v43 = vpop.f32.mrb[44].mxu0  ;;  %v592_v44 = vpack.c.bf16 %v571_v42, %v570_v41 }
 0x151   :  { %v448_v45 = vadd.f32 %v1286_v50, %v447_v43  ;;  %v449_v46 = vpop.f32.mrb[45].mxu0 }
 0x152   :  { %v450_v48 = vpop.f32.mrb[46].mxu0  ;;  %993 = vmatprep.mubr.bf16.mxu1 %v592_v44 }
 0x153   :  { %v540_v49 = vmul.f32 0.2, %v448_v45  ;;  %v451_v51 = vadd.f32 %v1286_v50, %v450_v48  ;;  %v452_v52 = vpop.f32.mrb[47].mxu0  ;;  %vm508_vm15 = vcmp.ge.f32.partialorder %v448_v45, 0.0  ;;  %v1359_v50 = vld [vmem:[%s1493_s4] ss:$0 sm:$0xff] }
 0x155   :  { %vm509_vm0 = vcmp.ge.f32.partialorder %v451_v51, 0.0  ;;  %v541_v53 = vmul.f32 0.2, %v451_v51  ;;  %v572_v55 = vsel %vm508_vm15, %v448_v45, %v540_v49 }
 0x157   :  { %v573_v56 = vsel %vm509_vm0, %v451_v51, %v541_v53 }
 0x158   :  { %v593_v57 = vpack.c.bf16 %v573_v56, %v572_v55 }
 0x15a   :  { %994 = vmatmul.mubr.bf16.gmra.mrb[36].mxu1 %v593_v57 }
 0x15b   :  { %997 = vmatprep.mubr.bf16.mxu1 %v594_v14 }
 0x162   :  { %998 = vmatmul.mubr.bf16.gmra.mrb[40].mxu1 %v595_v36 }
 0x163   :  { %1001 = vmatprep.mubr.bf16.mxu1 %v596_v59 }
 0x16a   :  { %1002 = vmatmul.mubr.bf16.gmra.mrb[44].mxu1 %v597_v17 }
 0x1dd   :  { %v975_v58 = vpop.f32.mrb[16].mxu1 }
 0x1de   :  { %v712_v3 = vadd.f32 %v975_v58, %v1359_v50  ;;  %v703_v9 = vpop.f32.mrb[17].mxu1 }
 0x1df   :  { %v704_v14 = vadd.f32 %v1359_v50, %v703_v9  ;;  %v976_v25 = vpop.f32.mrb[18].mxu1 }
 0x1e0   :  { %832 = vst [vmem:[%s1494_s5 + $0x10] sm:$0xff] %v712_v3  ;;  %v715_v31 = vadd.f32 %v976_v25, %v1359_v50  ;;  %v706_v36 = vpop.f32.mrb[19].mxu1 }
 0x1e1   :  { %830 = vst [vmem:[%s1494_s5] sm:$0xff] %v704_v14  ;;  %v707_v47 = vadd.f32 %v1359_v50, %v706_v36 }
 0x1e2   :  { %833 = vst [vmem:[%s1494_s5 + $0x18] sm:$0xff] %v715_v31 }
 0x1e3   :  { %831 = vst [vmem:[%s1494_s5 + $0x8] sm:$0xff] %v707_v47 }
 0x1ed   :  { %v979_v54 = vpop.f32.mrb[20].mxu1 }
 0x1ee   :  { %v728_v59 = vadd.f32 %v979_v54, %v1359_v50  ;;  %v719_v7 = vpop.f32.mrb[21].mxu1 }
 0x1ef   :  { %v720_v13 = vadd.f32 %v1359_v50, %v719_v7  ;;  %v980_v17 = vpop.f32.mrb[22].mxu1 }
 0x1f0   :  { %836 = vst [vmem:[%s1494_s5 + $0x30] sm:$0xff] %v728_v59  ;;  %v731_v60 = vadd.f32 %v980_v17, %v1359_v50  ;;  %v722_v61 = vpop.f32.mrb[23].mxu1 }
 0x1f1   :  { %834 = vst [vmem:[%s1494_s5 + $0x20] sm:$0xff] %v720_v13  ;;  %v723_v62 = vadd.f32 %v1359_v50, %v722_v61 }
 0x1f2   :  { %837 = vst [vmem:[%s1494_s5 + $0x38] sm:$0xff] %v731_v60 }
 0x1f3   :  { %835 = vst [vmem:[%s1494_s5 + $0x28] sm:$0xff] %v723_v62 }
 0x1fd   :  { %v983_v63 = vpop.f32.mrb[24].mxu1 }
 0x1fe   :  { %v744_v0 = vadd.f32 %v983_v63, %v1359_v50  ;;  %v735_v1 = vpop.f32.mrb[25].mxu1 }
 0x1ff   :  { %v736_v2 = vadd.f32 %v1359_v50, %v735_v1  ;;  %v984_v4 = vpop.f32.mrb[26].mxu1 }
 0x200   :  { %840 = vst [vmem:[%s1494_s5 + $0x50] sm:$0xff] %v744_v0  ;;  %v747_v5 = vadd.f32 %v984_v4, %v1359_v50  ;;  %v738_v6 = vpop.f32.mrb[27].mxu1 }
 0x201   :  { %838 = vst [vmem:[%s1494_s5 + $0x40] sm:$0xff] %v736_v2  ;;  %v739_v8 = vadd.f32 %v1359_v50, %v738_v6 }
 0x202   :  { %841 = vst [vmem:[%s1494_s5 + $0x58] sm:$0xff] %v747_v5 }
 0x203   :  { %839 = vst [vmem:[%s1494_s5 + $0x48] sm:$0xff] %v739_v8 }
 0x20d   :  { %v987_v10 = vpop.f32.mrb[28].mxu1 }
 0x20e   :  { %v760_v11 = vadd.f32 %v987_v10, %v1359_v50  ;;  %v751_v12 = vpop.f32.mrb[29].mxu1 }
 0x20f   :  { %v752_v15 = vadd.f32 %v1359_v50, %v751_v12  ;;  %v988_v16 = vpop.f32.mrb[30].mxu1 }
 0x210   :  { %844 = vst [vmem:[%s1494_s5 + $0x70] sm:$0xff] %v760_v11  ;;  %v763_v18 = vadd.f32 %v988_v16, %v1359_v50  ;;  %v754_v19 = vpop.f32.mrb[31].mxu1 }
 0x211   :  { %842 = vst [vmem:[%s1494_s5 + $0x60] sm:$0xff] %v752_v15  ;;  %v755_v20 = vadd.f32 %v1359_v50, %v754_v19 }
 0x212   :  { %845 = vst [vmem:[%s1494_s5 + $0x78] sm:$0xff] %v763_v18 }
 0x213   :  { %843 = vst [vmem:[%s1494_s5 + $0x68] sm:$0xff] %v755_v20 }
 0x21d   :  { %v991_v21 = vpop.f32.mrb[32].mxu1 }
 0x21e   :  { %v776_v22 = vadd.f32 %v991_v21, %v1359_v50  ;;  %v767_v23 = vpop.f32.mrb[33].mxu1 }
 0x21f   :  { %v768_v24 = vadd.f32 %v1359_v50, %v767_v23  ;;  %v992_v26 = vpop.f32.mrb[34].mxu1 }
 0x220   :  { %848 = vst [vmem:[%s1494_s5 + $0x90] sm:$0xff] %v776_v22  ;;  %v779_v27 = vadd.f32 %v992_v26, %v1359_v50  ;;  %v770_v28 = vpop.f32.mrb[35].mxu1 }
 0x221   :  { %846 = vst [vmem:[%s1494_s5 + $0x80] sm:$0xff] %v768_v24  ;;  %v771_v29 = vadd.f32 %v1359_v50, %v770_v28 }
 0x222   :  { %849 = vst [vmem:[%s1494_s5 + $0x98] sm:$0xff] %v779_v27 }
 0x223   :  { %847 = vst [vmem:[%s1494_s5 + $0x88] sm:$0xff] %v771_v29 }
 0x22d   :  { %v995_v30 = vpop.f32.mrb[36].mxu1 }
 0x22e   :  { %v792_v32 = vadd.f32 %v995_v30, %v1359_v50  ;;  %v783_v33 = vpop.f32.mrb[37].mxu1 }
 0x22f   :  { %v784_v34 = vadd.f32 %v1359_v50, %v783_v33  ;;  %v996_v35 = vpop.f32.mrb[38].mxu1 }
 0x230   :  { %852 = vst [vmem:[%s1494_s5 + $0xb0] sm:$0xff] %v792_v32  ;;  %v795_v37 = vadd.f32 %v996_v35, %v1359_v50  ;;  %v786_v38 = vpop.f32.mrb[39].mxu1 }
 0x231   :  { %850 = vst [vmem:[%s1494_s5 + $0xa0] sm:$0xff] %v784_v34  ;;  %v787_v39 = vadd.f32 %v1359_v50, %v786_v38 }
 0x232   :  { %853 = vst [vmem:[%s1494_s5 + $0xb8] sm:$0xff] %v795_v37 }
 0x233   :  { %851 = vst [vmem:[%s1494_s5 + $0xa8] sm:$0xff] %v787_v39 }
 0x235   :  { %v999_v40 = vpop.f32.mrb[40].mxu1 }
 0x236   :  { %v808_v41 = vadd.f32 %v999_v40, %v1359_v50  ;;  %v799_v42 = vpop.f32.mrb[41].mxu1 }
 0x237   :  { %v800_v43 = vadd.f32 %v1359_v50, %v799_v42  ;;  %v1000_v44 = vpop.f32.mrb[42].mxu1 }
 0x238   :  { %856 = vst [vmem:[%s1494_s5 + $0xd0] sm:$0xff] %v808_v41  ;;  %v811_v45 = vadd.f32 %v1000_v44, %v1359_v50  ;;  %v802_v46 = vpop.f32.mrb[43].mxu1 }
 0x239   :  { %854 = vst [vmem:[%s1494_s5 + $0xc0] sm:$0xff] %v800_v43  ;;  %v803_v48 = vadd.f32 %v1359_v50, %v802_v46 }
 0x23a   :  { %857 = vst [vmem:[%s1494_s5 + $0xd8] sm:$0xff] %v811_v45 }
 0x23b   :  { %855 = vst [vmem:[%s1494_s5 + $0xc8] sm:$0xff] %v803_v48 }
 0x23d   :  { %v1003_v49 = vpop.f32.mrb[44].mxu1 }
 0x23e   :  { %v824_v51 = vadd.f32 %v1003_v49, %v1359_v50  ;;  %v815_v52 = vpop.f32.mrb[45].mxu1 }
 0x23f   :  { %v816_v53 = vadd.f32 %v1359_v50, %v815_v52  ;;  %v1004_v55 = vpop.f32.mrb[46].mxu1 }
 0x240   :  { %860 = vst [vmem:[%s1494_s5 + $0xf0] sm:$0xff] %v824_v51  ;;  %v827_v56 = vadd.f32 %v1004_v55, %v1359_v50  ;;  %v818_v57 = vpop.f32.mrb[47].mxu1 }
 0x241   :  { %858 = vst [vmem:[%s1494_s5 + $0xe0] sm:$0xff] %v816_v53  ;;  %v819_v58 = vadd.f32 %v1359_v50, %v818_v57 }
 0x242   :  { %861 = vst [vmem:[%s1494_s5 + $0xf8] sm:$0xff] %v827_v56 }
 0x243   :  { %859 = vst [vmem:[%s1494_s5 + $0xe8] sm:$0xff] %v819_v58 }

</bundles_post_ra>
